<compile_context>
chip_gen: v7x
topology: tpu7x:2x2x1
jax: 0.10.0
libtpu: 0.0.40
codegen_flags: <defaults>
</compile_context>

<pallas_src>
import functools
import jax
import jax.numpy as jnp
from jax.experimental import pallas as pl
from jax.experimental.pallas import tpu as pltpu

GROUPS = 32     # GroupNorm(32, channels), as in normalization()/GroupNorm32
EPS = 1e-5


# ---------------------------------------------------------------- kernel -----
def _encoder_kernel(x_ref, wi_ref, bi_ref, gam_ref, bet_ref, gsum_ref, gbc_ref,
                    wqkv_ref, bqkv_ref, wpr_ref, bpr_ref, o_ref,
                    *, num_blocks, num_heads, head_dim, mean_out, compute_dtype):
    C = num_heads * head_dim
    x = x_ref[0]                              # (T, Spad) in compute_dtype (bf16)
    t = x.shape[0]
    inv_t = 1.0 / t

    # --- init conv (kernel_size=1 == channel matmul), f32 accumulation ---
    h = jnp.dot(x, wi_ref[...], preferred_element_type=jnp.float32) + bi_ref[...]

    for blk in range(num_blocks):             # static unroll over attention blocks
        gamma = gam_ref[blk]                  # (1, C) f32
        beta = bet_ref[blk]
        wqkv = wqkv_ref[blk]                  # (C, 3C) bf16, [Q|K|V], scale folded
        bqkv = bqkv_ref[blk]                  # (1, 3C) f32, scale folded
        wpr = wpr_ref[blk]                    # (C, C) bf16
        bpr = bpr_ref[blk]                    # (1, C) f32

        # --- GroupNorm(32, C): stats over (channels-in-group, time), centered ---
        mean_c = jnp.sum(h, axis=0, keepdims=True) * inv_t            # (1, C)
        gmean = jnp.dot(
            jnp.dot(mean_c, gsum_ref[...], preferred_element_type=jnp.float32),
            gbc_ref[...], preferred_element_type=jnp.float32)         # (1, C)
        xc = h - gmean
        var_c = jnp.sum(xc * xc, axis=0, keepdims=True) * inv_t       # (1, C)
        gvar = jnp.dot(
            jnp.dot(var_c, gsum_ref[...], preferred_element_type=jnp.float32),
            gbc_ref[...], preferred_element_type=jnp.float32)         # (1, C)
        xn = xc * jax.lax.rsqrt(gvar + EPS) * gamma + beta             # (T, C) f32

        # --- qkv projection: one (T,C)@(C,3C) bf16 matmul, scale pre-folded ---
        qkv = (jnp.dot(xn.astype(compute_dtype), wqkv,
                       preferred_element_type=jnp.float32) + bqkv)     # (T, 3C) f32

        # --- attention, per head; outputs kept in registers, concat lane-dense ---
        heads = []
        for hh in range(num_heads):
            lo = hh * head_dim
            q = qkv[:, lo:lo + head_dim].astype(compute_dtype)             # scaled
            k = qkv[:, C + lo:C + lo + head_dim].astype(compute_dtype)     # scaled
            v = qkv[:, 2 * C + lo:2 * C + lo + head_dim].astype(compute_dtype)
            logits = jnp.dot(q, k.T, preferred_element_type=jnp.float32)   # (T, T)
            m = jnp.max(logits, axis=-1, keepdims=True)
            e = jnp.exp(logits - m)
            p = e * pl.reciprocal(jnp.sum(e, axis=-1, keepdims=True), approx=True)
            heads.append(jnp.dot(p.astype(compute_dtype), v,
                                 preferred_element_type=jnp.float32))      # (T, hd)
        a = jnp.concatenate(heads, axis=-1).astype(compute_dtype)          # (T, C)

        # --- proj_out + residual ---
        h = h + jnp.dot(a, wpr, preferred_element_type=jnp.float32) + bpr

    # --- reduced output only: h[:, :, 0] (NCT) == row 0, or time-mean ---
    if mean_out:
        o_ref[0] = jnp.mean(h, axis=0, keepdims=True)
    else:
        o_ref[0] = h[0:1, :]


# ------------------------------------------------------ weight pre-packing ---
def _prepack(params, compute_dtype):
    """Stack per-block weights, re-layout QKV to [Q|K|V], fold scale, cast bf16,
    pad spec_dim to a lane-aligned contraction, build factored group matrices."""
    w_init = params["w_init"].astype(jnp.float32)
    S, C = w_init.shape
    H = params["num_heads"]
    hd = C // H
    cg = C // GROUPS
    scale = float(hd) ** -0.25

    spad = ((S + 127) // 128) * 128
    w_init_p = jnp.zeros((spad, C), jnp.float32).at[:S].set(w_init)

    # factored GroupNorm matrices: (C, G) group-average, (G, C) broadcast-back
    gidx = jnp.arange(C) // cg
    gsum = (gidx[:, None] == jnp.arange(GROUPS)[None, :]).astype(jnp.float32) / cg
    gbcast = (jnp.arange(GROUPS)[:, None] == gidx[None, :]).astype(jnp.float32)

    # column permutation: per-head [q|k|v] interleave -> [Q_all | K_all | V_all]
    head = jnp.arange(C) // hd
    within = jnp.arange(C) % hd
    q_cols = head * (3 * hd) + within
    perm = jnp.concatenate([q_cols, q_cols + hd, q_cols + 2 * hd])      # (3C,)
    col_scale = jnp.concatenate([jnp.full((2 * C,), scale, jnp.float32),
                                 jnp.ones((C,), jnp.float32)])          # scale Q,K only

    gammas = jnp.stack([b["gamma"] for b in params["blocks"]]).astype(jnp.float32)
    betas = jnp.stack([b["beta"] for b in params["blocks"]]).astype(jnp.float32)
    wqkv = jnp.stack([b["wqkv"][:, perm] * col_scale[None, :] for b in params["blocks"]])
    bqkv = jnp.stack([b["bqkv"][:, perm] * col_scale[None, :] for b in params["blocks"]])
    wproj = jnp.stack([b["wproj"] for b in params["blocks"]])
    bproj = jnp.stack([b["bproj"] for b in params["blocks"]])

    return dict(
        w_init=w_init_p.astype(compute_dtype),
        b_init=params["b_init"].astype(jnp.float32),
        gsum=gsum, gbcast=gbcast,
        gammas=gammas, betas=betas,
        wqkv=wqkv.astype(compute_dtype), bqkv=bqkv.astype(jnp.float32),
        wproj=wproj.astype(compute_dtype), bproj=bproj.astype(jnp.float32),
        spad=spad,
    )


# ---------------------------------------------------------------- wrapper ----
def _full(shape):
    nd = len(shape)
    return pl.BlockSpec(shape, lambda b, _n=nd: (0,) * _n)


def conditioning_encoder_forward(x_nct, params, mean=False,
                                 compute_dtype=jnp.bfloat16):
    """x_nct: (B, spec_dim, T) like PyTorch NCT input. Returns (B, emb_dim)."""
    B, S, T = x_nct.shape
    C = params["w_init"].shape[1]
    H = params["num_heads"]
    hd = C // H
    NB = len(params["blocks"])

    pk = _prepack(params, compute_dtype)
    spad = pk["spad"]

    x = jnp.transpose(x_nct, (0, 2, 1)).astype(jnp.float32)        # (B, T, S)
    if spad != S:
        x = jnp.pad(x, ((0, 0), (0, 0), (0, spad - S)))            # lane-aligned K
    x = x.astype(compute_dtype)

    kern = functools.partial(_encoder_kernel, num_blocks=NB, num_heads=H,
                             head_dim=hd, mean_out=mean, compute_dtype=compute_dtype)

    # Weight BlockSpecs use constant index maps: fetched once, never re-DMA'd across
    # the batch grid. (At production emb_dim, add pipeline_mode=pl.Buffered(1) and a
    # larger vmem_limit_bytes to keep v7x's 64 MiB VMEM in budget.)
    out = pl.pallas_call(
        kern,
        out_shape=jax.ShapeDtypeStruct((B, 1, C), jnp.float32),
        grid=(B,),
        in_specs=[
            pl.BlockSpec((1, T, spad), lambda b: (b, 0, 0)),   # x
            _full((spad, C)), _full((1, C)),                   # init conv
            _full((NB, 1, C)), _full((NB, 1, C)),              # gamma, beta
            _full((C, GROUPS)), _full((GROUPS, C)),            # factored group mats
            _full((NB, C, 3 * C)), _full((NB, 1, 3 * C)),      # qkv
            _full((NB, C, C)), _full((NB, 1, C)),              # proj_out
        ],
        out_specs=pl.BlockSpec((1, 1, C), lambda b: (b, 0, 0)),
        compiler_params=pltpu.CompilerParams(
            dimension_semantics=("parallel",),                 # 2-way megacore on v7x
            vmem_limit_bytes=32 * 1024 * 1024),
    )(x, pk["w_init"], pk["b_init"], pk["gammas"], pk["betas"],
      pk["gsum"], pk["gbcast"], pk["wqkv"], pk["bqkv"], pk["wproj"], pk["bproj"])

    return out[:, 0, :]                                        # (B, C)


# ------------------------------------------------------------- parameters ----
def make_params(key, spec_dim, emb_dim, attn_blocks, num_heads):
    assert emb_dim % GROUPS == 0 and emb_dim % num_heads == 0
    nk = 6
    keys = jax.random.split(key, 2 + nk * attn_blocks)
    s = 0.05
    w_init = s * jax.random.normal(keys[0], (spec_dim, emb_dim), jnp.float32)
    b_init = s * jax.random.normal(keys[1], (1, emb_dim), jnp.float32)
    blocks = []
    for a in range(attn_blocks):
        k = keys[2 + nk * a: 2 + nk * (a + 1)]
        blocks.append(dict(
            gamma=1.0 + 0.1 * jax.random.normal(k[0], (1, emb_dim), jnp.float32),
            beta=0.1 * jax.random.normal(k[1], (1, emb_dim), jnp.float32),
            wqkv=s * jax.random.normal(k[2], (emb_dim, 3 * emb_dim), jnp.float32),
            bqkv=s * jax.random.normal(k[3], (1, 3 * emb_dim), jnp.float32),
            wproj=s * jax.random.normal(k[4], (emb_dim, emb_dim), jnp.float32),
            bproj=s * jax.random.normal(k[5], (1, emb_dim), jnp.float32),
        ))
    return dict(w_init=w_init, b_init=b_init, num_heads=num_heads, blocks=blocks)


# ---------------------------------------------------------- pure-JAX ref -----
def ref_forward(x_nct, params, mean=False, compute_dtype=jnp.bfloat16):
    """Reference in module (PyTorch) layout. Matmul inputs are cast to the same
    compute dtype as the kernel (f32 accumulation) so the comparison is tight."""
    x = jnp.transpose(x_nct, (0, 2, 1)).astype(compute_dtype)     # (B, T, S)
    B, T, _ = x.shape
    C = params["w_init"].shape[1]
    H = params["num_heads"]
    hd = C // H
    cg = C // GROUPS
    h = (jnp.einsum("bts,sc->btc", x, params["w_init"].astype(compute_dtype),
                    preferred_element_type=jnp.float32) + params["b_init"])
    for blk in params["blocks"]:
        hb = h.reshape(B, T, GROUPS, cg)
        mu = hb.mean(axis=(1, 3), keepdims=True)
        var = ((hb - mu) ** 2).mean(axis=(1, 3), keepdims=True)
        xn = ((hb - mu) / jnp.sqrt(var + EPS)).reshape(B, T, C) * blk["gamma"] + blk["beta"]
        qkv = (jnp.einsum("btc,cd->btd", xn.astype(compute_dtype),
                          blk["wqkv"].astype(compute_dtype),
                          preferred_element_type=jnp.float32) + blk["bqkv"])
        outs = []
        scale = hd ** -0.25
        for hh in range(H):
            base = hh * 3 * hd
            q = (qkv[:, :, base:base + hd] * scale).astype(compute_dtype)
            k = (qkv[:, :, base + hd:base + 2 * hd] * scale).astype(compute_dtype)
            v = qkv[:, :, base + 2 * hd:base + 3 * hd].astype(compute_dtype)
            w = jax.nn.softmax(jnp.einsum("btd,bsd->bts", q, k,
                                          preferred_element_type=jnp.float32), axis=-1)
            outs.append(jnp.einsum("bts,bsd->btd", w.astype(compute_dtype), v,
                                   preferred_element_type=jnp.float32))
        a = jnp.concatenate(outs, axis=-1)
        h = h + (jnp.einsum("btc,cd->btd", a.astype(compute_dtype),
                            blk["wproj"].astype(compute_dtype),
                            preferred_element_type=jnp.float32) + blk["bproj"])
    if mean:
        return jnp.mean(h, axis=1)
    return h[:, 0, :]


# -------------------------------------------------------------------- main ---
if __name__ == "__main__":
    B, SPEC_DIM, T = 2, 80, 16           # PyTorch input x: (B, spec_dim, T)
    EMB_DIM, ATTN_BLOCKS, NUM_HEADS = 64, 6, 4

    key = jax.random.PRNGKey(0)
    kx, kp = jax.random.split(key)
    x = jax.random.normal(kx, (B, SPEC_DIM, T), dtype=jnp.float32)
    params = make_params(kp, SPEC_DIM, EMB_DIM, ATTN_BLOCKS, NUM_HEADS)

    out = conditioning_encoder_forward(x, params, mean=False)
    out = jax.block_until_ready(out)
    assert out.shape == (B, EMB_DIM), out.shape

    ref = ref_forward(x, params, mean=False)
    err = float(jnp.max(jnp.abs(out - ref)))
    if err > 1e-2:
        raise AssertionError(f"Pallas/ref mismatch, max abs err = {err}")
    print("KERNEL_OK")
</pallas_src>

<mosaic_0001>
module attributes {stable_mosaic.version = 11 : i64} {
  func.func @_encoder_kernel(%arg0: i32, %arg1: memref<1x16x128xbf16, #tpu.memory_space<vmem>>, %arg2: memref<128x64xbf16, #tpu.memory_space<vmem>>, %arg3: memref<1x64xf32, #tpu.memory_space<vmem>>, %arg4: memref<6x1x64xf32, #tpu.memory_space<vmem>>, %arg5: memref<6x1x64xf32, #tpu.memory_space<vmem>>, %arg6: memref<64x32xf32, #tpu.memory_space<vmem>>, %arg7: memref<32x64xf32, #tpu.memory_space<vmem>>, %arg8: memref<6x64x192xbf16, #tpu.memory_space<vmem>>, %arg9: memref<6x1x192xf32, #tpu.memory_space<vmem>>, %arg10: memref<6x64x64xbf16, #tpu.memory_space<vmem>>, %arg11: memref<6x1x64xf32, #tpu.memory_space<vmem>>, %arg12: memref<1x1x64xf32, #tpu.memory_space<vmem>>) attributes {dimension_semantics = [#tpu.dimension_semantics<parallel>], iteration_bounds = array<i64: 2>, scalar_prefetch = 0 : i64, scratch_operands = 0 : i64, tpu.core_type = #tpu.core_type<tc>, window_params = [{transform_indices = @transform_0, window_bounds = array<i64: 1, 16, 128>}, {pipeline_mode = #tpu.pipeline_mode<synchronous>, transform_indices = @transform_1, window_bounds = array<i64: 128, 64>}, {pipeline_mode = #tpu.pipeline_mode<synchronous>, transform_indices = @transform_2, window_bounds = array<i64: 1, 64>}, {pipeline_mode = #tpu.pipeline_mode<synchronous>, transform_indices = @transform_3, window_bounds = array<i64: 6, 1, 64>}, {pipeline_mode = #tpu.pipeline_mode<synchronous>, transform_indices = @transform_4, window_bounds = array<i64: 6, 1, 64>}, {pipeline_mode = #tpu.pipeline_mode<synchronous>, transform_indices = @transform_5, window_bounds = array<i64: 64, 32>}, {pipeline_mode = #tpu.pipeline_mode<synchronous>, transform_indices = @transform_6, window_bounds = array<i64: 32, 64>}, {pipeline_mode = #tpu.pipeline_mode<synchronous>, transform_indices = @transform_7, window_bounds = array<i64: 6, 64, 192>}, {pipeline_mode = #tpu.pipeline_mode<synchronous>, transform_indices = @transform_8, window_bounds = array<i64: 6, 1, 192>}, {pipeline_mode = #tpu.pipeline_mode<synchronous>, transform_indices = @transform_9, window_bounds = array<i64: 6, 64, 64>}, {pipeline_mode = #tpu.pipeline_mode<synchronous>, transform_indices = @transform_10, window_bounds = array<i64: 6, 1, 64>}, {transform_indices = @transform_11, window_bounds = array<i64: 1, 1, 64>}]} {
    %c0 = arith.constant 0 : index
    %c0_0 = arith.constant 0 : index
    %c0_1 = arith.constant 0 : index
    %0 = vector.load %arg1[%c0, %c0_0, %c0_1] : memref<1x16x128xbf16, #tpu.memory_space<vmem>>, vector<1x16x128xbf16>
    %1 = vector.shape_cast %0 : vector<1x16x128xbf16> to vector<16x128xbf16>
    %c0_2 = arith.constant 0 : index
    %c0_3 = arith.constant 0 : index
    %2 = vector.load %arg2[%c0_2, %c0_3] : memref<128x64xbf16, #tpu.memory_space<vmem>>, vector<128x64xbf16>
    %cst = arith.constant dense<0.000000e+00> : vector<16x64xf32>
    %3 = tpu.matmul %1, %2, %cst {dimension_numbers = #tpu.dot_dimension_numbers<[1], [0], [0], [1], [0, 0, 1, 1], [], []>} : vector<16x128xbf16>, vector<128x64xbf16>, vector<16x64xf32> -> vector<16x64xf32>
    %c0_4 = arith.constant 0 : index
    %c0_5 = arith.constant 0 : index
    %4 = vector.load %arg3[%c0_4, %c0_5] : memref<1x64xf32, #tpu.memory_space<vmem>>, vector<1x64xf32>
    %5 = vector.broadcast %4 : vector<1x64xf32> to vector<16x64xf32>
    %6 = arith.addf %3, %5 : vector<16x64xf32>
    %c0_6 = arith.constant 0 : index
    %c0_7 = arith.constant 0 : index
    %c0_8 = arith.constant 0 : index
    %7 = vector.load %arg4[%c0_6, %c0_7, %c0_8] : memref<6x1x64xf32, #tpu.memory_space<vmem>>, vector<1x1x64xf32>
    %8 = vector.shape_cast %7 : vector<1x1x64xf32> to vector<1x64xf32>
    %c0_9 = arith.constant 0 : index
    %c0_10 = arith.constant 0 : index
    %c0_11 = arith.constant 0 : index
    %9 = vector.load %arg5[%c0_9, %c0_10, %c0_11] : memref<6x1x64xf32, #tpu.memory_space<vmem>>, vector<1x1x64xf32>
    %10 = vector.shape_cast %9 : vector<1x1x64xf32> to vector<1x64xf32>
    %c0_12 = arith.constant 0 : index
    %c0_13 = arith.constant 0 : index
    %c0_14 = arith.constant 0 : index
    %11 = vector.load %arg8[%c0_12, %c0_13, %c0_14] : memref<6x64x192xbf16, #tpu.memory_space<vmem>>, vector<1x64x192xbf16>
    %12 = vector.shape_cast %11 : vector<1x64x192xbf16> to vector<64x192xbf16>
    %c0_15 = arith.constant 0 : index
    %c0_16 = arith.constant 0 : index
    %c0_17 = arith.constant 0 : index
    %13 = vector.load %arg9[%c0_15, %c0_16, %c0_17] : memref<6x1x192xf32, #tpu.memory_space<vmem>>, vector<1x1x192xf32>
    %14 = vector.shape_cast %13 : vector<1x1x192xf32> to vector<1x192xf32>
    %c0_18 = arith.constant 0 : index
    %c0_19 = arith.constant 0 : index
    %c0_20 = arith.constant 0 : index
    %15 = vector.load %arg10[%c0_18, %c0_19, %c0_20] : memref<6x64x64xbf16, #tpu.memory_space<vmem>>, vector<1x64x64xbf16>
    %16 = vector.shape_cast %15 : vector<1x64x64xbf16> to vector<64x64xbf16>
    %c0_21 = arith.constant 0 : index
    %c0_22 = arith.constant 0 : index
    %c0_23 = arith.constant 0 : index
    %17 = vector.load %arg11[%c0_21, %c0_22, %c0_23] : memref<6x1x64xf32, #tpu.memory_space<vmem>>, vector<1x1x64xf32>
    %18 = vector.shape_cast %17 : vector<1x1x64xf32> to vector<1x64xf32>
    %cst_24 = arith.constant dense<0.000000e+00> : vector<64xf32>
    %19 = vector.multi_reduction <add>, %6, %cst_24 [0] : vector<16x64xf32> to vector<64xf32>
    %20 = vector.shape_cast %19 : vector<64xf32> to vector<1x64xf32>
    %cst_25 = arith.constant 6.250000e-02 : f32
    %21 = vector.broadcast %cst_25 : f32 to vector<1x64xf32>
    %22 = arith.mulf %20, %21 : vector<1x64xf32>
    %c0_26 = arith.constant 0 : index
    %c0_27 = arith.constant 0 : index
    %23 = vector.load %arg6[%c0_26, %c0_27] : memref<64x32xf32, #tpu.memory_space<vmem>>, vector<64x32xf32>
    %cst_28 = arith.constant dense<0.000000e+00> : vector<1x32xf32>
    %24 = tpu.matmul %22, %23, %cst_28 {dimension_numbers = #tpu.dot_dimension_numbers<[1], [0], [0], [1], [0, 0, 1, 1], [], []>} : vector<1x64xf32>, vector<64x32xf32>, vector<1x32xf32> -> vector<1x32xf32>
    %c0_29 = arith.constant 0 : index
    %c0_30 = arith.constant 0 : index
    %25 = vector.load %arg7[%c0_29, %c0_30] : memref<32x64xf32, #tpu.memory_space<vmem>>, vector<32x64xf32>
    %cst_31 = arith.constant dense<0.000000e+00> : vector<1x64xf32>
    %26 = tpu.matmul %24, %25, %cst_31 {dimension_numbers = #tpu.dot_dimension_numbers<[1], [0], [0], [1], [0, 0, 1, 1], [], []>} : vector<1x32xf32>, vector<32x64xf32>, vector<1x64xf32> -> vector<1x64xf32>
    %27 = vector.broadcast %26 : vector<1x64xf32> to vector<16x64xf32>
    %28 = arith.subf %6, %27 : vector<16x64xf32>
    %29 = arith.mulf %28, %28 : vector<16x64xf32>
    %cst_32 = arith.constant dense<0.000000e+00> : vector<64xf32>
    %30 = vector.multi_reduction <add>, %29, %cst_32 [0] : vector<16x64xf32> to vector<64xf32>
    %31 = vector.shape_cast %30 : vector<64xf32> to vector<1x64xf32>
    %cst_33 = arith.constant 6.250000e-02 : f32
    %32 = vector.broadcast %cst_33 : f32 to vector<1x64xf32>
    %33 = arith.mulf %31, %32 : vector<1x64xf32>
    %c0_34 = arith.constant 0 : index
    %c0_35 = arith.constant 0 : index
    %34 = vector.load %arg6[%c0_34, %c0_35] : memref<64x32xf32, #tpu.memory_space<vmem>>, vector<64x32xf32>
    %cst_36 = arith.constant dense<0.000000e+00> : vector<1x32xf32>
    %35 = tpu.matmul %33, %34, %cst_36 {dimension_numbers = #tpu.dot_dimension_numbers<[1], [0], [0], [1], [0, 0, 1, 1], [], []>} : vector<1x64xf32>, vector<64x32xf32>, vector<1x32xf32> -> vector<1x32xf32>
    %c0_37 = arith.constant 0 : index
    %c0_38 = arith.constant 0 : index
    %36 = vector.load %arg7[%c0_37, %c0_38] : memref<32x64xf32, #tpu.memory_space<vmem>>, vector<32x64xf32>
    %cst_39 = arith.constant dense<0.000000e+00> : vector<1x64xf32>
    %37 = tpu.matmul %35, %36, %cst_39 {dimension_numbers = #tpu.dot_dimension_numbers<[1], [0], [0], [1], [0, 0, 1, 1], [], []>} : vector<1x32xf32>, vector<32x64xf32>, vector<1x64xf32> -> vector<1x64xf32>
    %cst_40 = arith.constant 9.99999974E-6 : f32
    %38 = vector.broadcast %cst_40 : f32 to vector<1x64xf32>
    %39 = arith.addf %37, %38 : vector<1x64xf32>
    %40 = math.rsqrt %39 : vector<1x64xf32>
    %41 = vector.broadcast %40 : vector<1x64xf32> to vector<16x64xf32>
    %42 = arith.mulf %28, %41 : vector<16x64xf32>
    %43 = vector.broadcast %8 : vector<1x64xf32> to vector<16x64xf32>
    %44 = arith.mulf %42, %43 : vector<16x64xf32>
    %45 = vector.broadcast %10 : vector<1x64xf32> to vector<16x64xf32>
    %46 = arith.addf %44, %45 : vector<16x64xf32>
    %47 = arith.truncf %46 : vector<16x64xf32> to vector<16x64xbf16>
    %cst_41 = arith.constant dense<0.000000e+00> : vector<16x192xf32>
    %48 = tpu.matmul %47, %12, %cst_41 {dimension_numbers = #tpu.dot_dimension_numbers<[1], [0], [0], [1], [0, 0, 1, 1], [], []>} : vector<16x64xbf16>, vector<64x192xbf16>, vector<16x192xf32> -> vector<16x192xf32>
    %49 = vector.broadcast %14 : vector<1x192xf32> to vector<16x192xf32>
    %50 = arith.addf %48, %49 : vector<16x192xf32>
    %51 = vector.extract_strided_slice %50 {offsets = [0, 0], sizes = [16, 16], strides = [1, 1]} : vector<16x192xf32> to vector<16x16xf32>
    %52 = arith.truncf %51 : vector<16x16xf32> to vector<16x16xbf16>
    %53 = vector.extract_strided_slice %50 {offsets = [0, 64], sizes = [16, 16], strides = [1, 1]} : vector<16x192xf32> to vector<16x16xf32>
    %54 = arith.truncf %53 : vector<16x16xf32> to vector<16x16xbf16>
    %55 = vector.extract_strided_slice %50 {offsets = [0, 128], sizes = [16, 16], strides = [1, 1]} : vector<16x192xf32> to vector<16x16xf32>
    %56 = arith.truncf %55 : vector<16x16xf32> to vector<16x16xbf16>
    %57 = tpu.transpose %54, [1, 0] : vector<16x16xbf16> -> vector<16x16xbf16>
    %cst_42 = arith.constant dense<0.000000e+00> : vector<16x16xf32>
    %58 = tpu.matmul %52, %57, %cst_42 {dimension_numbers = #tpu.dot_dimension_numbers<[1], [0], [0], [1], [0, 0, 1, 1], [], []>} : vector<16x16xbf16>, vector<16x16xbf16>, vector<16x16xf32> -> vector<16x16xf32>
    %cst_43 = arith.constant dense<0xFF800000> : vector<16xf32>
    %59 = vector.multi_reduction <maximumf>, %58, %cst_43 [1] : vector<16x16xf32> to vector<16xf32>
    %60 = vector.shape_cast %59 : vector<16xf32> to vector<16x1xf32>
    %61 = vector.broadcast %60 : vector<16x1xf32> to vector<16x16xf32>
    %62 = arith.subf %58, %61 : vector<16x16xf32>
    %63 = math.exp %62 : vector<16x16xf32>
    %cst_44 = arith.constant dense<0.000000e+00> : vector<16xf32>
    %64 = vector.multi_reduction <add>, %63, %cst_44 [1] : vector<16x16xf32> to vector<16xf32>
    %65 = vector.shape_cast %64 : vector<16xf32> to vector<16x1xf32>
    %66 = tpu.reciprocal %65 {approx = true} : vector<16x1xf32> -> vector<16x1xf32>
    %67 = vector.broadcast %66 : vector<16x1xf32> to vector<16x16xf32>
    %68 = arith.mulf %63, %67 : vector<16x16xf32>
    %69 = arith.truncf %68 : vector<16x16xf32> to vector<16x16xbf16>
    %cst_45 = arith.constant dense<0.000000e+00> : vector<16x16xf32>
    %70 = tpu.matmul %69, %56, %cst_45 {dimension_numbers = #tpu.dot_dimension_numbers<[1], [0], [0], [1], [0, 0, 1, 1], [], []>} : vector<16x16xbf16>, vector<16x16xbf16>, vector<16x16xf32> -> vector<16x16xf32>
    %71 = vector.extract_strided_slice %50 {offsets = [0, 16], sizes = [16, 16], strides = [1, 1]} : vector<16x192xf32> to vector<16x16xf32>
    %72 = arith.truncf %71 : vector<16x16xf32> to vector<16x16xbf16>
    %73 = vector.extract_strided_slice %50 {offsets = [0, 80], sizes = [16, 16], strides = [1, 1]} : vector<16x192xf32> to vector<16x16xf32>
    %74 = arith.truncf %73 : vector<16x16xf32> to vector<16x16xbf16>
    %75 = vector.extract_strided_slice %50 {offsets = [0, 144], sizes = [16, 16], strides = [1, 1]} : vector<16x192xf32> to vector<16x16xf32>
    %76 = arith.truncf %75 : vector<16x16xf32> to vector<16x16xbf16>
    %77 = tpu.transpose %74, [1, 0] : vector<16x16xbf16> -> vector<16x16xbf16>
    %cst_46 = arith.constant dense<0.000000e+00> : vector<16x16xf32>
    %78 = tpu.matmul %72, %77, %cst_46 {dimension_numbers = #tpu.dot_dimension_numbers<[1], [0], [0], [1], [0, 0, 1, 1], [], []>} : vector<16x16xbf16>, vector<16x16xbf16>, vector<16x16xf32> -> vector<16x16xf32>
    %cst_47 = arith.constant dense<0xFF800000> : vector<16xf32>
    %79 = vector.multi_reduction <maximumf>, %78, %cst_47 [1] : vector<16x16xf32> to vector<16xf32>
    %80 = vector.shape_cast %79 : vector<16xf32> to vector<16x1xf32>
    %81 = vector.broadcast %80 : vector<16x1xf32> to vector<16x16xf32>
    %82 = arith.subf %78, %81 : vector<16x16xf32>
    %83 = math.exp %82 : vector<16x16xf32>
    %cst_48 = arith.constant dense<0.000000e+00> : vector<16xf32>
    %84 = vector.multi_reduction <add>, %83, %cst_48 [1] : vector<16x16xf32> to vector<16xf32>
    %85 = vector.shape_cast %84 : vector<16xf32> to vector<16x1xf32>
    %86 = tpu.reciprocal %85 {approx = true} : vector<16x1xf32> -> vector<16x1xf32>
    %87 = vector.broadcast %86 : vector<16x1xf32> to vector<16x16xf32>
    %88 = arith.mulf %83, %87 : vector<16x16xf32>
    %89 = arith.truncf %88 : vector<16x16xf32> to vector<16x16xbf16>
    %cst_49 = arith.constant dense<0.000000e+00> : vector<16x16xf32>
    %90 = tpu.matmul %89, %76, %cst_49 {dimension_numbers = #tpu.dot_dimension_numbers<[1], [0], [0], [1], [0, 0, 1, 1], [], []>} : vector<16x16xbf16>, vector<16x16xbf16>, vector<16x16xf32> -> vector<16x16xf32>
    %91 = vector.extract_strided_slice %50 {offsets = [0, 32], sizes = [16, 16], strides = [1, 1]} : vector<16x192xf32> to vector<16x16xf32>
    %92 = arith.truncf %91 : vector<16x16xf32> to vector<16x16xbf16>
    %93 = vector.extract_strided_slice %50 {offsets = [0, 96], sizes = [16, 16], strides = [1, 1]} : vector<16x192xf32> to vector<16x16xf32>
    %94 = arith.truncf %93 : vector<16x16xf32> to vector<16x16xbf16>
    %95 = vector.extract_strided_slice %50 {offsets = [0, 160], sizes = [16, 16], strides = [1, 1]} : vector<16x192xf32> to vector<16x16xf32>
    %96 = arith.truncf %95 : vector<16x16xf32> to vector<16x16xbf16>
    %97 = tpu.transpose %94, [1, 0] : vector<16x16xbf16> -> vector<16x16xbf16>
    %cst_50 = arith.constant dense<0.000000e+00> : vector<16x16xf32>
    %98 = tpu.matmul %92, %97, %cst_50 {dimension_numbers = #tpu.dot_dimension_numbers<[1], [0], [0], [1], [0, 0, 1, 1], [], []>} : vector<16x16xbf16>, vector<16x16xbf16>, vector<16x16xf32> -> vector<16x16xf32>
    %cst_51 = arith.constant dense<0xFF800000> : vector<16xf32>
    %99 = vector.multi_reduction <maximumf>, %98, %cst_51 [1] : vector<16x16xf32> to vector<16xf32>
    %100 = vector.shape_cast %99 : vector<16xf32> to vector<16x1xf32>
    %101 = vector.broadcast %100 : vector<16x1xf32> to vector<16x16xf32>
    %102 = arith.subf %98, %101 : vector<16x16xf32>
    %103 = math.exp %102 : vector<16x16xf32>
    %cst_52 = arith.constant dense<0.000000e+00> : vector<16xf32>
    %104 = vector.multi_reduction <add>, %103, %cst_52 [1] : vector<16x16xf32> to vector<16xf32>
    %105 = vector.shape_cast %104 : vector<16xf32> to vector<16x1xf32>
    %106 = tpu.reciprocal %105 {approx = true} : vector<16x1xf32> -> vector<16x1xf32>
    %107 = vector.broadcast %106 : vector<16x1xf32> to vector<16x16xf32>
    %108 = arith.mulf %103, %107 : vector<16x16xf32>
    %109 = arith.truncf %108 : vector<16x16xf32> to vector<16x16xbf16>
    %cst_53 = arith.constant dense<0.000000e+00> : vector<16x16xf32>
    %110 = tpu.matmul %109, %96, %cst_53 {dimension_numbers = #tpu.dot_dimension_numbers<[1], [0], [0], [1], [0, 0, 1, 1], [], []>} : vector<16x16xbf16>, vector<16x16xbf16>, vector<16x16xf32> -> vector<16x16xf32>
    %111 = vector.extract_strided_slice %50 {offsets = [0, 48], sizes = [16, 16], strides = [1, 1]} : vector<16x192xf32> to vector<16x16xf32>
    %112 = arith.truncf %111 : vector<16x16xf32> to vector<16x16xbf16>
    %113 = vector.extract_strided_slice %50 {offsets = [0, 112], sizes = [16, 16], strides = [1, 1]} : vector<16x192xf32> to vector<16x16xf32>
    %114 = arith.truncf %113 : vector<16x16xf32> to vector<16x16xbf16>
    %115 = vector.extract_strided_slice %50 {offsets = [0, 176], sizes = [16, 16], strides = [1, 1]} : vector<16x192xf32> to vector<16x16xf32>
    %116 = arith.truncf %115 : vector<16x16xf32> to vector<16x16xbf16>
    %117 = tpu.transpose %114, [1, 0] : vector<16x16xbf16> -> vector<16x16xbf16>
    %cst_54 = arith.constant dense<0.000000e+00> : vector<16x16xf32>
    %118 = tpu.matmul %112, %117, %cst_54 {dimension_numbers = #tpu.dot_dimension_numbers<[1], [0], [0], [1], [0, 0, 1, 1], [], []>} : vector<16x16xbf16>, vector<16x16xbf16>, vector<16x16xf32> -> vector<16x16xf32>
    %cst_55 = arith.constant dense<0xFF800000> : vector<16xf32>
    %119 = vector.multi_reduction <maximumf>, %118, %cst_55 [1] : vector<16x16xf32> to vector<16xf32>
    %120 = vector.shape_cast %119 : vector<16xf32> to vector<16x1xf32>
    %121 = vector.broadcast %120 : vector<16x1xf32> to vector<16x16xf32>
    %122 = arith.subf %118, %121 : vector<16x16xf32>
    %123 = math.exp %122 : vector<16x16xf32>
    %cst_56 = arith.constant dense<0.000000e+00> : vector<16xf32>
    %124 = vector.multi_reduction <add>, %123, %cst_56 [1] : vector<16x16xf32> to vector<16xf32>
    %125 = vector.shape_cast %124 : vector<16xf32> to vector<16x1xf32>
    %126 = tpu.reciprocal %125 {approx = true} : vector<16x1xf32> -> vector<16x1xf32>
    %127 = vector.broadcast %126 : vector<16x1xf32> to vector<16x16xf32>
    %128 = arith.mulf %123, %127 : vector<16x16xf32>
    %129 = arith.truncf %128 : vector<16x16xf32> to vector<16x16xbf16>
    %cst_57 = arith.constant dense<0.000000e+00> : vector<16x16xf32>
    %130 = tpu.matmul %129, %116, %cst_57 {dimension_numbers = #tpu.dot_dimension_numbers<[1], [0], [0], [1], [0, 0, 1, 1], [], []>} : vector<16x16xbf16>, vector<16x16xbf16>, vector<16x16xf32> -> vector<16x16xf32>
    %131 = tpu.concatenate %70, %90, %110, %130 in 1 : vector<16x16xf32>, vector<16x16xf32>, vector<16x16xf32>, vector<16x16xf32> -> vector<16x64xf32>
    %132 = arith.truncf %131 : vector<16x64xf32> to vector<16x64xbf16>
    %cst_58 = arith.constant dense<0.000000e+00> : vector<16x64xf32>
    %133 = tpu.matmul %132, %16, %cst_58 {dimension_numbers = #tpu.dot_dimension_numbers<[1], [0], [0], [1], [0, 0, 1, 1], [], []>} : vector<16x64xbf16>, vector<64x64xbf16>, vector<16x64xf32> -> vector<16x64xf32>
    %134 = arith.addf %6, %133 : vector<16x64xf32>
    %135 = vector.broadcast %18 : vector<1x64xf32> to vector<16x64xf32>
    %136 = arith.addf %134, %135 : vector<16x64xf32>
    %c1 = arith.constant 1 : index
    %c0_59 = arith.constant 0 : index
    %c0_60 = arith.constant 0 : index
    %137 = vector.load %arg4[%c1, %c0_59, %c0_60] : memref<6x1x64xf32, #tpu.memory_space<vmem>>, vector<1x1x64xf32>
    %138 = vector.shape_cast %137 : vector<1x1x64xf32> to vector<1x64xf32>
    %c1_61 = arith.constant 1 : index
    %c0_62 = arith.constant 0 : index
    %c0_63 = arith.constant 0 : index
    %139 = vector.load %arg5[%c1_61, %c0_62, %c0_63] : memref<6x1x64xf32, #tpu.memory_space<vmem>>, vector<1x1x64xf32>
    %140 = vector.shape_cast %139 : vector<1x1x64xf32> to vector<1x64xf32>
    %c1_64 = arith.constant 1 : index
    %c0_65 = arith.constant 0 : index
    %c0_66 = arith.constant 0 : index
    %141 = vector.load %arg8[%c1_64, %c0_65, %c0_66] : memref<6x64x192xbf16, #tpu.memory_space<vmem>>, vector<1x64x192xbf16>
    %142 = vector.shape_cast %141 : vector<1x64x192xbf16> to vector<64x192xbf16>
    %c1_67 = arith.constant 1 : index
    %c0_68 = arith.constant 0 : index
    %c0_69 = arith.constant 0 : index
    %143 = vector.load %arg9[%c1_67, %c0_68, %c0_69] : memref<6x1x192xf32, #tpu.memory_space<vmem>>, vector<1x1x192xf32>
    %144 = vector.shape_cast %143 : vector<1x1x192xf32> to vector<1x192xf32>
    %c1_70 = arith.constant 1 : index
    %c0_71 = arith.constant 0 : index
    %c0_72 = arith.constant 0 : index
    %145 = vector.load %arg10[%c1_70, %c0_71, %c0_72] : memref<6x64x64xbf16, #tpu.memory_space<vmem>>, vector<1x64x64xbf16>
    %146 = vector.shape_cast %145 : vector<1x64x64xbf16> to vector<64x64xbf16>
    %c1_73 = arith.constant 1 : index
    %c0_74 = arith.constant 0 : index
    %c0_75 = arith.constant 0 : index
    %147 = vector.load %arg11[%c1_73, %c0_74, %c0_75] : memref<6x1x64xf32, #tpu.memory_space<vmem>>, vector<1x1x64xf32>
    %148 = vector.shape_cast %147 : vector<1x1x64xf32> to vector<1x64xf32>
    %cst_76 = arith.constant dense<0.000000e+00> : vector<64xf32>
    %149 = vector.multi_reduction <add>, %136, %cst_76 [0] : vector<16x64xf32> to vector<64xf32>
    %150 = vector.shape_cast %149 : vector<64xf32> to vector<1x64xf32>
    %cst_77 = arith.constant 6.250000e-02 : f32
    %151 = vector.broadcast %cst_77 : f32 to vector<1x64xf32>
    %152 = arith.mulf %150, %151 : vector<1x64xf32>
    %c0_78 = arith.constant 0 : index
    %c0_79 = arith.constant 0 : index
    %153 = vector.load %arg6[%c0_78, %c0_79] : memref<64x32xf32, #tpu.memory_space<vmem>>, vector<64x32xf32>
    %cst_80 = arith.constant dense<0.000000e+00> : vector<1x32xf32>
    %154 = tpu.matmul %152, %153, %cst_80 {dimension_numbers = #tpu.dot_dimension_numbers<[1], [0], [0], [1], [0, 0, 1, 1], [], []>} : vector<1x64xf32>, vector<64x32xf32>, vector<1x32xf32> -> vector<1x32xf32>
    %c0_81 = arith.constant 0 : index
    %c0_82 = arith.constant 0 : index
    %155 = vector.load %arg7[%c0_81, %c0_82] : memref<32x64xf32, #tpu.memory_space<vmem>>, vector<32x64xf32>
    %cst_83 = arith.constant dense<0.000000e+00> : vector<1x64xf32>
    %156 = tpu.matmul %154, %155, %cst_83 {dimension_numbers = #tpu.dot_dimension_numbers<[1], [0], [0], [1], [0, 0, 1, 1], [], []>} : vector<1x32xf32>, vector<32x64xf32>, vector<1x64xf32> -> vector<1x64xf32>
    %157 = vector.broadcast %156 : vector<1x64xf32> to vector<16x64xf32>
    %158 = arith.subf %136, %157 : vector<16x64xf32>
    %159 = arith.mulf %158, %158 : vector<16x64xf32>
    %cst_84 = arith.constant dense<0.000000e+00> : vector<64xf32>
    %160 = vector.multi_reduction <add>, %159, %cst_84 [0] : vector<16x64xf32> to vector<64xf32>
    %161 = vector.shape_cast %160 : vector<64xf32> to vector<1x64xf32>
    %cst_85 = arith.constant 6.250000e-02 : f32
    %162 = vector.broadcast %cst_85 : f32 to vector<1x64xf32>
    %163 = arith.mulf %161, %162 : vector<1x64xf32>
    %c0_86 = arith.constant 0 : index
    %c0_87 = arith.constant 0 : index
    %164 = vector.load %arg6[%c0_86, %c0_87] : memref<64x32xf32, #tpu.memory_space<vmem>>, vector<64x32xf32>
    %cst_88 = arith.constant dense<0.000000e+00> : vector<1x32xf32>
    %165 = tpu.matmul %163, %164, %cst_88 {dimension_numbers = #tpu.dot_dimension_numbers<[1], [0], [0], [1], [0, 0, 1, 1], [], []>} : vector<1x64xf32>, vector<64x32xf32>, vector<1x32xf32> -> vector<1x32xf32>
    %c0_89 = arith.constant 0 : index
    %c0_90 = arith.constant 0 : index
    %166 = vector.load %arg7[%c0_89, %c0_90] : memref<32x64xf32, #tpu.memory_space<vmem>>, vector<32x64xf32>
    %cst_91 = arith.constant dense<0.000000e+00> : vector<1x64xf32>
    %167 = tpu.matmul %165, %166, %cst_91 {dimension_numbers = #tpu.dot_dimension_numbers<[1], [0], [0], [1], [0, 0, 1, 1], [], []>} : vector<1x32xf32>, vector<32x64xf32>, vector<1x64xf32> -> vector<1x64xf32>
    %cst_92 = arith.constant 9.99999974E-6 : f32
    %168 = vector.broadcast %cst_92 : f32 to vector<1x64xf32>
    %169 = arith.addf %167, %168 : vector<1x64xf32>
    %170 = math.rsqrt %169 : vector<1x64xf32>
    %171 = vector.broadcast %170 : vector<1x64xf32> to vector<16x64xf32>
    %172 = arith.mulf %158, %171 : vector<16x64xf32>
    %173 = vector.broadcast %138 : vector<1x64xf32> to vector<16x64xf32>
    %174 = arith.mulf %172, %173 : vector<16x64xf32>
    %175 = vector.broadcast %140 : vector<1x64xf32> to vector<16x64xf32>
    %176 = arith.addf %174, %175 : vector<16x64xf32>
    %177 = arith.truncf %176 : vector<16x64xf32> to vector<16x64xbf16>
    %cst_93 = arith.constant dense<0.000000e+00> : vector<16x192xf32>
    %178 = tpu.matmul %177, %142, %cst_93 {dimension_numbers = #tpu.dot_dimension_numbers<[1], [0], [0], [1], [0, 0, 1, 1], [], []>} : vector<16x64xbf16>, vector<64x192xbf16>, vector<16x192xf32> -> vector<16x192xf32>
    %179 = vector.broadcast %144 : vector<1x192xf32> to vector<16x192xf32>
    %180 = arith.addf %178, %179 : vector<16x192xf32>
    %181 = vector.extract_strided_slice %180 {offsets = [0, 0], sizes = [16, 16], strides = [1, 1]} : vector<16x192xf32> to vector<16x16xf32>
    %182 = arith.truncf %181 : vector<16x16xf32> to vector<16x16xbf16>
    %183 = vector.extract_strided_slice %180 {offsets = [0, 64], sizes = [16, 16], strides = [1, 1]} : vector<16x192xf32> to vector<16x16xf32>
    %184 = arith.truncf %183 : vector<16x16xf32> to vector<16x16xbf16>
    %185 = vector.extract_strided_slice %180 {offsets = [0, 128], sizes = [16, 16], strides = [1, 1]} : vector<16x192xf32> to vector<16x16xf32>
    %186 = arith.truncf %185 : vector<16x16xf32> to vector<16x16xbf16>
    %187 = tpu.transpose %184, [1, 0] : vector<16x16xbf16> -> vector<16x16xbf16>
    %cst_94 = arith.constant dense<0.000000e+00> : vector<16x16xf32>
    %188 = tpu.matmul %182, %187, %cst_94 {dimension_numbers = #tpu.dot_dimension_numbers<[1], [0], [0], [1], [0, 0, 1, 1], [], []>} : vector<16x16xbf16>, vector<16x16xbf16>, vector<16x16xf32> -> vector<16x16xf32>
    %cst_95 = arith.constant dense<0xFF800000> : vector<16xf32>
    %189 = vector.multi_reduction <maximumf>, %188, %cst_95 [1] : vector<16x16xf32> to vector<16xf32>
    %190 = vector.shape_cast %189 : vector<16xf32> to vector<16x1xf32>
    %191 = vector.broadcast %190 : vector<16x1xf32> to vector<16x16xf32>
    %192 = arith.subf %188, %191 : vector<16x16xf32>
    %193 = math.exp %192 : vector<16x16xf32>
    %cst_96 = arith.constant dense<0.000000e+00> : vector<16xf32>
    %194 = vector.multi_reduction <add>, %193, %cst_96 [1] : vector<16x16xf32> to vector<16xf32>
    %195 = vector.shape_cast %194 : vector<16xf32> to vector<16x1xf32>
    %196 = tpu.reciprocal %195 {approx = true} : vector<16x1xf32> -> vector<16x1xf32>
    %197 = vector.broadcast %196 : vector<16x1xf32> to vector<16x16xf32>
    %198 = arith.mulf %193, %197 : vector<16x16xf32>
    %199 = arith.truncf %198 : vector<16x16xf32> to vector<16x16xbf16>
    %cst_97 = arith.constant dense<0.000000e+00> : vector<16x16xf32>
    %200 = tpu.matmul %199, %186, %cst_97 {dimension_numbers = #tpu.dot_dimension_numbers<[1], [0], [0], [1], [0, 0, 1, 1], [], []>} : vector<16x16xbf16>, vector<16x16xbf16>, vector<16x16xf32> -> vector<16x16xf32>
    %201 = vector.extract_strided_slice %180 {offsets = [0, 16], sizes = [16, 16], strides = [1, 1]} : vector<16x192xf32> to vector<16x16xf32>
    %202 = arith.truncf %201 : vector<16x16xf32> to vector<16x16xbf16>
    %203 = vector.extract_strided_slice %180 {offsets = [0, 80], sizes = [16, 16], strides = [1, 1]} : vector<16x192xf32> to vector<16x16xf32>
    %204 = arith.truncf %203 : vector<16x16xf32> to vector<16x16xbf16>
    %205 = vector.extract_strided_slice %180 {offsets = [0, 144], sizes = [16, 16], strides = [1, 1]} : vector<16x192xf32> to vector<16x16xf32>
    %206 = arith.truncf %205 : vector<16x16xf32> to vector<16x16xbf16>
    %207 = tpu.transpose %204, [1, 0] : vector<16x16xbf16> -> vector<16x16xbf16>
    %cst_98 = arith.constant dense<0.000000e+00> : vector<16x16xf32>
    %208 = tpu.matmul %202, %207, %cst_98 {dimension_numbers = #tpu.dot_dimension_numbers<[1], [0], [0], [1], [0, 0, 1, 1], [], []>} : vector<16x16xbf16>, vector<16x16xbf16>, vector<16x16xf32> -> vector<16x16xf32>
    %cst_99 = arith.constant dense<0xFF800000> : vector<16xf32>
    %209 = vector.multi_reduction <maximumf>, %208, %cst_99 [1] : vector<16x16xf32> to vector<16xf32>
    %210 = vector.shape_cast %209 : vector<16xf32> to vector<16x1xf32>
    %211 = vector.broadcast %210 : vector<16x1xf32> to vector<16x16xf32>
    %212 = arith.subf %208, %211 : vector<16x16xf32>
    %213 = math.exp %212 : vector<16x16xf32>
    %cst_100 = arith.constant dense<0.000000e+00> : vector<16xf32>
    %214 = vector.multi_reduction <add>, %213, %cst_100 [1] : vector<16x16xf32> to vector<16xf32>
    %215 = vector.shape_cast %214 : vector<16xf32> to vector<16x1xf32>
    %216 = tpu.reciprocal %215 {approx = true} : vector<16x1xf32> -> vector<16x1xf32>
    %217 = vector.broadcast %216 : vector<16x1xf32> to vector<16x16xf32>
    %218 = arith.mulf %213, %217 : vector<16x16xf32>
    %219 = arith.truncf %218 : vector<16x16xf32> to vector<16x16xbf16>
    %cst_101 = arith.constant dense<0.000000e+00> : vector<16x16xf32>
    %220 = tpu.matmul %219, %206, %cst_101 {dimension_numbers = #tpu.dot_dimension_numbers<[1], [0], [0], [1], [0, 0, 1, 1], [], []>} : vector<16x16xbf16>, vector<16x16xbf16>, vector<16x16xf32> -> vector<16x16xf32>
    %221 = vector.extract_strided_slice %180 {offsets = [0, 32], sizes = [16, 16], strides = [1, 1]} : vector<16x192xf32> to vector<16x16xf32>
    %222 = arith.truncf %221 : vector<16x16xf32> to vector<16x16xbf16>
    %223 = vector.extract_strided_slice %180 {offsets = [0, 96], sizes = [16, 16], strides = [1, 1]} : vector<16x192xf32> to vector<16x16xf32>
    %224 = arith.truncf %223 : vector<16x16xf32> to vector<16x16xbf16>
    %225 = vector.extract_strided_slice %180 {offsets = [0, 160], sizes = [16, 16], strides = [1, 1]} : vector<16x192xf32> to vector<16x16xf32>
    %226 = arith.truncf %225 : vector<16x16xf32> to vector<16x16xbf16>
    %227 = tpu.transpose %224, [1, 0] : vector<16x16xbf16> -> vector<16x16xbf16>
    %cst_102 = arith.constant dense<0.000000e+00> : vector<16x16xf32>
    %228 = tpu.matmul %222, %227, %cst_102 {dimension_numbers = #tpu.dot_dimension_numbers<[1], [0], [0], [1], [0, 0, 1, 1], [], []>} : vector<16x16xbf16>, vector<16x16xbf16>, vector<16x16xf32> -> vector<16x16xf32>
    %cst_103 = arith.constant dense<0xFF800000> : vector<16xf32>
    %229 = vector.multi_reduction <maximumf>, %228, %cst_103 [1] : vector<16x16xf32> to vector<16xf32>
    %230 = vector.shape_cast %229 : vector<16xf32> to vector<16x1xf32>
    %231 = vector.broadcast %230 : vector<16x1xf32> to vector<16x16xf32>
    %232 = arith.subf %228, %231 : vector<16x16xf32>
    %233 = math.exp %232 : vector<16x16xf32>
    %cst_104 = arith.constant dense<0.000000e+00> : vector<16xf32>
    %234 = vector.multi_reduction <add>, %233, %cst_104 [1] : vector<16x16xf32> to vector<16xf32>
    %235 = vector.shape_cast %234 : vector<16xf32> to vector<16x1xf32>
    %236 = tpu.reciprocal %235 {approx = true} : vector<16x1xf32> -> vector<16x1xf32>
    %237 = vector.broadcast %236 : vector<16x1xf32> to vector<16x16xf32>
    %238 = arith.mulf %233, %237 : vector<16x16xf32>
    %239 = arith.truncf %238 : vector<16x16xf32> to vector<16x16xbf16>
    %cst_105 = arith.constant dense<0.000000e+00> : vector<16x16xf32>
    %240 = tpu.matmul %239, %226, %cst_105 {dimension_numbers = #tpu.dot_dimension_numbers<[1], [0], [0], [1], [0, 0, 1, 1], [], []>} : vector<16x16xbf16>, vector<16x16xbf16>, vector<16x16xf32> -> vector<16x16xf32>
    %241 = vector.extract_strided_slice %180 {offsets = [0, 48], sizes = [16, 16], strides = [1, 1]} : vector<16x192xf32> to vector<16x16xf32>
    %242 = arith.truncf %241 : vector<16x16xf32> to vector<16x16xbf16>
    %243 = vector.extract_strided_slice %180 {offsets = [0, 112], sizes = [16, 16], strides = [1, 1]} : vector<16x192xf32> to vector<16x16xf32>
    %244 = arith.truncf %243 : vector<16x16xf32> to vector<16x16xbf16>
    %245 = vector.extract_strided_slice %180 {offsets = [0, 176], sizes = [16, 16], strides = [1, 1]} : vector<16x192xf32> to vector<16x16xf32>
    %246 = arith.truncf %245 : vector<16x16xf32> to vector<16x16xbf16>
    %247 = tpu.transpose %244, [1, 0] : vector<16x16xbf16> -> vector<16x16xbf16>
    %cst_106 = arith.constant dense<0.000000e+00> : vector<16x16xf32>
    %248 = tpu.matmul %242, %247, %cst_106 {dimension_numbers = #tpu.dot_dimension_numbers<[1], [0], [0], [1], [0, 0, 1, 1], [], []>} : vector<16x16xbf16>, vector<16x16xbf16>, vector<16x16xf32> -> vector<16x16xf32>
    %cst_107 = arith.constant dense<0xFF800000> : vector<16xf32>
    %249 = vector.multi_reduction <maximumf>, %248, %cst_107 [1] : vector<16x16xf32> to vector<16xf32>
    %250 = vector.shape_cast %249 : vector<16xf32> to vector<16x1xf32>
    %251 = vector.broadcast %250 : vector<16x1xf32> to vector<16x16xf32>
    %252 = arith.subf %248, %251 : vector<16x16xf32>
    %253 = math.exp %252 : vector<16x16xf32>
    %cst_108 = arith.constant dense<0.000000e+00> : vector<16xf32>
    %254 = vector.multi_reduction <add>, %253, %cst_108 [1] : vector<16x16xf32> to vector<16xf32>
    %255 = vector.shape_cast %254 : vector<16xf32> to vector<16x1xf32>
    %256 = tpu.reciprocal %255 {approx = true} : vector<16x1xf32> -> vector<16x1xf32>
    %257 = vector.broadcast %256 : vector<16x1xf32> to vector<16x16xf32>
    %258 = arith.mulf %253, %257 : vector<16x16xf32>
    %259 = arith.truncf %258 : vector<16x16xf32> to vector<16x16xbf16>
    %cst_109 = arith.constant dense<0.000000e+00> : vector<16x16xf32>
    %260 = tpu.matmul %259, %246, %cst_109 {dimension_numbers = #tpu.dot_dimension_numbers<[1], [0], [0], [1], [0, 0, 1, 1], [], []>} : vector<16x16xbf16>, vector<16x16xbf16>, vector<16x16xf32> -> vector<16x16xf32>
    %261 = tpu.concatenate %200, %220, %240, %260 in 1 : vector<16x16xf32>, vector<16x16xf32>, vector<16x16xf32>, vector<16x16xf32> -> vector<16x64xf32>
    %262 = arith.truncf %261 : vector<16x64xf32> to vector<16x64xbf16>
    %cst_110 = arith.constant dense<0.000000e+00> : vector<16x64xf32>
    %263 = tpu.matmul %262, %146, %cst_110 {dimension_numbers = #tpu.dot_dimension_numbers<[1], [0], [0], [1], [0, 0, 1, 1], [], []>} : vector<16x64xbf16>, vector<64x64xbf16>, vector<16x64xf32> -> vector<16x64xf32>
    %264 = arith.addf %136, %263 : vector<16x64xf32>
    %265 = vector.broadcast %148 : vector<1x64xf32> to vector<16x64xf32>
    %266 = arith.addf %264, %265 : vector<16x64xf32>
    %c2 = arith.constant 2 : index
    %c0_111 = arith.constant 0 : index
    %c0_112 = arith.constant 0 : index
    %267 = vector.load %arg4[%c2, %c0_111, %c0_112] : memref<6x1x64xf32, #tpu.memory_space<vmem>>, vector<1x1x64xf32>
    %268 = vector.shape_cast %267 : vector<1x1x64xf32> to vector<1x64xf32>
    %c2_113 = arith.constant 2 : index
    %c0_114 = arith.constant 0 : index
    %c0_115 = arith.constant 0 : index
    %269 = vector.load %arg5[%c2_113, %c0_114, %c0_115] : memref<6x1x64xf32, #tpu.memory_space<vmem>>, vector<1x1x64xf32>
    %270 = vector.shape_cast %269 : vector<1x1x64xf32> to vector<1x64xf32>
    %c2_116 = arith.constant 2 : index
    %c0_117 = arith.constant 0 : index
    %c0_118 = arith.constant 0 : index
    %271 = vector.load %arg8[%c2_116, %c0_117, %c0_118] : memref<6x64x192xbf16, #tpu.memory_space<vmem>>, vector<1x64x192xbf16>
    %272 = vector.shape_cast %271 : vector<1x64x192xbf16> to vector<64x192xbf16>
    %c2_119 = arith.constant 2 : index
    %c0_120 = arith.constant 0 : index
    %c0_121 = arith.constant 0 : index
    %273 = vector.load %arg9[%c2_119, %c0_120, %c0_121] : memref<6x1x192xf32, #tpu.memory_space<vmem>>, vector<1x1x192xf32>
    %274 = vector.shape_cast %273 : vector<1x1x192xf32> to vector<1x192xf32>
    %c2_122 = arith.constant 2 : index
    %c0_123 = arith.constant 0 : index
    %c0_124 = arith.constant 0 : index
    %275 = vector.load %arg10[%c2_122, %c0_123, %c0_124] : memref<6x64x64xbf16, #tpu.memory_space<vmem>>, vector<1x64x64xbf16>
    %276 = vector.shape_cast %275 : vector<1x64x64xbf16> to vector<64x64xbf16>
    %c2_125 = arith.constant 2 : index
    %c0_126 = arith.constant 0 : index
    %c0_127 = arith.constant 0 : index
    %277 = vector.load %arg11[%c2_125, %c0_126, %c0_127] : memref<6x1x64xf32, #tpu.memory_space<vmem>>, vector<1x1x64xf32>
    %278 = vector.shape_cast %277 : vector<1x1x64xf32> to vector<1x64xf32>
    %cst_128 = arith.constant dense<0.000000e+00> : vector<64xf32>
    %279 = vector.multi_reduction <add>, %266, %cst_128 [0] : vector<16x64xf32> to vector<64xf32>
    %280 = vector.shape_cast %279 : vector<64xf32> to vector<1x64xf32>
    %cst_129 = arith.constant 6.250000e-02 : f32
    %281 = vector.broadcast %cst_129 : f32 to vector<1x64xf32>
    %282 = arith.mulf %280, %281 : vector<1x64xf32>
    %c0_130 = arith.constant 0 : index
    %c0_131 = arith.constant 0 : index
    %283 = vector.load %arg6[%c0_130, %c0_131] : memref<64x32xf32, #tpu.memory_space<vmem>>, vector<64x32xf32>
    %cst_132 = arith.constant dense<0.000000e+00> : vector<1x32xf32>
    %284 = tpu.matmul %282, %283, %cst_132 {dimension_numbers = #tpu.dot_dimension_numbers<[1], [0], [0], [1], [0, 0, 1, 1], [], []>} : vector<1x64xf32>, vector<64x32xf32>, vector<1x32xf32> -> vector<1x32xf32>
    %c0_133 = arith.constant 0 : index
    %c0_134 = arith.constant 0 : index
    %285 = vector.load %arg7[%c0_133, %c0_134] : memref<32x64xf32, #tpu.memory_space<vmem>>, vector<32x64xf32>
    %cst_135 = arith.constant dense<0.000000e+00> : vector<1x64xf32>
    %286 = tpu.matmul %284, %285, %cst_135 {dimension_numbers = #tpu.dot_dimension_numbers<[1], [0], [0], [1], [0, 0, 1, 1], [], []>} : vector<1x32xf32>, vector<32x64xf32>, vector<1x64xf32> -> vector<1x64xf32>
    %287 = vector.broadcast %286 : vector<1x64xf32> to vector<16x64xf32>
    %288 = arith.subf %266, %287 : vector<16x64xf32>
    %289 = arith.mulf %288, %288 : vector<16x64xf32>
    %cst_136 = arith.constant dense<0.000000e+00> : vector<64xf32>
    %290 = vector.multi_reduction <add>, %289, %cst_136 [0] : vector<16x64xf32> to vector<64xf32>
    %291 = vector.shape_cast %290 : vector<64xf32> to vector<1x64xf32>
    %cst_137 = arith.constant 6.250000e-02 : f32
    %292 = vector.broadcast %cst_137 : f32 to vector<1x64xf32>
    %293 = arith.mulf %291, %292 : vector<1x64xf32>
    %c0_138 = arith.constant 0 : index
    %c0_139 = arith.constant 0 : index
    %294 = vector.load %arg6[%c0_138, %c0_139] : memref<64x32xf32, #tpu.memory_space<vmem>>, vector<64x32xf32>
    %cst_140 = arith.constant dense<0.000000e+00> : vector<1x32xf32>
    %295 = tpu.matmul %293, %294, %cst_140 {dimension_numbers = #tpu.dot_dimension_numbers<[1], [0], [0], [1], [0, 0, 1, 1], [], []>} : vector<1x64xf32>, vector<64x32xf32>, vector<1x32xf32> -> vector<1x32xf32>
    %c0_141 = arith.constant 0 : index
    %c0_142 = arith.constant 0 : index
    %296 = vector.load %arg7[%c0_141, %c0_142] : memref<32x64xf32, #tpu.memory_space<vmem>>, vector<32x64xf32>
    %cst_143 = arith.constant dense<0.000000e+00> : vector<1x64xf32>
    %297 = tpu.matmul %295, %296, %cst_143 {dimension_numbers = #tpu.dot_dimension_numbers<[1], [0], [0], [1], [0, 0, 1, 1], [], []>} : vector<1x32xf32>, vector<32x64xf32>, vector<1x64xf32> -> vector<1x64xf32>
    %cst_144 = arith.constant 9.99999974E-6 : f32
    %298 = vector.broadcast %cst_144 : f32 to vector<1x64xf32>
    %299 = arith.addf %297, %298 : vector<1x64xf32>
    %300 = math.rsqrt %299 : vector<1x64xf32>
    %301 = vector.broadcast %300 : vector<1x64xf32> to vector<16x64xf32>
    %302 = arith.mulf %288, %301 : vector<16x64xf32>
    %303 = vector.broadcast %268 : vector<1x64xf32> to vector<16x64xf32>
    %304 = arith.mulf %302, %303 : vector<16x64xf32>
    %305 = vector.broadcast %270 : vector<1x64xf32> to vector<16x64xf32>
    %306 = arith.addf %304, %305 : vector<16x64xf32>
    %307 = arith.truncf %306 : vector<16x64xf32> to vector<16x64xbf16>
    %cst_145 = arith.constant dense<0.000000e+00> : vector<16x192xf32>
    %308 = tpu.matmul %307, %272, %cst_145 {dimension_numbers = #tpu.dot_dimension_numbers<[1], [0], [0], [1], [0, 0, 1, 1], [], []>} : vector<16x64xbf16>, vector<64x192xbf16>, vector<16x192xf32> -> vector<16x192xf32>
    %309 = vector.broadcast %274 : vector<1x192xf32> to vector<16x192xf32>
    %310 = arith.addf %308, %309 : vector<16x192xf32>
    %311 = vector.extract_strided_slice %310 {offsets = [0, 0], sizes = [16, 16], strides = [1, 1]} : vector<16x192xf32> to vector<16x16xf32>
    %312 = arith.truncf %311 : vector<16x16xf32> to vector<16x16xbf16>
    %313 = vector.extract_strided_slice %310 {offsets = [0, 64], sizes = [16, 16], strides = [1, 1]} : vector<16x192xf32> to vector<16x16xf32>
    %314 = arith.truncf %313 : vector<16x16xf32> to vector<16x16xbf16>
    %315 = vector.extract_strided_slice %310 {offsets = [0, 128], sizes = [16, 16], strides = [1, 1]} : vector<16x192xf32> to vector<16x16xf32>
    %316 = arith.truncf %315 : vector<16x16xf32> to vector<16x16xbf16>
    %317 = tpu.transpose %314, [1, 0] : vector<16x16xbf16> -> vector<16x16xbf16>
    %cst_146 = arith.constant dense<0.000000e+00> : vector<16x16xf32>
    %318 = tpu.matmul %312, %317, %cst_146 {dimension_numbers = #tpu.dot_dimension_numbers<[1], [0], [0], [1], [0, 0, 1, 1], [], []>} : vector<16x16xbf16>, vector<16x16xbf16>, vector<16x16xf32> -> vector<16x16xf32>
    %cst_147 = arith.constant dense<0xFF800000> : vector<16xf32>
    %319 = vector.multi_reduction <maximumf>, %318, %cst_147 [1] : vector<16x16xf32> to vector<16xf32>
    %320 = vector.shape_cast %319 : vector<16xf32> to vector<16x1xf32>
    %321 = vector.broadcast %320 : vector<16x1xf32> to vector<16x16xf32>
    %322 = arith.subf %318, %321 : vector<16x16xf32>
    %323 = math.exp %322 : vector<16x16xf32>
    %cst_148 = arith.constant dense<0.000000e+00> : vector<16xf32>
    %324 = vector.multi_reduction <add>, %323, %cst_148 [1] : vector<16x16xf32> to vector<16xf32>
    %325 = vector.shape_cast %324 : vector<16xf32> to vector<16x1xf32>
    %326 = tpu.reciprocal %325 {approx = true} : vector<16x1xf32> -> vector<16x1xf32>
    %327 = vector.broadcast %326 : vector<16x1xf32> to vector<16x16xf32>
    %328 = arith.mulf %323, %327 : vector<16x16xf32>
    %329 = arith.truncf %328 : vector<16x16xf32> to vector<16x16xbf16>
    %cst_149 = arith.constant dense<0.000000e+00> : vector<16x16xf32>
    %330 = tpu.matmul %329, %316, %cst_149 {dimension_numbers = #tpu.dot_dimension_numbers<[1], [0], [0], [1], [0, 0, 1, 1], [], []>} : vector<16x16xbf16>, vector<16x16xbf16>, vector<16x16xf32> -> vector<16x16xf32>
    %331 = vector.extract_strided_slice %310 {offsets = [0, 16], sizes = [16, 16], strides = [1, 1]} : vector<16x192xf32> to vector<16x16xf32>
    %332 = arith.truncf %331 : vector<16x16xf32> to vector<16x16xbf16>
    %333 = vector.extract_strided_slice %310 {offsets = [0, 80], sizes = [16, 16], strides = [1, 1]} : vector<16x192xf32> to vector<16x16xf32>
    %334 = arith.truncf %333 : vector<16x16xf32> to vector<16x16xbf16>
    %335 = vector.extract_strided_slice %310 {offsets = [0, 144], sizes = [16, 16], strides = [1, 1]} : vector<16x192xf32> to vector<16x16xf32>
    %336 = arith.truncf %335 : vector<16x16xf32> to vector<16x16xbf16>
    %337 = tpu.transpose %334, [1, 0] : vector<16x16xbf16> -> vector<16x16xbf16>
    %cst_150 = arith.constant dense<0.000000e+00> : vector<16x16xf32>
    %338 = tpu.matmul %332, %337, %cst_150 {dimension_numbers = #tpu.dot_dimension_numbers<[1], [0], [0], [1], [0, 0, 1, 1], [], []>} : vector<16x16xbf16>, vector<16x16xbf16>, vector<16x16xf32> -> vector<16x16xf32>
    %cst_151 = arith.constant dense<0xFF800000> : vector<16xf32>
    %339 = vector.multi_reduction <maximumf>, %338, %cst_151 [1] : vector<16x16xf32> to vector<16xf32>
    %340 = vector.shape_cast %339 : vector<16xf32> to vector<16x1xf32>
    %341 = vector.broadcast %340 : vector<16x1xf32> to vector<16x16xf32>
    %342 = arith.subf %338, %341 : vector<16x16xf32>
    %343 = math.exp %342 : vector<16x16xf32>
    %cst_152 = arith.constant dense<0.000000e+00> : vector<16xf32>
    %344 = vector.multi_reduction <add>, %343, %cst_152 [1] : vector<16x16xf32> to vector<16xf32>
    %345 = vector.shape_cast %344 : vector<16xf32> to vector<16x1xf32>
    %346 = tpu.reciprocal %345 {approx = true} : vector<16x1xf32> -> vector<16x1xf32>
    %347 = vector.broadcast %346 : vector<16x1xf32> to vector<16x16xf32>
    %348 = arith.mulf %343, %347 : vector<16x16xf32>
    %349 = arith.truncf %348 : vector<16x16xf32> to vector<16x16xbf16>
    %cst_153 = arith.constant dense<0.000000e+00> : vector<16x16xf32>
    %350 = tpu.matmul %349, %336, %cst_153 {dimension_numbers = #tpu.dot_dimension_numbers<[1], [0], [0], [1], [0, 0, 1, 1], [], []>} : vector<16x16xbf16>, vector<16x16xbf16>, vector<16x16xf32> -> vector<16x16xf32>
    %351 = vector.extract_strided_slice %310 {offsets = [0, 32], sizes = [16, 16], strides = [1, 1]} : vector<16x192xf32> to vector<16x16xf32>
    %352 = arith.truncf %351 : vector<16x16xf32> to vector<16x16xbf16>
    %353 = vector.extract_strided_slice %310 {offsets = [0, 96], sizes = [16, 16], strides = [1, 1]} : vector<16x192xf32> to vector<16x16xf32>
    %354 = arith.truncf %353 : vector<16x16xf32> to vector<16x16xbf16>
    %355 = vector.extract_strided_slice %310 {offsets = [0, 160], sizes = [16, 16], strides = [1, 1]} : vector<16x192xf32> to vector<16x16xf32>
    %356 = arith.truncf %355 : vector<16x16xf32> to vector<16x16xbf16>
    %357 = tpu.transpose %354, [1, 0] : vector<16x16xbf16> -> vector<16x16xbf16>
    %cst_154 = arith.constant dense<0.000000e+00> : vector<16x16xf32>
    %358 = tpu.matmul %352, %357, %cst_154 {dimension_numbers = #tpu.dot_dimension_numbers<[1], [0], [0], [1], [0, 0, 1, 1], [], []>} : vector<16x16xbf16>, vector<16x16xbf16>, vector<16x16xf32> -> vector<16x16xf32>
    %cst_155 = arith.constant dense<0xFF800000> : vector<16xf32>
    %359 = vector.multi_reduction <maximumf>, %358, %cst_155 [1] : vector<16x16xf32> to vector<16xf32>
    %360 = vector.shape_cast %359 : vector<16xf32> to vector<16x1xf32>
    %361 = vector.broadcast %360 : vector<16x1xf32> to vector<16x16xf32>
    %362 = arith.subf %358, %361 : vector<16x16xf32>
    %363 = math.exp %362 : vector<16x16xf32>
    %cst_156 = arith.constant dense<0.000000e+00> : vector<16xf32>
    %364 = vector.multi_reduction <add>, %363, %cst_156 [1] : vector<16x16xf32> to vector<16xf32>
    %365 = vector.shape_cast %364 : vector<16xf32> to vector<16x1xf32>
    %366 = tpu.reciprocal %365 {approx = true} : vector<16x1xf32> -> vector<16x1xf32>
    %367 = vector.broadcast %366 : vector<16x1xf32> to vector<16x16xf32>
    %368 = arith.mulf %363, %367 : vector<16x16xf32>
    %369 = arith.truncf %368 : vector<16x16xf32> to vector<16x16xbf16>
    %cst_157 = arith.constant dense<0.000000e+00> : vector<16x16xf32>
    %370 = tpu.matmul %369, %356, %cst_157 {dimension_numbers = #tpu.dot_dimension_numbers<[1], [0], [0], [1], [0, 0, 1, 1], [], []>} : vector<16x16xbf16>, vector<16x16xbf16>, vector<16x16xf32> -> vector<16x16xf32>
    %371 = vector.extract_strided_slice %310 {offsets = [0, 48], sizes = [16, 16], strides = [1, 1]} : vector<16x192xf32> to vector<16x16xf32>
    %372 = arith.truncf %371 : vector<16x16xf32> to vector<16x16xbf16>
    %373 = vector.extract_strided_slice %310 {offsets = [0, 112], sizes = [16, 16], strides = [1, 1]} : vector<16x192xf32> to vector<16x16xf32>
    %374 = arith.truncf %373 : vector<16x16xf32> to vector<16x16xbf16>
    %375 = vector.extract_strided_slice %310 {offsets = [0, 176], sizes = [16, 16], strides = [1, 1]} : vector<16x192xf32> to vector<16x16xf32>
    %376 = arith.truncf %375 : vector<16x16xf32> to vector<16x16xbf16>
    %377 = tpu.transpose %374, [1, 0] : vector<16x16xbf16> -> vector<16x16xbf16>
    %cst_158 = arith.constant dense<0.000000e+00> : vector<16x16xf32>
    %378 = tpu.matmul %372, %377, %cst_158 {dimension_numbers = #tpu.dot_dimension_numbers<[1], [0], [0], [1], [0, 0, 1, 1], [], []>} : vector<16x16xbf16>, vector<16x16xbf16>, vector<16x16xf32> -> vector<16x16xf32>
    %cst_159 = arith.constant dense<0xFF800000> : vector<16xf32>
    %379 = vector.multi_reduction <maximumf>, %378, %cst_159 [1] : vector<16x16xf32> to vector<16xf32>
    %380 = vector.shape_cast %379 : vector<16xf32> to vector<16x1xf32>
    %381 = vector.broadcast %380 : vector<16x1xf32> to vector<16x16xf32>
    %382 = arith.subf %378, %381 : vector<16x16xf32>
    %383 = math.exp %382 : vector<16x16xf32>
    %cst_160 = arith.constant dense<0.000000e+00> : vector<16xf32>
    %384 = vector.multi_reduction <add>, %383, %cst_160 [1] : vector<16x16xf32> to vector<16xf32>
    %385 = vector.shape_cast %384 : vector<16xf32> to vector<16x1xf32>
    %386 = tpu.reciprocal %385 {approx = true} : vector<16x1xf32> -> vector<16x1xf32>
    %387 = vector.broadcast %386 : vector<16x1xf32> to vector<16x16xf32>
    %388 = arith.mulf %383, %387 : vector<16x16xf32>
    %389 = arith.truncf %388 : vector<16x16xf32> to vector<16x16xbf16>
    %cst_161 = arith.constant dense<0.000000e+00> : vector<16x16xf32>
    %390 = tpu.matmul %389, %376, %cst_161 {dimension_numbers = #tpu.dot_dimension_numbers<[1], [0], [0], [1], [0, 0, 1, 1], [], []>} : vector<16x16xbf16>, vector<16x16xbf16>, vector<16x16xf32> -> vector<16x16xf32>
    %391 = tpu.concatenate %330, %350, %370, %390 in 1 : vector<16x16xf32>, vector<16x16xf32>, vector<16x16xf32>, vector<16x16xf32> -> vector<16x64xf32>
    %392 = arith.truncf %391 : vector<16x64xf32> to vector<16x64xbf16>
    %cst_162 = arith.constant dense<0.000000e+00> : vector<16x64xf32>
    %393 = tpu.matmul %392, %276, %cst_162 {dimension_numbers = #tpu.dot_dimension_numbers<[1], [0], [0], [1], [0, 0, 1, 1], [], []>} : vector<16x64xbf16>, vector<64x64xbf16>, vector<16x64xf32> -> vector<16x64xf32>
    %394 = arith.addf %266, %393 : vector<16x64xf32>
    %395 = vector.broadcast %278 : vector<1x64xf32> to vector<16x64xf32>
    %396 = arith.addf %394, %395 : vector<16x64xf32>
    %c3 = arith.constant 3 : index
    %c0_163 = arith.constant 0 : index
    %c0_164 = arith.constant 0 : index
    %397 = vector.load %arg4[%c3, %c0_163, %c0_164] : memref<6x1x64xf32, #tpu.memory_space<vmem>>, vector<1x1x64xf32>
    %398 = vector.shape_cast %397 : vector<1x1x64xf32> to vector<1x64xf32>
    %c3_165 = arith.constant 3 : index
    %c0_166 = arith.constant 0 : index
    %c0_167 = arith.constant 0 : index
    %399 = vector.load %arg5[%c3_165, %c0_166, %c0_167] : memref<6x1x64xf32, #tpu.memory_space<vmem>>, vector<1x1x64xf32>
    %400 = vector.shape_cast %399 : vector<1x1x64xf32> to vector<1x64xf32>
    %c3_168 = arith.constant 3 : index
    %c0_169 = arith.constant 0 : index
    %c0_170 = arith.constant 0 : index
    %401 = vector.load %arg8[%c3_168, %c0_169, %c0_170] : memref<6x64x192xbf16, #tpu.memory_space<vmem>>, vector<1x64x192xbf16>
    %402 = vector.shape_cast %401 : vector<1x64x192xbf16> to vector<64x192xbf16>
    %c3_171 = arith.constant 3 : index
    %c0_172 = arith.constant 0 : index
    %c0_173 = arith.constant 0 : index
    %403 = vector.load %arg9[%c3_171, %c0_172, %c0_173] : memref<6x1x192xf32, #tpu.memory_space<vmem>>, vector<1x1x192xf32>
    %404 = vector.shape_cast %403 : vector<1x1x192xf32> to vector<1x192xf32>
    %c3_174 = arith.constant 3 : index
    %c0_175 = arith.constant 0 : index
    %c0_176 = arith.constant 0 : index
    %405 = vector.load %arg10[%c3_174, %c0_175, %c0_176] : memref<6x64x64xbf16, #tpu.memory_space<vmem>>, vector<1x64x64xbf16>
    %406 = vector.shape_cast %405 : vector<1x64x64xbf16> to vector<64x64xbf16>
    %c3_177 = arith.constant 3 : index
    %c0_178 = arith.constant 0 : index
    %c0_179 = arith.constant 0 : index
    %407 = vector.load %arg11[%c3_177, %c0_178, %c0_179] : memref<6x1x64xf32, #tpu.memory_space<vmem>>, vector<1x1x64xf32>
    %408 = vector.shape_cast %407 : vector<1x1x64xf32> to vector<1x64xf32>
    %cst_180 = arith.constant dense<0.000000e+00> : vector<64xf32>
    %409 = vector.multi_reduction <add>, %396, %cst_180 [0] : vector<16x64xf32> to vector<64xf32>
    %410 = vector.shape_cast %409 : vector<64xf32> to vector<1x64xf32>
    %cst_181 = arith.constant 6.250000e-02 : f32
    %411 = vector.broadcast %cst_181 : f32 to vector<1x64xf32>
    %412 = arith.mulf %410, %411 : vector<1x64xf32>
    %c0_182 = arith.constant 0 : index
    %c0_183 = arith.constant 0 : index
    %413 = vector.load %arg6[%c0_182, %c0_183] : memref<64x32xf32, #tpu.memory_space<vmem>>, vector<64x32xf32>
    %cst_184 = arith.constant dense<0.000000e+00> : vector<1x32xf32>
    %414 = tpu.matmul %412, %413, %cst_184 {dimension_numbers = #tpu.dot_dimension_numbers<[1], [0], [0], [1], [0, 0, 1, 1], [], []>} : vector<1x64xf32>, vector<64x32xf32>, vector<1x32xf32> -> vector<1x32xf32>
    %c0_185 = arith.constant 0 : index
    %c0_186 = arith.constant 0 : index
    %415 = vector.load %arg7[%c0_185, %c0_186] : memref<32x64xf32, #tpu.memory_space<vmem>>, vector<32x64xf32>
    %cst_187 = arith.constant dense<0.000000e+00> : vector<1x64xf32>
    %416 = tpu.matmul %414, %415, %cst_187 {dimension_numbers = #tpu.dot_dimension_numbers<[1], [0], [0], [1], [0, 0, 1, 1], [], []>} : vector<1x32xf32>, vector<32x64xf32>, vector<1x64xf32> -> vector<1x64xf32>
    %417 = vector.broadcast %416 : vector<1x64xf32> to vector<16x64xf32>
    %418 = arith.subf %396, %417 : vector<16x64xf32>
    %419 = arith.mulf %418, %418 : vector<16x64xf32>
    %cst_188 = arith.constant dense<0.000000e+00> : vector<64xf32>
    %420 = vector.multi_reduction <add>, %419, %cst_188 [0] : vector<16x64xf32> to vector<64xf32>
    %421 = vector.shape_cast %420 : vector<64xf32> to vector<1x64xf32>
    %cst_189 = arith.constant 6.250000e-02 : f32
    %422 = vector.broadcast %cst_189 : f32 to vector<1x64xf32>
    %423 = arith.mulf %421, %422 : vector<1x64xf32>
    %c0_190 = arith.constant 0 : index
    %c0_191 = arith.constant 0 : index
    %424 = vector.load %arg6[%c0_190, %c0_191] : memref<64x32xf32, #tpu.memory_space<vmem>>, vector<64x32xf32>
    %cst_192 = arith.constant dense<0.000000e+00> : vector<1x32xf32>
    %425 = tpu.matmul %423, %424, %cst_192 {dimension_numbers = #tpu.dot_dimension_numbers<[1], [0], [0], [1], [0, 0, 1, 1], [], []>} : vector<1x64xf32>, vector<64x32xf32>, vector<1x32xf32> -> vector<1x32xf32>
    %c0_193 = arith.constant 0 : index
    %c0_194 = arith.constant 0 : index
    %426 = vector.load %arg7[%c0_193, %c0_194] : memref<32x64xf32, #tpu.memory_space<vmem>>, vector<32x64xf32>
    %cst_195 = arith.constant dense<0.000000e+00> : vector<1x64xf32>
    %427 = tpu.matmul %425, %426, %cst_195 {dimension_numbers = #tpu.dot_dimension_numbers<[1], [0], [0], [1], [0, 0, 1, 1], [], []>} : vector<1x32xf32>, vector<32x64xf32>, vector<1x64xf32> -> vector<1x64xf32>
    %cst_196 = arith.constant 9.99999974E-6 : f32
    %428 = vector.broadcast %cst_196 : f32 to vector<1x64xf32>
    %429 = arith.addf %427, %428 : vector<1x64xf32>
    %430 = math.rsqrt %429 : vector<1x64xf32>
    %431 = vector.broadcast %430 : vector<1x64xf32> to vector<16x64xf32>
    %432 = arith.mulf %418, %431 : vector<16x64xf32>
    %433 = vector.broadcast %398 : vector<1x64xf32> to vector<16x64xf32>
    %434 = arith.mulf %432, %433 : vector<16x64xf32>
    %435 = vector.broadcast %400 : vector<1x64xf32> to vector<16x64xf32>
    %436 = arith.addf %434, %435 : vector<16x64xf32>
    %437 = arith.truncf %436 : vector<16x64xf32> to vector<16x64xbf16>
    %cst_197 = arith.constant dense<0.000000e+00> : vector<16x192xf32>
    %438 = tpu.matmul %437, %402, %cst_197 {dimension_numbers = #tpu.dot_dimension_numbers<[1], [0], [0], [1], [0, 0, 1, 1], [], []>} : vector<16x64xbf16>, vector<64x192xbf16>, vector<16x192xf32> -> vector<16x192xf32>
    %439 = vector.broadcast %404 : vector<1x192xf32> to vector<16x192xf32>
    %440 = arith.addf %438, %439 : vector<16x192xf32>
    %441 = vector.extract_strided_slice %440 {offsets = [0, 0], sizes = [16, 16], strides = [1, 1]} : vector<16x192xf32> to vector<16x16xf32>
    %442 = arith.truncf %441 : vector<16x16xf32> to vector<16x16xbf16>
    %443 = vector.extract_strided_slice %440 {offsets = [0, 64], sizes = [16, 16], strides = [1, 1]} : vector<16x192xf32> to vector<16x16xf32>
    %444 = arith.truncf %443 : vector<16x16xf32> to vector<16x16xbf16>
    %445 = vector.extract_strided_slice %440 {offsets = [0, 128], sizes = [16, 16], strides = [1, 1]} : vector<16x192xf32> to vector<16x16xf32>
    %446 = arith.truncf %445 : vector<16x16xf32> to vector<16x16xbf16>
    %447 = tpu.transpose %444, [1, 0] : vector<16x16xbf16> -> vector<16x16xbf16>
    %cst_198 = arith.constant dense<0.000000e+00> : vector<16x16xf32>
    %448 = tpu.matmul %442, %447, %cst_198 {dimension_numbers = #tpu.dot_dimension_numbers<[1], [0], [0], [1], [0, 0, 1, 1], [], []>} : vector<16x16xbf16>, vector<16x16xbf16>, vector<16x16xf32> -> vector<16x16xf32>
    %cst_199 = arith.constant dense<0xFF800000> : vector<16xf32>
    %449 = vector.multi_reduction <maximumf>, %448, %cst_199 [1] : vector<16x16xf32> to vector<16xf32>
    %450 = vector.shape_cast %449 : vector<16xf32> to vector<16x1xf32>
    %451 = vector.broadcast %450 : vector<16x1xf32> to vector<16x16xf32>
    %452 = arith.subf %448, %451 : vector<16x16xf32>
    %453 = math.exp %452 : vector<16x16xf32>
    %cst_200 = arith.constant dense<0.000000e+00> : vector<16xf32>
    %454 = vector.multi_reduction <add>, %453, %cst_200 [1] : vector<16x16xf32> to vector<16xf32>
    %455 = vector.shape_cast %454 : vector<16xf32> to vector<16x1xf32>
    %456 = tpu.reciprocal %455 {approx = true} : vector<16x1xf32> -> vector<16x1xf32>
    %457 = vector.broadcast %456 : vector<16x1xf32> to vector<16x16xf32>
    %458 = arith.mulf %453, %457 : vector<16x16xf32>
    %459 = arith.truncf %458 : vector<16x16xf32> to vector<16x16xbf16>
    %cst_201 = arith.constant dense<0.000000e+00> : vector<16x16xf32>
    %460 = tpu.matmul %459, %446, %cst_201 {dimension_numbers = #tpu.dot_dimension_numbers<[1], [0], [0], [1], [0, 0, 1, 1], [], []>} : vector<16x16xbf16>, vector<16x16xbf16>, vector<16x16xf32> -> vector<16x16xf32>
    %461 = vector.extract_strided_slice %440 {offsets = [0, 16], sizes = [16, 16], strides = [1, 1]} : vector<16x192xf32> to vector<16x16xf32>
    %462 = arith.truncf %461 : vector<16x16xf32> to vector<16x16xbf16>
    %463 = vector.extract_strided_slice %440 {offsets = [0, 80], sizes = [16, 16], strides = [1, 1]} : vector<16x192xf32> to vector<16x16xf32>
    %464 = arith.truncf %463 : vector<16x16xf32> to vector<16x16xbf16>
    %465 = vector.extract_strided_slice %440 {offsets = [0, 144], sizes = [16, 16], strides = [1, 1]} : vector<16x192xf32> to vector<16x16xf32>
    %466 = arith.truncf %465 : vector<16x16xf32> to vector<16x16xbf16>
    %467 = tpu.transpose %464, [1, 0] : vector<16x16xbf16> -> vector<16x16xbf16>
    %cst_202 = arith.constant dense<0.000000e+00> : vector<16x16xf32>
    %468 = tpu.matmul %462, %467, %cst_202 {dimension_numbers = #tpu.dot_dimension_numbers<[1], [0], [0], [1], [0, 0, 1, 1], [], []>} : vector<16x16xbf16>, vector<16x16xbf16>, vector<16x16xf32> -> vector<16x16xf32>
    %cst_203 = arith.constant dense<0xFF800000> : vector<16xf32>
    %469 = vector.multi_reduction <maximumf>, %468, %cst_203 [1] : vector<16x16xf32> to vector<16xf32>
    %470 = vector.shape_cast %469 : vector<16xf32> to vector<16x1xf32>
    %471 = vector.broadcast %470 : vector<16x1xf32> to vector<16x16xf32>
    %472 = arith.subf %468, %471 : vector<16x16xf32>
    %473 = math.exp %472 : vector<16x16xf32>
    %cst_204 = arith.constant dense<0.000000e+00> : vector<16xf32>
    %474 = vector.multi_reduction <add>, %473, %cst_204 [1] : vector<16x16xf32> to vector<16xf32>
    %475 = vector.shape_cast %474 : vector<16xf32> to vector<16x1xf32>
    %476 = tpu.reciprocal %475 {approx = true} : vector<16x1xf32> -> vector<16x1xf32>
    %477 = vector.broadcast %476 : vector<16x1xf32> to vector<16x16xf32>
    %478 = arith.mulf %473, %477 : vector<16x16xf32>
    %479 = arith.truncf %478 : vector<16x16xf32> to vector<16x16xbf16>
    %cst_205 = arith.constant dense<0.000000e+00> : vector<16x16xf32>
    %480 = tpu.matmul %479, %466, %cst_205 {dimension_numbers = #tpu.dot_dimension_numbers<[1], [0], [0], [1], [0, 0, 1, 1], [], []>} : vector<16x16xbf16>, vector<16x16xbf16>, vector<16x16xf32> -> vector<16x16xf32>
    %481 = vector.extract_strided_slice %440 {offsets = [0, 32], sizes = [16, 16], strides = [1, 1]} : vector<16x192xf32> to vector<16x16xf32>
    %482 = arith.truncf %481 : vector<16x16xf32> to vector<16x16xbf16>
    %483 = vector.extract_strided_slice %440 {offsets = [0, 96], sizes = [16, 16], strides = [1, 1]} : vector<16x192xf32> to vector<16x16xf32>
    %484 = arith.truncf %483 : vector<16x16xf32> to vector<16x16xbf16>
    %485 = vector.extract_strided_slice %440 {offsets = [0, 160], sizes = [16, 16], strides = [1, 1]} : vector<16x192xf32> to vector<16x16xf32>
    %486 = arith.truncf %485 : vector<16x16xf32> to vector<16x16xbf16>
    %487 = tpu.transpose %484, [1, 0] : vector<16x16xbf16> -> vector<16x16xbf16>
    %cst_206 = arith.constant dense<0.000000e+00> : vector<16x16xf32>
    %488 = tpu.matmul %482, %487, %cst_206 {dimension_numbers = #tpu.dot_dimension_numbers<[1], [0], [0], [1], [0, 0, 1, 1], [], []>} : vector<16x16xbf16>, vector<16x16xbf16>, vector<16x16xf32> -> vector<16x16xf32>
    %cst_207 = arith.constant dense<0xFF800000> : vector<16xf32>
    %489 = vector.multi_reduction <maximumf>, %488, %cst_207 [1] : vector<16x16xf32> to vector<16xf32>
    %490 = vector.shape_cast %489 : vector<16xf32> to vector<16x1xf32>
    %491 = vector.broadcast %490 : vector<16x1xf32> to vector<16x16xf32>
    %492 = arith.subf %488, %491 : vector<16x16xf32>
    %493 = math.exp %492 : vector<16x16xf32>
    %cst_208 = arith.constant dense<0.000000e+00> : vector<16xf32>
    %494 = vector.multi_reduction <add>, %493, %cst_208 [1] : vector<16x16xf32> to vector<16xf32>
    %495 = vector.shape_cast %494 : vector<16xf32> to vector<16x1xf32>
    %496 = tpu.reciprocal %495 {approx = true} : vector<16x1xf32> -> vector<16x1xf32>
    %497 = vector.broadcast %496 : vector<16x1xf32> to vector<16x16xf32>
    %498 = arith.mulf %493, %497 : vector<16x16xf32>
    %499 = arith.truncf %498 : vector<16x16xf32> to vector<16x16xbf16>
    %cst_209 = arith.constant dense<0.000000e+00> : vector<16x16xf32>
    %500 = tpu.matmul %499, %486, %cst_209 {dimension_numbers = #tpu.dot_dimension_numbers<[1], [0], [0], [1], [0, 0, 1, 1], [], []>} : vector<16x16xbf16>, vector<16x16xbf16>, vector<16x16xf32> -> vector<16x16xf32>
    %501 = vector.extract_strided_slice %440 {offsets = [0, 48], sizes = [16, 16], strides = [1, 1]} : vector<16x192xf32> to vector<16x16xf32>
    %502 = arith.truncf %501 : vector<16x16xf32> to vector<16x16xbf16>
    %503 = vector.extract_strided_slice %440 {offsets = [0, 112], sizes = [16, 16], strides = [1, 1]} : vector<16x192xf32> to vector<16x16xf32>
    %504 = arith.truncf %503 : vector<16x16xf32> to vector<16x16xbf16>
    %505 = vector.extract_strided_slice %440 {offsets = [0, 176], sizes = [16, 16], strides = [1, 1]} : vector<16x192xf32> to vector<16x16xf32>
    %506 = arith.truncf %505 : vector<16x16xf32> to vector<16x16xbf16>
    %507 = tpu.transpose %504, [1, 0] : vector<16x16xbf16> -> vector<16x16xbf16>
    %cst_210 = arith.constant dense<0.000000e+00> : vector<16x16xf32>
    %508 = tpu.matmul %502, %507, %cst_210 {dimension_numbers = #tpu.dot_dimension_numbers<[1], [0], [0], [1], [0, 0, 1, 1], [], []>} : vector<16x16xbf16>, vector<16x16xbf16>, vector<16x16xf32> -> vector<16x16xf32>
    %cst_211 = arith.constant dense<0xFF800000> : vector<16xf32>
    %509 = vector.multi_reduction <maximumf>, %508, %cst_211 [1] : vector<16x16xf32> to vector<16xf32>
    %510 = vector.shape_cast %509 : vector<16xf32> to vector<16x1xf32>
    %511 = vector.broadcast %510 : vector<16x1xf32> to vector<16x16xf32>
    %512 = arith.subf %508, %511 : vector<16x16xf32>
    %513 = math.exp %512 : vector<16x16xf32>
    %cst_212 = arith.constant dense<0.000000e+00> : vector<16xf32>
    %514 = vector.multi_reduction <add>, %513, %cst_212 [1] : vector<16x16xf32> to vector<16xf32>
    %515 = vector.shape_cast %514 : vector<16xf32> to vector<16x1xf32>
    %516 = tpu.reciprocal %515 {approx = true} : vector<16x1xf32> -> vector<16x1xf32>
    %517 = vector.broadcast %516 : vector<16x1xf32> to vector<16x16xf32>
    %518 = arith.mulf %513, %517 : vector<16x16xf32>
    %519 = arith.truncf %518 : vector<16x16xf32> to vector<16x16xbf16>
    %cst_213 = arith.constant dense<0.000000e+00> : vector<16x16xf32>
    %520 = tpu.matmul %519, %506, %cst_213 {dimension_numbers = #tpu.dot_dimension_numbers<[1], [0], [0], [1], [0, 0, 1, 1], [], []>} : vector<16x16xbf16>, vector<16x16xbf16>, vector<16x16xf32> -> vector<16x16xf32>
    %521 = tpu.concatenate %460, %480, %500, %520 in 1 : vector<16x16xf32>, vector<16x16xf32>, vector<16x16xf32>, vector<16x16xf32> -> vector<16x64xf32>
    %522 = arith.truncf %521 : vector<16x64xf32> to vector<16x64xbf16>
    %cst_214 = arith.constant dense<0.000000e+00> : vector<16x64xf32>
    %523 = tpu.matmul %522, %406, %cst_214 {dimension_numbers = #tpu.dot_dimension_numbers<[1], [0], [0], [1], [0, 0, 1, 1], [], []>} : vector<16x64xbf16>, vector<64x64xbf16>, vector<16x64xf32> -> vector<16x64xf32>
    %524 = arith.addf %396, %523 : vector<16x64xf32>
    %525 = vector.broadcast %408 : vector<1x64xf32> to vector<16x64xf32>
    %526 = arith.addf %524, %525 : vector<16x64xf32>
    %c4 = arith.constant 4 : index
    %c0_215 = arith.constant 0 : index
    %c0_216 = arith.constant 0 : index
    %527 = vector.load %arg4[%c4, %c0_215, %c0_216] : memref<6x1x64xf32, #tpu.memory_space<vmem>>, vector<1x1x64xf32>
    %528 = vector.shape_cast %527 : vector<1x1x64xf32> to vector<1x64xf32>
    %c4_217 = arith.constant 4 : index
    %c0_218 = arith.constant 0 : index
    %c0_219 = arith.constant 0 : index
    %529 = vector.load %arg5[%c4_217, %c0_218, %c0_219] : memref<6x1x64xf32, #tpu.memory_space<vmem>>, vector<1x1x64xf32>
    %530 = vector.shape_cast %529 : vector<1x1x64xf32> to vector<1x64xf32>
    %c4_220 = arith.constant 4 : index
    %c0_221 = arith.constant 0 : index
    %c0_222 = arith.constant 0 : index
    %531 = vector.load %arg8[%c4_220, %c0_221, %c0_222] : memref<6x64x192xbf16, #tpu.memory_space<vmem>>, vector<1x64x192xbf16>
    %532 = vector.shape_cast %531 : vector<1x64x192xbf16> to vector<64x192xbf16>
    %c4_223 = arith.constant 4 : index
    %c0_224 = arith.constant 0 : index
    %c0_225 = arith.constant 0 : index
    %533 = vector.load %arg9[%c4_223, %c0_224, %c0_225] : memref<6x1x192xf32, #tpu.memory_space<vmem>>, vector<1x1x192xf32>
    %534 = vector.shape_cast %533 : vector<1x1x192xf32> to vector<1x192xf32>
    %c4_226 = arith.constant 4 : index
    %c0_227 = arith.constant 0 : index
    %c0_228 = arith.constant 0 : index
    %535 = vector.load %arg10[%c4_226, %c0_227, %c0_228] : memref<6x64x64xbf16, #tpu.memory_space<vmem>>, vector<1x64x64xbf16>
    %536 = vector.shape_cast %535 : vector<1x64x64xbf16> to vector<64x64xbf16>
    %c4_229 = arith.constant 4 : index
    %c0_230 = arith.constant 0 : index
    %c0_231 = arith.constant 0 : index
    %537 = vector.load %arg11[%c4_229, %c0_230, %c0_231] : memref<6x1x64xf32, #tpu.memory_space<vmem>>, vector<1x1x64xf32>
    %538 = vector.shape_cast %537 : vector<1x1x64xf32> to vector<1x64xf32>
    %cst_232 = arith.constant dense<0.000000e+00> : vector<64xf32>
    %539 = vector.multi_reduction <add>, %526, %cst_232 [0] : vector<16x64xf32> to vector<64xf32>
    %540 = vector.shape_cast %539 : vector<64xf32> to vector<1x64xf32>
    %cst_233 = arith.constant 6.250000e-02 : f32
    %541 = vector.broadcast %cst_233 : f32 to vector<1x64xf32>
    %542 = arith.mulf %540, %541 : vector<1x64xf32>
    %c0_234 = arith.constant 0 : index
    %c0_235 = arith.constant 0 : index
    %543 = vector.load %arg6[%c0_234, %c0_235] : memref<64x32xf32, #tpu.memory_space<vmem>>, vector<64x32xf32>
    %cst_236 = arith.constant dense<0.000000e+00> : vector<1x32xf32>
    %544 = tpu.matmul %542, %543, %cst_236 {dimension_numbers = #tpu.dot_dimension_numbers<[1], [0], [0], [1], [0, 0, 1, 1], [], []>} : vector<1x64xf32>, vector<64x32xf32>, vector<1x32xf32> -> vector<1x32xf32>
    %c0_237 = arith.constant 0 : index
    %c0_238 = arith.constant 0 : index
    %545 = vector.load %arg7[%c0_237, %c0_238] : memref<32x64xf32, #tpu.memory_space<vmem>>, vector<32x64xf32>
    %cst_239 = arith.constant dense<0.000000e+00> : vector<1x64xf32>
    %546 = tpu.matmul %544, %545, %cst_239 {dimension_numbers = #tpu.dot_dimension_numbers<[1], [0], [0], [1], [0, 0, 1, 1], [], []>} : vector<1x32xf32>, vector<32x64xf32>, vector<1x64xf32> -> vector<1x64xf32>
    %547 = vector.broadcast %546 : vector<1x64xf32> to vector<16x64xf32>
    %548 = arith.subf %526, %547 : vector<16x64xf32>
    %549 = arith.mulf %548, %548 : vector<16x64xf32>
    %cst_240 = arith.constant dense<0.000000e+00> : vector<64xf32>
    %550 = vector.multi_reduction <add>, %549, %cst_240 [0] : vector<16x64xf32> to vector<64xf32>
    %551 = vector.shape_cast %550 : vector<64xf32> to vector<1x64xf32>
    %cst_241 = arith.constant 6.250000e-02 : f32
    %552 = vector.broadcast %cst_241 : f32 to vector<1x64xf32>
    %553 = arith.mulf %551, %552 : vector<1x64xf32>
    %c0_242 = arith.constant 0 : index
    %c0_243 = arith.constant 0 : index
    %554 = vector.load %arg6[%c0_242, %c0_243] : memref<64x32xf32, #tpu.memory_space<vmem>>, vector<64x32xf32>
    %cst_244 = arith.constant dense<0.000000e+00> : vector<1x32xf32>
    %555 = tpu.matmul %553, %554, %cst_244 {dimension_numbers = #tpu.dot_dimension_numbers<[1], [0], [0], [1], [0, 0, 1, 1], [], []>} : vector<1x64xf32>, vector<64x32xf32>, vector<1x32xf32> -> vector<1x32xf32>
    %c0_245 = arith.constant 0 : index
    %c0_246 = arith.constant 0 : index
    %556 = vector.load %arg7[%c0_245, %c0_246] : memref<32x64xf32, #tpu.memory_space<vmem>>, vector<32x64xf32>
    %cst_247 = arith.constant dense<0.000000e+00> : vector<1x64xf32>
    %557 = tpu.matmul %555, %556, %cst_247 {dimension_numbers = #tpu.dot_dimension_numbers<[1], [0], [0], [1], [0, 0, 1, 1], [], []>} : vector<1x32xf32>, vector<32x64xf32>, vector<1x64xf32> -> vector<1x64xf32>
    %cst_248 = arith.constant 9.99999974E-6 : f32
    %558 = vector.broadcast %cst_248 : f32 to vector<1x64xf32>
    %559 = arith.addf %557, %558 : vector<1x64xf32>
    %560 = math.rsqrt %559 : vector<1x64xf32>
    %561 = vector.broadcast %560 : vector<1x64xf32> to vector<16x64xf32>
    %562 = arith.mulf %548, %561 : vector<16x64xf32>
    %563 = vector.broadcast %528 : vector<1x64xf32> to vector<16x64xf32>
    %564 = arith.mulf %562, %563 : vector<16x64xf32>
    %565 = vector.broadcast %530 : vector<1x64xf32> to vector<16x64xf32>
    %566 = arith.addf %564, %565 : vector<16x64xf32>
    %567 = arith.truncf %566 : vector<16x64xf32> to vector<16x64xbf16>
    %cst_249 = arith.constant dense<0.000000e+00> : vector<16x192xf32>
    %568 = tpu.matmul %567, %532, %cst_249 {dimension_numbers = #tpu.dot_dimension_numbers<[1], [0], [0], [1], [0, 0, 1, 1], [], []>} : vector<16x64xbf16>, vector<64x192xbf16>, vector<16x192xf32> -> vector<16x192xf32>
    %569 = vector.broadcast %534 : vector<1x192xf32> to vector<16x192xf32>
    %570 = arith.addf %568, %569 : vector<16x192xf32>
    %571 = vector.extract_strided_slice %570 {offsets = [0, 0], sizes = [16, 16], strides = [1, 1]} : vector<16x192xf32> to vector<16x16xf32>
    %572 = arith.truncf %571 : vector<16x16xf32> to vector<16x16xbf16>
    %573 = vector.extract_strided_slice %570 {offsets = [0, 64], sizes = [16, 16], strides = [1, 1]} : vector<16x192xf32> to vector<16x16xf32>
    %574 = arith.truncf %573 : vector<16x16xf32> to vector<16x16xbf16>
    %575 = vector.extract_strided_slice %570 {offsets = [0, 128], sizes = [16, 16], strides = [1, 1]} : vector<16x192xf32> to vector<16x16xf32>
    %576 = arith.truncf %575 : vector<16x16xf32> to vector<16x16xbf16>
    %577 = tpu.transpose %574, [1, 0] : vector<16x16xbf16> -> vector<16x16xbf16>
    %cst_250 = arith.constant dense<0.000000e+00> : vector<16x16xf32>
    %578 = tpu.matmul %572, %577, %cst_250 {dimension_numbers = #tpu.dot_dimension_numbers<[1], [0], [0], [1], [0, 0, 1, 1], [], []>} : vector<16x16xbf16>, vector<16x16xbf16>, vector<16x16xf32> -> vector<16x16xf32>
    %cst_251 = arith.constant dense<0xFF800000> : vector<16xf32>
    %579 = vector.multi_reduction <maximumf>, %578, %cst_251 [1] : vector<16x16xf32> to vector<16xf32>
    %580 = vector.shape_cast %579 : vector<16xf32> to vector<16x1xf32>
    %581 = vector.broadcast %580 : vector<16x1xf32> to vector<16x16xf32>
    %582 = arith.subf %578, %581 : vector<16x16xf32>
    %583 = math.exp %582 : vector<16x16xf32>
    %cst_252 = arith.constant dense<0.000000e+00> : vector<16xf32>
    %584 = vector.multi_reduction <add>, %583, %cst_252 [1] : vector<16x16xf32> to vector<16xf32>
    %585 = vector.shape_cast %584 : vector<16xf32> to vector<16x1xf32>
    %586 = tpu.reciprocal %585 {approx = true} : vector<16x1xf32> -> vector<16x1xf32>
    %587 = vector.broadcast %586 : vector<16x1xf32> to vector<16x16xf32>
    %588 = arith.mulf %583, %587 : vector<16x16xf32>
    %589 = arith.truncf %588 : vector<16x16xf32> to vector<16x16xbf16>
    %cst_253 = arith.constant dense<0.000000e+00> : vector<16x16xf32>
    %590 = tpu.matmul %589, %576, %cst_253 {dimension_numbers = #tpu.dot_dimension_numbers<[1], [0], [0], [1], [0, 0, 1, 1], [], []>} : vector<16x16xbf16>, vector<16x16xbf16>, vector<16x16xf32> -> vector<16x16xf32>
    %591 = vector.extract_strided_slice %570 {offsets = [0, 16], sizes = [16, 16], strides = [1, 1]} : vector<16x192xf32> to vector<16x16xf32>
    %592 = arith.truncf %591 : vector<16x16xf32> to vector<16x16xbf16>
    %593 = vector.extract_strided_slice %570 {offsets = [0, 80], sizes = [16, 16], strides = [1, 1]} : vector<16x192xf32> to vector<16x16xf32>
    %594 = arith.truncf %593 : vector<16x16xf32> to vector<16x16xbf16>
    %595 = vector.extract_strided_slice %570 {offsets = [0, 144], sizes = [16, 16], strides = [1, 1]} : vector<16x192xf32> to vector<16x16xf32>
    %596 = arith.truncf %595 : vector<16x16xf32> to vector<16x16xbf16>
    %597 = tpu.transpose %594, [1, 0] : vector<16x16xbf16> -> vector<16x16xbf16>
    %cst_254 = arith.constant dense<0.000000e+00> : vector<16x16xf32>
    %598 = tpu.matmul %592, %597, %cst_254 {dimension_numbers = #tpu.dot_dimension_numbers<[1], [0], [0], [1], [0, 0, 1, 1], [], []>} : vector<16x16xbf16>, vector<16x16xbf16>, vector<16x16xf32> -> vector<16x16xf32>
    %cst_255 = arith.constant dense<0xFF800000> : vector<16xf32>
    %599 = vector.multi_reduction <maximumf>, %598, %cst_255 [1] : vector<16x16xf32> to vector<16xf32>
    %600 = vector.shape_cast %599 : vector<16xf32> to vector<16x1xf32>
    %601 = vector.broadcast %600 : vector<16x1xf32> to vector<16x16xf32>
    %602 = arith.subf %598, %601 : vector<16x16xf32>
    %603 = math.exp %602 : vector<16x16xf32>
    %cst_256 = arith.constant dense<0.000000e+00> : vector<16xf32>
    %604 = vector.multi_reduction <add>, %603, %cst_256 [1] : vector<16x16xf32> to vector<16xf32>
    %605 = vector.shape_cast %604 : vector<16xf32> to vector<16x1xf32>
    %606 = tpu.reciprocal %605 {approx = true} : vector<16x1xf32> -> vector<16x1xf32>
    %607 = vector.broadcast %606 : vector<16x1xf32> to vector<16x16xf32>
    %608 = arith.mulf %603, %607 : vector<16x16xf32>
    %609 = arith.truncf %608 : vector<16x16xf32> to vector<16x16xbf16>
    %cst_257 = arith.constant dense<0.000000e+00> : vector<16x16xf32>
    %610 = tpu.matmul %609, %596, %cst_257 {dimension_numbers = #tpu.dot_dimension_numbers<[1], [0], [0], [1], [0, 0, 1, 1], [], []>} : vector<16x16xbf16>, vector<16x16xbf16>, vector<16x16xf32> -> vector<16x16xf32>
    %611 = vector.extract_strided_slice %570 {offsets = [0, 32], sizes = [16, 16], strides = [1, 1]} : vector<16x192xf32> to vector<16x16xf32>
    %612 = arith.truncf %611 : vector<16x16xf32> to vector<16x16xbf16>
    %613 = vector.extract_strided_slice %570 {offsets = [0, 96], sizes = [16, 16], strides = [1, 1]} : vector<16x192xf32> to vector<16x16xf32>
    %614 = arith.truncf %613 : vector<16x16xf32> to vector<16x16xbf16>
    %615 = vector.extract_strided_slice %570 {offsets = [0, 160], sizes = [16, 16], strides = [1, 1]} : vector<16x192xf32> to vector<16x16xf32>
    %616 = arith.truncf %615 : vector<16x16xf32> to vector<16x16xbf16>
    %617 = tpu.transpose %614, [1, 0] : vector<16x16xbf16> -> vector<16x16xbf16>
    %cst_258 = arith.constant dense<0.000000e+00> : vector<16x16xf32>
    %618 = tpu.matmul %612, %617, %cst_258 {dimension_numbers = #tpu.dot_dimension_numbers<[1], [0], [0], [1], [0, 0, 1, 1], [], []>} : vector<16x16xbf16>, vector<16x16xbf16>, vector<16x16xf32> -> vector<16x16xf32>
    %cst_259 = arith.constant dense<0xFF800000> : vector<16xf32>
    %619 = vector.multi_reduction <maximumf>, %618, %cst_259 [1] : vector<16x16xf32> to vector<16xf32>
    %620 = vector.shape_cast %619 : vector<16xf32> to vector<16x1xf32>
    %621 = vector.broadcast %620 : vector<16x1xf32> to vector<16x16xf32>
    %622 = arith.subf %618, %621 : vector<16x16xf32>
    %623 = math.exp %622 : vector<16x16xf32>
    %cst_260 = arith.constant dense<0.000000e+00> : vector<16xf32>
    %624 = vector.multi_reduction <add>, %623, %cst_260 [1] : vector<16x16xf32> to vector<16xf32>
    %625 = vector.shape_cast %624 : vector<16xf32> to vector<16x1xf32>
    %626 = tpu.reciprocal %625 {approx = true} : vector<16x1xf32> -> vector<16x1xf32>
    %627 = vector.broadcast %626 : vector<16x1xf32> to vector<16x16xf32>
    %628 = arith.mulf %623, %627 : vector<16x16xf32>
    %629 = arith.truncf %628 : vector<16x16xf32> to vector<16x16xbf16>
    %cst_261 = arith.constant dense<0.000000e+00> : vector<16x16xf32>
    %630 = tpu.matmul %629, %616, %cst_261 {dimension_numbers = #tpu.dot_dimension_numbers<[1], [0], [0], [1], [0, 0, 1, 1], [], []>} : vector<16x16xbf16>, vector<16x16xbf16>, vector<16x16xf32> -> vector<16x16xf32>
    %631 = vector.extract_strided_slice %570 {offsets = [0, 48], sizes = [16, 16], strides = [1, 1]} : vector<16x192xf32> to vector<16x16xf32>
    %632 = arith.truncf %631 : vector<16x16xf32> to vector<16x16xbf16>
    %633 = vector.extract_strided_slice %570 {offsets = [0, 112], sizes = [16, 16], strides = [1, 1]} : vector<16x192xf32> to vector<16x16xf32>
    %634 = arith.truncf %633 : vector<16x16xf32> to vector<16x16xbf16>
    %635 = vector.extract_strided_slice %570 {offsets = [0, 176], sizes = [16, 16], strides = [1, 1]} : vector<16x192xf32> to vector<16x16xf32>
    %636 = arith.truncf %635 : vector<16x16xf32> to vector<16x16xbf16>
    %637 = tpu.transpose %634, [1, 0] : vector<16x16xbf16> -> vector<16x16xbf16>
    %cst_262 = arith.constant dense<0.000000e+00> : vector<16x16xf32>
    %638 = tpu.matmul %632, %637, %cst_262 {dimension_numbers = #tpu.dot_dimension_numbers<[1], [0], [0], [1], [0, 0, 1, 1], [], []>} : vector<16x16xbf16>, vector<16x16xbf16>, vector<16x16xf32> -> vector<16x16xf32>
    %cst_263 = arith.constant dense<0xFF800000> : vector<16xf32>
    %639 = vector.multi_reduction <maximumf>, %638, %cst_263 [1] : vector<16x16xf32> to vector<16xf32>
    %640 = vector.shape_cast %639 : vector<16xf32> to vector<16x1xf32>
    %641 = vector.broadcast %640 : vector<16x1xf32> to vector<16x16xf32>
    %642 = arith.subf %638, %641 : vector<16x16xf32>
    %643 = math.exp %642 : vector<16x16xf32>
    %cst_264 = arith.constant dense<0.000000e+00> : vector<16xf32>
    %644 = vector.multi_reduction <add>, %643, %cst_264 [1] : vector<16x16xf32> to vector<16xf32>
    %645 = vector.shape_cast %644 : vector<16xf32> to vector<16x1xf32>
    %646 = tpu.reciprocal %645 {approx = true} : vector<16x1xf32> -> vector<16x1xf32>
    %647 = vector.broadcast %646 : vector<16x1xf32> to vector<16x16xf32>
    %648 = arith.mulf %643, %647 : vector<16x16xf32>
    %649 = arith.truncf %648 : vector<16x16xf32> to vector<16x16xbf16>
    %cst_265 = arith.constant dense<0.000000e+00> : vector<16x16xf32>
    %650 = tpu.matmul %649, %636, %cst_265 {dimension_numbers = #tpu.dot_dimension_numbers<[1], [0], [0], [1], [0, 0, 1, 1], [], []>} : vector<16x16xbf16>, vector<16x16xbf16>, vector<16x16xf32> -> vector<16x16xf32>
    %651 = tpu.concatenate %590, %610, %630, %650 in 1 : vector<16x16xf32>, vector<16x16xf32>, vector<16x16xf32>, vector<16x16xf32> -> vector<16x64xf32>
    %652 = arith.truncf %651 : vector<16x64xf32> to vector<16x64xbf16>
    %cst_266 = arith.constant dense<0.000000e+00> : vector<16x64xf32>
    %653 = tpu.matmul %652, %536, %cst_266 {dimension_numbers = #tpu.dot_dimension_numbers<[1], [0], [0], [1], [0, 0, 1, 1], [], []>} : vector<16x64xbf16>, vector<64x64xbf16>, vector<16x64xf32> -> vector<16x64xf32>
    %654 = arith.addf %526, %653 : vector<16x64xf32>
    %655 = vector.broadcast %538 : vector<1x64xf32> to vector<16x64xf32>
    %656 = arith.addf %654, %655 : vector<16x64xf32>
    %c5 = arith.constant 5 : index
    %c0_267 = arith.constant 0 : index
    %c0_268 = arith.constant 0 : index
    %657 = vector.load %arg4[%c5, %c0_267, %c0_268] : memref<6x1x64xf32, #tpu.memory_space<vmem>>, vector<1x1x64xf32>
    %658 = vector.shape_cast %657 : vector<1x1x64xf32> to vector<1x64xf32>
    %c5_269 = arith.constant 5 : index
    %c0_270 = arith.constant 0 : index
    %c0_271 = arith.constant 0 : index
    %659 = vector.load %arg5[%c5_269, %c0_270, %c0_271] : memref<6x1x64xf32, #tpu.memory_space<vmem>>, vector<1x1x64xf32>
    %660 = vector.shape_cast %659 : vector<1x1x64xf32> to vector<1x64xf32>
    %c5_272 = arith.constant 5 : index
    %c0_273 = arith.constant 0 : index
    %c0_274 = arith.constant 0 : index
    %661 = vector.load %arg8[%c5_272, %c0_273, %c0_274] : memref<6x64x192xbf16, #tpu.memory_space<vmem>>, vector<1x64x192xbf16>
    %662 = vector.shape_cast %661 : vector<1x64x192xbf16> to vector<64x192xbf16>
    %c5_275 = arith.constant 5 : index
    %c0_276 = arith.constant 0 : index
    %c0_277 = arith.constant 0 : index
    %663 = vector.load %arg9[%c5_275, %c0_276, %c0_277] : memref<6x1x192xf32, #tpu.memory_space<vmem>>, vector<1x1x192xf32>
    %664 = vector.shape_cast %663 : vector<1x1x192xf32> to vector<1x192xf32>
    %c5_278 = arith.constant 5 : index
    %c0_279 = arith.constant 0 : index
    %c0_280 = arith.constant 0 : index
    %665 = vector.load %arg10[%c5_278, %c0_279, %c0_280] : memref<6x64x64xbf16, #tpu.memory_space<vmem>>, vector<1x64x64xbf16>
    %666 = vector.shape_cast %665 : vector<1x64x64xbf16> to vector<64x64xbf16>
    %c5_281 = arith.constant 5 : index
    %c0_282 = arith.constant 0 : index
    %c0_283 = arith.constant 0 : index
    %667 = vector.load %arg11[%c5_281, %c0_282, %c0_283] : memref<6x1x64xf32, #tpu.memory_space<vmem>>, vector<1x1x64xf32>
    %668 = vector.shape_cast %667 : vector<1x1x64xf32> to vector<1x64xf32>
    %cst_284 = arith.constant dense<0.000000e+00> : vector<64xf32>
    %669 = vector.multi_reduction <add>, %656, %cst_284 [0] : vector<16x64xf32> to vector<64xf32>
    %670 = vector.shape_cast %669 : vector<64xf32> to vector<1x64xf32>
    %cst_285 = arith.constant 6.250000e-02 : f32
    %671 = vector.broadcast %cst_285 : f32 to vector<1x64xf32>
    %672 = arith.mulf %670, %671 : vector<1x64xf32>
    %c0_286 = arith.constant 0 : index
    %c0_287 = arith.constant 0 : index
    %673 = vector.load %arg6[%c0_286, %c0_287] : memref<64x32xf32, #tpu.memory_space<vmem>>, vector<64x32xf32>
    %cst_288 = arith.constant dense<0.000000e+00> : vector<1x32xf32>
    %674 = tpu.matmul %672, %673, %cst_288 {dimension_numbers = #tpu.dot_dimension_numbers<[1], [0], [0], [1], [0, 0, 1, 1], [], []>} : vector<1x64xf32>, vector<64x32xf32>, vector<1x32xf32> -> vector<1x32xf32>
    %c0_289 = arith.constant 0 : index
    %c0_290 = arith.constant 0 : index
    %675 = vector.load %arg7[%c0_289, %c0_290] : memref<32x64xf32, #tpu.memory_space<vmem>>, vector<32x64xf32>
    %cst_291 = arith.constant dense<0.000000e+00> : vector<1x64xf32>
    %676 = tpu.matmul %674, %675, %cst_291 {dimension_numbers = #tpu.dot_dimension_numbers<[1], [0], [0], [1], [0, 0, 1, 1], [], []>} : vector<1x32xf32>, vector<32x64xf32>, vector<1x64xf32> -> vector<1x64xf32>
    %677 = vector.broadcast %676 : vector<1x64xf32> to vector<16x64xf32>
    %678 = arith.subf %656, %677 : vector<16x64xf32>
    %679 = arith.mulf %678, %678 : vector<16x64xf32>
    %cst_292 = arith.constant dense<0.000000e+00> : vector<64xf32>
    %680 = vector.multi_reduction <add>, %679, %cst_292 [0] : vector<16x64xf32> to vector<64xf32>
    %681 = vector.shape_cast %680 : vector<64xf32> to vector<1x64xf32>
    %cst_293 = arith.constant 6.250000e-02 : f32
    %682 = vector.broadcast %cst_293 : f32 to vector<1x64xf32>
    %683 = arith.mulf %681, %682 : vector<1x64xf32>
    %c0_294 = arith.constant 0 : index
    %c0_295 = arith.constant 0 : index
    %684 = vector.load %arg6[%c0_294, %c0_295] : memref<64x32xf32, #tpu.memory_space<vmem>>, vector<64x32xf32>
    %cst_296 = arith.constant dense<0.000000e+00> : vector<1x32xf32>
    %685 = tpu.matmul %683, %684, %cst_296 {dimension_numbers = #tpu.dot_dimension_numbers<[1], [0], [0], [1], [0, 0, 1, 1], [], []>} : vector<1x64xf32>, vector<64x32xf32>, vector<1x32xf32> -> vector<1x32xf32>
    %c0_297 = arith.constant 0 : index
    %c0_298 = arith.constant 0 : index
    %686 = vector.load %arg7[%c0_297, %c0_298] : memref<32x64xf32, #tpu.memory_space<vmem>>, vector<32x64xf32>
    %cst_299 = arith.constant dense<0.000000e+00> : vector<1x64xf32>
    %687 = tpu.matmul %685, %686, %cst_299 {dimension_numbers = #tpu.dot_dimension_numbers<[1], [0], [0], [1], [0, 0, 1, 1], [], []>} : vector<1x32xf32>, vector<32x64xf32>, vector<1x64xf32> -> vector<1x64xf32>
    %cst_300 = arith.constant 9.99999974E-6 : f32
    %688 = vector.broadcast %cst_300 : f32 to vector<1x64xf32>
    %689 = arith.addf %687, %688 : vector<1x64xf32>
    %690 = math.rsqrt %689 : vector<1x64xf32>
    %691 = vector.broadcast %690 : vector<1x64xf32> to vector<16x64xf32>
    %692 = arith.mulf %678, %691 : vector<16x64xf32>
    %693 = vector.broadcast %658 : vector<1x64xf32> to vector<16x64xf32>
    %694 = arith.mulf %692, %693 : vector<16x64xf32>
    %695 = vector.broadcast %660 : vector<1x64xf32> to vector<16x64xf32>
    %696 = arith.addf %694, %695 : vector<16x64xf32>
    %697 = arith.truncf %696 : vector<16x64xf32> to vector<16x64xbf16>
    %cst_301 = arith.constant dense<0.000000e+00> : vector<16x192xf32>
    %698 = tpu.matmul %697, %662, %cst_301 {dimension_numbers = #tpu.dot_dimension_numbers<[1], [0], [0], [1], [0, 0, 1, 1], [], []>} : vector<16x64xbf16>, vector<64x192xbf16>, vector<16x192xf32> -> vector<16x192xf32>
    %699 = vector.broadcast %664 : vector<1x192xf32> to vector<16x192xf32>
    %700 = arith.addf %698, %699 : vector<16x192xf32>
    %701 = vector.extract_strided_slice %700 {offsets = [0, 0], sizes = [16, 16], strides = [1, 1]} : vector<16x192xf32> to vector<16x16xf32>
    %702 = arith.truncf %701 : vector<16x16xf32> to vector<16x16xbf16>
    %703 = vector.extract_strided_slice %700 {offsets = [0, 64], sizes = [16, 16], strides = [1, 1]} : vector<16x192xf32> to vector<16x16xf32>
    %704 = arith.truncf %703 : vector<16x16xf32> to vector<16x16xbf16>
    %705 = vector.extract_strided_slice %700 {offsets = [0, 128], sizes = [16, 16], strides = [1, 1]} : vector<16x192xf32> to vector<16x16xf32>
    %706 = arith.truncf %705 : vector<16x16xf32> to vector<16x16xbf16>
    %707 = tpu.transpose %704, [1, 0] : vector<16x16xbf16> -> vector<16x16xbf16>
    %cst_302 = arith.constant dense<0.000000e+00> : vector<16x16xf32>
    %708 = tpu.matmul %702, %707, %cst_302 {dimension_numbers = #tpu.dot_dimension_numbers<[1], [0], [0], [1], [0, 0, 1, 1], [], []>} : vector<16x16xbf16>, vector<16x16xbf16>, vector<16x16xf32> -> vector<16x16xf32>
    %cst_303 = arith.constant dense<0xFF800000> : vector<16xf32>
    %709 = vector.multi_reduction <maximumf>, %708, %cst_303 [1] : vector<16x16xf32> to vector<16xf32>
    %710 = vector.shape_cast %709 : vector<16xf32> to vector<16x1xf32>
    %711 = vector.broadcast %710 : vector<16x1xf32> to vector<16x16xf32>
    %712 = arith.subf %708, %711 : vector<16x16xf32>
    %713 = math.exp %712 : vector<16x16xf32>
    %cst_304 = arith.constant dense<0.000000e+00> : vector<16xf32>
    %714 = vector.multi_reduction <add>, %713, %cst_304 [1] : vector<16x16xf32> to vector<16xf32>
    %715 = vector.shape_cast %714 : vector<16xf32> to vector<16x1xf32>
    %716 = tpu.reciprocal %715 {approx = true} : vector<16x1xf32> -> vector<16x1xf32>
    %717 = vector.broadcast %716 : vector<16x1xf32> to vector<16x16xf32>
    %718 = arith.mulf %713, %717 : vector<16x16xf32>
    %719 = arith.truncf %718 : vector<16x16xf32> to vector<16x16xbf16>
    %cst_305 = arith.constant dense<0.000000e+00> : vector<16x16xf32>
    %720 = tpu.matmul %719, %706, %cst_305 {dimension_numbers = #tpu.dot_dimension_numbers<[1], [0], [0], [1], [0, 0, 1, 1], [], []>} : vector<16x16xbf16>, vector<16x16xbf16>, vector<16x16xf32> -> vector<16x16xf32>
    %721 = vector.extract_strided_slice %700 {offsets = [0, 16], sizes = [16, 16], strides = [1, 1]} : vector<16x192xf32> to vector<16x16xf32>
    %722 = arith.truncf %721 : vector<16x16xf32> to vector<16x16xbf16>
    %723 = vector.extract_strided_slice %700 {offsets = [0, 80], sizes = [16, 16], strides = [1, 1]} : vector<16x192xf32> to vector<16x16xf32>
    %724 = arith.truncf %723 : vector<16x16xf32> to vector<16x16xbf16>
    %725 = vector.extract_strided_slice %700 {offsets = [0, 144], sizes = [16, 16], strides = [1, 1]} : vector<16x192xf32> to vector<16x16xf32>
    %726 = arith.truncf %725 : vector<16x16xf32> to vector<16x16xbf16>
    %727 = tpu.transpose %724, [1, 0] : vector<16x16xbf16> -> vector<16x16xbf16>
    %cst_306 = arith.constant dense<0.000000e+00> : vector<16x16xf32>
    %728 = tpu.matmul %722, %727, %cst_306 {dimension_numbers = #tpu.dot_dimension_numbers<[1], [0], [0], [1], [0, 0, 1, 1], [], []>} : vector<16x16xbf16>, vector<16x16xbf16>, vector<16x16xf32> -> vector<16x16xf32>
    %cst_307 = arith.constant dense<0xFF800000> : vector<16xf32>
    %729 = vector.multi_reduction <maximumf>, %728, %cst_307 [1] : vector<16x16xf32> to vector<16xf32>
    %730 = vector.shape_cast %729 : vector<16xf32> to vector<16x1xf32>
    %731 = vector.broadcast %730 : vector<16x1xf32> to vector<16x16xf32>
    %732 = arith.subf %728, %731 : vector<16x16xf32>
    %733 = math.exp %732 : vector<16x16xf32>
    %cst_308 = arith.constant dense<0.000000e+00> : vector<16xf32>
    %734 = vector.multi_reduction <add>, %733, %cst_308 [1] : vector<16x16xf32> to vector<16xf32>
    %735 = vector.shape_cast %734 : vector<16xf32> to vector<16x1xf32>
    %736 = tpu.reciprocal %735 {approx = true} : vector<16x1xf32> -> vector<16x1xf32>
    %737 = vector.broadcast %736 : vector<16x1xf32> to vector<16x16xf32>
    %738 = arith.mulf %733, %737 : vector<16x16xf32>
    %739 = arith.truncf %738 : vector<16x16xf32> to vector<16x16xbf16>
    %cst_309 = arith.constant dense<0.000000e+00> : vector<16x16xf32>
    %740 = tpu.matmul %739, %726, %cst_309 {dimension_numbers = #tpu.dot_dimension_numbers<[1], [0], [0], [1], [0, 0, 1, 1], [], []>} : vector<16x16xbf16>, vector<16x16xbf16>, vector<16x16xf32> -> vector<16x16xf32>
    %741 = vector.extract_strided_slice %700 {offsets = [0, 32], sizes = [16, 16], strides = [1, 1]} : vector<16x192xf32> to vector<16x16xf32>
    %742 = arith.truncf %741 : vector<16x16xf32> to vector<16x16xbf16>
    %743 = vector.extract_strided_slice %700 {offsets = [0, 96], sizes = [16, 16], strides = [1, 1]} : vector<16x192xf32> to vector<16x16xf32>
    %744 = arith.truncf %743 : vector<16x16xf32> to vector<16x16xbf16>
    %745 = vector.extract_strided_slice %700 {offsets = [0, 160], sizes = [16, 16], strides = [1, 1]} : vector<16x192xf32> to vector<16x16xf32>
    %746 = arith.truncf %745 : vector<16x16xf32> to vector<16x16xbf16>
    %747 = tpu.transpose %744, [1, 0] : vector<16x16xbf16> -> vector<16x16xbf16>
    %cst_310 = arith.constant dense<0.000000e+00> : vector<16x16xf32>
    %748 = tpu.matmul %742, %747, %cst_310 {dimension_numbers = #tpu.dot_dimension_numbers<[1], [0], [0], [1], [0, 0, 1, 1], [], []>} : vector<16x16xbf16>, vector<16x16xbf16>, vector<16x16xf32> -> vector<16x16xf32>
    %cst_311 = arith.constant dense<0xFF800000> : vector<16xf32>
    %749 = vector.multi_reduction <maximumf>, %748, %cst_311 [1] : vector<16x16xf32> to vector<16xf32>
    %750 = vector.shape_cast %749 : vector<16xf32> to vector<16x1xf32>
    %751 = vector.broadcast %750 : vector<16x1xf32> to vector<16x16xf32>
    %752 = arith.subf %748, %751 : vector<16x16xf32>
    %753 = math.exp %752 : vector<16x16xf32>
    %cst_312 = arith.constant dense<0.000000e+00> : vector<16xf32>
    %754 = vector.multi_reduction <add>, %753, %cst_312 [1] : vector<16x16xf32> to vector<16xf32>
    %755 = vector.shape_cast %754 : vector<16xf32> to vector<16x1xf32>
    %756 = tpu.reciprocal %755 {approx = true} : vector<16x1xf32> -> vector<16x1xf32>
    %757 = vector.broadcast %756 : vector<16x1xf32> to vector<16x16xf32>
    %758 = arith.mulf %753, %757 : vector<16x16xf32>
    %759 = arith.truncf %758 : vector<16x16xf32> to vector<16x16xbf16>
    %cst_313 = arith.constant dense<0.000000e+00> : vector<16x16xf32>
    %760 = tpu.matmul %759, %746, %cst_313 {dimension_numbers = #tpu.dot_dimension_numbers<[1], [0], [0], [1], [0, 0, 1, 1], [], []>} : vector<16x16xbf16>, vector<16x16xbf16>, vector<16x16xf32> -> vector<16x16xf32>
    %761 = vector.extract_strided_slice %700 {offsets = [0, 48], sizes = [16, 16], strides = [1, 1]} : vector<16x192xf32> to vector<16x16xf32>
    %762 = arith.truncf %761 : vector<16x16xf32> to vector<16x16xbf16>
    %763 = vector.extract_strided_slice %700 {offsets = [0, 112], sizes = [16, 16], strides = [1, 1]} : vector<16x192xf32> to vector<16x16xf32>
    %764 = arith.truncf %763 : vector<16x16xf32> to vector<16x16xbf16>
    %765 = vector.extract_strided_slice %700 {offsets = [0, 176], sizes = [16, 16], strides = [1, 1]} : vector<16x192xf32> to vector<16x16xf32>
    %766 = arith.truncf %765 : vector<16x16xf32> to vector<16x16xbf16>
    %767 = tpu.transpose %764, [1, 0] : vector<16x16xbf16> -> vector<16x16xbf16>
    %cst_314 = arith.constant dense<0.000000e+00> : vector<16x16xf32>
    %768 = tpu.matmul %762, %767, %cst_314 {dimension_numbers = #tpu.dot_dimension_numbers<[1], [0], [0], [1], [0, 0, 1, 1], [], []>} : vector<16x16xbf16>, vector<16x16xbf16>, vector<16x16xf32> -> vector<16x16xf32>
    %cst_315 = arith.constant dense<0xFF800000> : vector<16xf32>
    %769 = vector.multi_reduction <maximumf>, %768, %cst_315 [1] : vector<16x16xf32> to vector<16xf32>
    %770 = vector.shape_cast %769 : vector<16xf32> to vector<16x1xf32>
    %771 = vector.broadcast %770 : vector<16x1xf32> to vector<16x16xf32>
    %772 = arith.subf %768, %771 : vector<16x16xf32>
    %773 = math.exp %772 : vector<16x16xf32>
    %cst_316 = arith.constant dense<0.000000e+00> : vector<16xf32>
    %774 = vector.multi_reduction <add>, %773, %cst_316 [1] : vector<16x16xf32> to vector<16xf32>
    %775 = vector.shape_cast %774 : vector<16xf32> to vector<16x1xf32>
    %776 = tpu.reciprocal %775 {approx = true} : vector<16x1xf32> -> vector<16x1xf32>
    %777 = vector.broadcast %776 : vector<16x1xf32> to vector<16x16xf32>
    %778 = arith.mulf %773, %777 : vector<16x16xf32>
    %779 = arith.truncf %778 : vector<16x16xf32> to vector<16x16xbf16>
    %cst_317 = arith.constant dense<0.000000e+00> : vector<16x16xf32>
    %780 = tpu.matmul %779, %766, %cst_317 {dimension_numbers = #tpu.dot_dimension_numbers<[1], [0], [0], [1], [0, 0, 1, 1], [], []>} : vector<16x16xbf16>, vector<16x16xbf16>, vector<16x16xf32> -> vector<16x16xf32>
    %781 = tpu.concatenate %720, %740, %760, %780 in 1 : vector<16x16xf32>, vector<16x16xf32>, vector<16x16xf32>, vector<16x16xf32> -> vector<16x64xf32>
    %782 = arith.truncf %781 : vector<16x64xf32> to vector<16x64xbf16>
    %cst_318 = arith.constant dense<0.000000e+00> : vector<16x64xf32>
    %783 = tpu.matmul %782, %666, %cst_318 {dimension_numbers = #tpu.dot_dimension_numbers<[1], [0], [0], [1], [0, 0, 1, 1], [], []>} : vector<16x64xbf16>, vector<64x64xbf16>, vector<16x64xf32> -> vector<16x64xf32>
    %784 = arith.addf %656, %783 : vector<16x64xf32>
    %785 = vector.broadcast %668 : vector<1x64xf32> to vector<16x64xf32>
    %786 = arith.addf %784, %785 : vector<16x64xf32>
    %787 = vector.extract_strided_slice %786 {offsets = [0, 0], sizes = [1, 64], strides = [1, 1]} : vector<16x64xf32> to vector<1x64xf32>
    %c0_319 = arith.constant 0 : index
    %c0_320 = arith.constant 0 : index
    %c0_321 = arith.constant 0 : index
    %788 = vector.load %arg12[%c0_319, %c0_320, %c0_321] : memref<1x1x64xf32, #tpu.memory_space<vmem>>, vector<1x1x64xf32>
    %789 = vector.shape_cast %788 : vector<1x1x64xf32> to vector<1x64xf32>
    %790 = vector.shape_cast %787 : vector<1x64xf32> to vector<1x1x64xf32>
    tpu.vector_store %arg12[%c0_319, %c0_320, %c0_321], %790 {strides = array<i32>} : memref<1x1x64xf32, #tpu.memory_space<vmem>>, vector<1x1x64xf32>,
    return
  }
  func.func @transform_0(%arg0: i32) -> (i32, i32, i32) {
    %c0_i32 = arith.constant 0 : i32
    %c0_i32_0 = arith.constant 0 : i32
    %c0_i32_1 = arith.constant 0 : i32
    return %arg0, %c0_i32, %c0_i32_0 : i32, i32, i32
  }
  func.func @transform_1(%arg0: i32) -> (i32, i32) {
    %c0_i32 = arith.constant 0 : i32
    %c0_i32_0 = arith.constant 0 : i32
    %c0_i32_1 = arith.constant 0 : i32
    return %c0_i32, %c0_i32_0 : i32, i32
  }
  func.func @transform_2(%arg0: i32) -> (i32, i32) {
    %c0_i32 = arith.constant 0 : i32
    %c0_i32_0 = arith.constant 0 : i32
    %c0_i32_1 = arith.constant 0 : i32
    return %c0_i32, %c0_i32_0 : i32, i32
  }
  func.func @transform_3(%arg0: i32) -> (i32, i32, i32) {
    %c0_i32 = arith.constant 0 : i32
    %c0_i32_0 = arith.constant 0 : i32
    %c0_i32_1 = arith.constant 0 : i32
    %c0_i32_2 = arith.constant 0 : i32
    return %c0_i32, %c0_i32_0, %c0_i32_1 : i32, i32, i32
  }
  func.func @transform_4(%arg0: i32) -> (i32, i32, i32) {
    %c0_i32 = arith.constant 0 : i32
    %c0_i32_0 = arith.constant 0 : i32
    %c0_i32_1 = arith.constant 0 : i32
    %c0_i32_2 = arith.constant 0 : i32
    return %c0_i32, %c0_i32_0, %c0_i32_1 : i32, i32, i32
  }
  func.func @transform_5(%arg0: i32) -> (i32, i32) {
    %c0_i32 = arith.constant 0 : i32
    %c0_i32_0 = arith.constant 0 : i32
    %c0_i32_1 = arith.constant 0 : i32
    return %c0_i32, %c0_i32_0 : i32, i32
  }
  func.func @transform_6(%arg0: i32) -> (i32, i32) {
    %c0_i32 = arith.constant 0 : i32
    %c0_i32_0 = arith.constant 0 : i32
    %c0_i32_1 = arith.constant 0 : i32
    return %c0_i32, %c0_i32_0 : i32, i32
  }
  func.func @transform_7(%arg0: i32) -> (i32, i32, i32) {
    %c0_i32 = arith.constant 0 : i32
    %c0_i32_0 = arith.constant 0 : i32
    %c0_i32_1 = arith.constant 0 : i32
    %c0_i32_2 = arith.constant 0 : i32
    return %c0_i32, %c0_i32_0, %c0_i32_1 : i32, i32, i32
  }
  func.func @transform_8(%arg0: i32) -> (i32, i32, i32) {
    %c0_i32 = arith.constant 0 : i32
    %c0_i32_0 = arith.constant 0 : i32
    %c0_i32_1 = arith.constant 0 : i32
    %c0_i32_2 = arith.constant 0 : i32
    return %c0_i32, %c0_i32_0, %c0_i32_1 : i32, i32, i32
  }
  func.func @transform_9(%arg0: i32) -> (i32, i32, i32) {
    %c0_i32 = arith.constant 0 : i32
    %c0_i32_0 = arith.constant 0 : i32
    %c0_i32_1 = arith.constant 0 : i32
    %c0_i32_2 = arith.constant 0 : i32
    return %c0_i32, %c0_i32_0, %c0_i32_1 : i32, i32, i32
  }
  func.func @transform_10(%arg0: i32) -> (i32, i32, i32) {
    %c0_i32 = arith.constant 0 : i32
    %c0_i32_0 = arith.constant 0 : i32
    %c0_i32_1 = arith.constant 0 : i32
    %c0_i32_2 = arith.constant 0 : i32
    return %c0_i32, %c0_i32_0, %c0_i32_1 : i32, i32, i32
  }
  func.func @transform_11(%arg0: i32) -> (i32, i32, i32) {
    %c0_i32 = arith.constant 0 : i32
    %c0_i32_0 = arith.constant 0 : i32
    %c0_i32_1 = arith.constant 0 : i32
    return %arg0, %c0_i32, %c0_i32_0 : i32, i32, i32
  }
}

</mosaic_0001>

<bundles_post_ra>
// kernel: tpu_custom_call.1
= control target key start
LH: loop header
LB: loop body
LE: loop exit
PB: predicated region body
PF: predicated region fallthrough
CT: control target
= control target key end

     0   :  { %s10788_s0 = inlined_call_operand.hbm [shape: bf16[2,16,128], index: 0, kind: input, shape index: {}]   ;;  %s10789_s1 = inlined_call_operand.vmem [shape: bf16[128,64], index: 1, kind: input, shape index: {}]   ;;  %s10790_s2 = inlined_call_operand.vmem [shape: f32[1,64], index: 2, kind: input, shape index: {}]   ;;  %s10791_s3 = inlined_call_operand.hbm [shape: f32[6,1,64], index: 3, kind: input, shape index: {}]   ;;  %s10792_s4 = inlined_call_operand.hbm [shape: f32[6,1,64], index: 4, kind: input, shape index: {}]   ;;  %s10793_s5 = inlined_call_operand.vmem [shape: f32[64,32], index: 5, kind: input, shape index: {}]   ;;  %s10794_s6 = inlined_call_operand.vmem [shape: f32[32,64], index: 6, kind: input, shape index: {}]   ;;  %s10795_s7 = inlined_call_operand.hbm [shape: bf16[6,64,192], index: 7, kind: input, shape index: {}]   ;;  %s10796_s8 = inlined_call_operand.hbm [shape: f32[6,1,192], index: 8, kind: input, shape index: {}]   ;;  %s10797_s9 = inlined_call_operand.vmem [shape: bf16[6,64,64], index: 9, kind: input, shape index: {}]   ;;  %s10798_s10 = inlined_call_operand.hbm [shape: f32[6,1,64], index: 10, kind: input, shape index: {}]   ;;  %s10799_s11 = inlined_call_operand.hbm [shape: f32[2,1,64], index: 11, kind: output, shape index: {}]  }
   0x1   :  { %10823 = sst [smem:[#allocation19_spill]] %s10788_s0 }
   0x2   :  { %10824 = sst [smem:[#allocation20_spill]] %s10789_s1 }
   0x3   :  { %10825 = sst [smem:[#allocation21_spill]] %s10791_s3 }
   0x4   :  { %10826 = sst [smem:[#allocation22_spill]] %s10794_s6 }
   0x5   :  { %10827 = sst [smem:[#allocation23_spill]] %s10797_s9 }
   0x6   :  { %10828 = sst [smem:[#allocation24_spill]] %s10799_s11 }
   0x7   :  { %16 = vsyncpa [#allocation3], 0 }
   0x8   :  { %18 = vsyncpa [#allocation3 + $0x1], 0 }
   0x9   :  { %19 = vsyncpa [#allocation6], 0 }
   0xa   :  { %20 = vsyncpa [#allocation9], 0 }
   0xb   :  { %21 = vsyncpa [#allocation12], 0 }
   0xc   :  { %22 = vsyncpa [#allocation4], 0 }
   0xd   :  { %24 = vsyncpa [#allocation4 + $0x1], 0  ;;  %s9444_s17 = smov 0   ;;  %s9446_s18 = smov 0  }
   0xe   :  { %s9448_s19 = smov 0   ;;  %s9450_s20 = smov 0  }
   0xf LB: > { %s9358_s21 = smov [#allocation5]   ;;  %s9465_s23 = sadd.s32 4294967295, %s9356_s20   ;;  %s9356_s20 = sphi %s9450_s20, %s10865_s20   ;;  %s9352_s19 = sphi %s9448_s19, %s10864_s19   ;;  %s9348_s18 = sphi %s9446_s18, %s10863_s18   ;;  %s9344_s17 = sphi %s9444_s17, %s10862_s17  }
  0x10   : > { %s315_s22 = sshll.u32 %s9358_s21, 4  ;;  %p7089_p0 = scmp.ge.s32.totalorder %s9356_s20, 1  ;;  %s9470_s22 = int_to_ptr.vmem [resolvable:$true] %s315_s22 }
  0x11   : > { %p10805_p1 = scmp.eq.s32.totalorder %s9465_s23, 0  ;;  %p297_p2 = scmp.lt.s32.totalorder %s9356_s20, 3 }
  0x12   : > { %s9359_s25 = smov [#allocation8]   ;;  %s9360_s28 = smov [#allocation7]  }
  0x13   : > { %p9472_p3 = pnand %p7089_p0, %p297_p2  ;;  %s347_s26 = sshll.u32 %s9359_s25, 4  ;;  %s9485_s26 = int_to_ptr.vmem [resolvable:$true] %s347_s26 }
  0x14   : > { %s9487_s29 = sshll.u32 %s9360_s28, 4  ;;  %s10831_s3 = sld [smem:[#allocation21_spill]]  ;;  %s329_s29 = int_to_ptr.vmem [resolvable:$true] %s9487_s29 }
  0x15   : > { %s10829_s24 = scalar_select %p9472_p3, 1, 0 }
  0x16   : > { %p8617_p5 = pneg %p9472_p3 }
  0x18   : > { %p9481_p6 = pnand %p8617_p5, %p10805_p1 }
  0x1a   : > { %s9108_s13 = scalar_lea.hbm %s10831_s3, 96  ;;  %p9497_p8 = pneg %p9481_p6 }
  0x1b   : > { %p9109_p7 = scmp.ne.s32.totalorder %s10831_s3, %s9108_s13  ;;  %p9115_p11 = scmp.lt.u32.totalorder %s9108_s13, %s10831_s3 }
  0x1d   : > { %p9111_p9 = pnand %p9497_p8, %p9109_p7 }
  0x1f   : > { %p9112_p10 = pneg %p9111_p9 }
  0x21   : > { %p9117_p12 = pnand %p9115_p11, %p9112_p10 }
  0x23   : > { %9120 = shalt.err (!%p9117_p12)
}
  0x24   : > { %s9121_s28 = scalar_lea.vmem %s9470_s22, 96  ;;  %p9129_p5 = scmp.lt.s32.totalorder %s9470_s22, %s9470_s22 }
  0x25   : > { %p9122_p13 = scmp.ne.s32.totalorder %s9470_s22, %s9121_s28  ;;  %p9130_p4 = scmp.lt.s32.totalorder %s9121_s28, %s9121_s28 }
  0x27   : > { %p9124_p0 = pnand %p9122_p13, %p9497_p8  ;;  %p9131_p7 = por %p9130_p4, %p9129_p5 }
  0x29   : > { %p9125_p2 = pneg %p9124_p0 }
  0x2b   : > { %p9132_p9 = pnand %p9131_p7, %p9125_p2 }
  0x2d   : > { %9135 = shalt.err (!%p9132_p9)
}
  0x2e   : > { %s10803_s30 = smov 16   ;;  %s10807_s12 = smov 1  }
  0x2f   : > { %8620 = dma.hbm_to_vmem [thread:$0]  (!%p9481_p6), %s10831_s3, 96, %s9470_s22, [#allocation6], %s10803_s30, %s10803_s30, %s10807_s12  }
  0x30   : > { %s9136_s25 = scalar_lea.hbm %s10795_s7, 6144 }
  0x31   : > { %p9137_p4 = scmp.ne.s32.totalorder %s10795_s7, %s9136_s25  ;;  %p9143_p12 = scmp.lt.u32.totalorder %s9136_s25, %s10795_s7 }
  0x33   : > { %p9139_p10 = pnand %p9137_p4, %p9497_p8 }
  0x35   : > { %p9140_p11 = pneg %p9139_p10 }
  0x37   : > { %p9145_p13 = pnand %p9143_p12, %p9140_p11 }
  0x39   : > { %9148 = shalt.err (!%p9145_p13)
}
  0x3a   : > { %s9149_s22 = scalar_lea.vmem %s9485_s26, 6144  ;;  %p9157_p7 = scmp.lt.s32.totalorder %s9485_s26, %s9485_s26 }
  0x3b   : > { %p9150_p0 = scmp.ne.s32.totalorder %s9485_s26, %s9149_s22  ;;  %p9158_p9 = scmp.lt.s32.totalorder %s9149_s22, %s9149_s22 }
  0x3d   : > { %p9152_p2 = pnand %p9150_p0, %p9497_p8  ;;  %p9159_p4 = por %p9158_p9, %p9157_p7 }
  0x3f   : > { %p9153_p5 = pneg %p9152_p2 }
  0x41   : > { %p9160_p10 = pnand %p9159_p4, %p9153_p5 }
  0x43   : > { %9163 = shalt.err (!%p9160_p10)
}
  0x44   : > { %s9363_s11 = smov 128   ;;  %s9364_s6 = smov 8  }
  0x45   : > { %8626 = dma.hbm_to_vmem [thread:$0]  (!%p9481_p6), %s10795_s7, 6144, %s9485_s26, [#allocation9], %s9363_s11, %s9363_s11, %s9364_s6  }
  0x46   : > { %s9164_s21 = scalar_lea.hbm %s10792_s4, 96 }
  0x47   : > { %p9165_p11 = scmp.ne.s32.totalorder %s10792_s4, %s9164_s21  ;;  %p9171_p0 = scmp.lt.u32.totalorder %s9164_s21, %s10792_s4 }
  0x49   : > { %p9167_p12 = pnand %p9165_p11, %p9497_p8 }
  0x4b   : > { %p9168_p13 = pneg %p9167_p12 }
  0x4d   : > { %p9173_p2 = pnand %p9171_p0, %p9168_p13 }
  0x4f   : > { %9176 = shalt.err (!%p9173_p2)
}
  0x50   : > { %s9177_s9 = scalar_lea.vmem %s329_s29, 96  ;;  %p9185_p4 = scmp.lt.s32.totalorder %s329_s29, %s329_s29 }
  0x51   : > { %p9178_p5 = scmp.ne.s32.totalorder %s329_s29, %s9177_s9  ;;  %p9186_p10 = scmp.lt.s32.totalorder %s9177_s9, %s9177_s9 }
  0x53   : > { %p9180_p7 = pnand %p9178_p5, %p9497_p8  ;;  %p9187_p1 = por %p9186_p10, %p9185_p4 }
  0x55   : > { %p9181_p9 = pneg %p9180_p7 }
  0x57   : > { %p9188_p3 = pnand %p9187_p1, %p9181_p9 }
  0x59   : > { %9191 = shalt.err (!%p9188_p3)
}
  0x5a   : > { %s10833_s26 = smov 16   ;;  %s9365_s6 = smov [#allocation10]  }
  0x5b   : > { %8623 = dma.hbm_to_vmem [thread:$0]  (!%p9481_p6), %s10792_s4, 96, %s329_s29, [#allocation6], %s10833_s26, %s10833_s26, %s10807_s12  }
  0x5c   : > { %s360_s13 = sshll.u32 %s9365_s6, 4  ;;  %s9192_s21 = scalar_lea.hbm %s10796_s8, 192  ;;  %s361_s13 = int_to_ptr.vmem [resolvable:$true] %s360_s13 }
  0x5d   : > { %p9193_p1 = scmp.ne.s32.totalorder %s10796_s8, %s9192_s21  ;;  %p9199_p12 = scmp.lt.u32.totalorder %s9192_s21, %s10796_s8 }
  0x5f   : > { %p9195_p3 = pnand %p9193_p1, %p9497_p8 }
  0x61   : > { %p9196_p11 = pneg %p9195_p3 }
  0x63   : > { %p9201_p13 = pnand %p9199_p12, %p9196_p11 }
  0x65   : > { %9204 = shalt.err (!%p9201_p13)
}
  0x66   : > { %s9205_s29 = scalar_lea.vmem %s361_s13, 192  ;;  %p9213_p7 = scmp.lt.s32.totalorder %s361_s13, %s361_s13 }
  0x67   : > { %p9206_p0 = scmp.ne.s32.totalorder %s361_s13, %s9205_s29  ;;  %p9214_p9 = scmp.lt.s32.totalorder %s9205_s29, %s9205_s29 }
  0x69   : > { %p9208_p2 = pnand %p9206_p0, %p9497_p8  ;;  %p9215_p4 = por %p9214_p9, %p9213_p7 }
  0x6b   : > { %p9209_p5 = pneg %p9208_p2 }
  0x6d   : > { %p9216_p10 = pnand %p9215_p4, %p9209_p5 }
  0x6f   : > { %9219 = shalt.err (!%p9216_p10)
}
  0x70   : > { %s9366_s30 = smov 32   ;;  %s9367_s11 = smov 2  }
  0x71   : > { %8629 = dma.hbm_to_vmem [thread:$0]  (!%p9481_p6), %s10796_s8, 192, %s361_s13, [#allocation9], %s9366_s30, %s9366_s30, %s9367_s11  }
  0x72   : > { %s9368_s15 = smov [#allocation11]   ;;  %s9220_s22 = scalar_lea.hbm %s10798_s10, 96 }
  0x73   : > { %s376_s21 = sshll.u32 %s9368_s15, 4  ;;  %p9221_p1 = scmp.ne.s32.totalorder %s10798_s10, %s9220_s22  ;;  %s377_s21 = int_to_ptr.vmem [resolvable:$true] %s376_s21 }
  0x74   : > { %p9227_p12 = scmp.lt.u32.totalorder %s9220_s22, %s10798_s10 }
  0x75   : > { %p9223_p3 = pnand %p9221_p1, %p9497_p8 }
  0x77   : > { %p9224_p11 = pneg %p9223_p3 }
  0x79   : > { %p9229_p13 = pnand %p9227_p12, %p9224_p11 }
  0x7b   : > { %9232 = shalt.err (!%p9229_p13)
}
  0x7c   : > { %s9233_s13 = scalar_lea.vmem %s377_s21, 96  ;;  %p9241_p7 = scmp.lt.s32.totalorder %s377_s21, %s377_s21 }
  0x7d   : > { %p9234_p0 = scmp.ne.s32.totalorder %s377_s21, %s9233_s13  ;;  %p9242_p9 = scmp.lt.s32.totalorder %s9233_s13, %s9233_s13 }
  0x7f   : > { %p9236_p2 = pnand %p9234_p0, %p9497_p8  ;;  %p9243_p4 = por %p9242_p9, %p9241_p7 }
  0x81   : > { %p9237_p5 = pneg %p9236_p2 }
  0x83   : > { %p9244_p10 = pnand %p9243_p4, %p9237_p5 }
  0x85   : > { %9247 = shalt.err (!%p9244_p10)
}
  0x86   : > { %s10834_s30 = smov 1   ;;  %s7088_s27 = sadd.s32 4294967294, %s9356_s20  }
  0x87   : > { %8632 = dma.hbm_to_vmem [thread:$0]  (!%p9481_p6), %s10798_s10, 96, %s377_s21, [#allocation12], %s10833_s26, %s10833_s26, %s10834_s30  }
  0x88   : > { %s9607_s16 = sadd.s32 1, %s9356_s20   ;;  %s37_s11 = sadd.s32 1, %s9352_s19 }
  0x89   : > { %s34_s6 = ssub.s32 %s9356_s20, %s9607_s16  ;;  %p44_p8 = scmp.ne.s32.totalorder %s9352_s19, %s9348_s18 }
  0x8a   : > { %p35_p1 = scmp.eq.s32.totalorder %s34_s6, 0  ;;  %p45_p3 = scmp.eq.s32.totalorder %s9356_s20, 0 }
  0x8b   : > { %p50_p11 = scmp.ne.s32.totalorder %s9348_s18, %s9344_s17  ;;  %p284_p12 = scmp.eq.s32.totalorder %s9465_s23, 1 }
  0x8c   : > { %s9619_s14 = scalar_select %p35_p1, %s9352_s19, %s37_s11  }
  0x8d   : > { %p46_p13 = por %p45_p3, %p44_p8  ;;  %p10835_p0 = scmp.eq.s32.totalorder %s9465_s23, 0 }
  0x8e   : > { %p9627_p6 = por %p284_p12, %p44_p8  ;;  %p290_p5 = scmp.eq.s32.totalorder %s7088_s27, 1 }
  0x8f   : > { %p9623_p2 = por %p10835_p0, %p50_p11  ;;  %p8646_p7 = scmp.lt.s32.totalorder %s9356_s20, 2 }
  0x90   : > { %s10837_s26 = scalar_select %p9627_p6, 1, 0 }
  0x91   : > { %s390_s21 = sand.u32 1, %s9352_s19   ;;  %p9633_p9 = por %p290_p5, %p50_p11 }
  0x92   : > { %s7096_s28 = sshll.u32 %s390_s21, 3  ;;  %s7333_s22 = sshll.u32 %s9356_s20, 7 }
  0x93   : > { %s10838_s25 = scalar_select %p9633_p9, 1, 0 }
  0x94   : > { %s10839_s0 = sld [smem:[#allocation19_spill]]  ;;  %s394_s30 = scalar_lea.vmem [#allocation2], %s7096_s28 }
  0x95   : > { %s401_s3 = sshll.u32 %s394_s30, 4  ;;  %p9643_p4 = pnand %p8646_p7, %p46_p13  ;;  %s9647_s3 = int_to_ptr.vmem [resolvable:$true] %s401_s3 }
  0x96   : > { %s9649_s27 = scalar_lea.sflag [#allocation3], %s390_s21 }
  0x97   : > { %p9250_p8 = pneg %p9643_p4 }
  0x9a   : > { %s9641_s13 = scalar_lea.hbm %s10839_s0, %s7333_s22  ;;  %s9253_s22 = scalar_lea.hbm %s10839_s0, 256 }
  0x9b   : > { %s9248_s11 = scalar_lea.hbm %s9641_s13, 128  ;;  %p9254_p11 = scmp.lt.u32.totalorder %s9641_s13, %s10839_s0 }
  0x9c   : > { %p9249_p10 = scmp.ne.s32.totalorder %s9641_s13, %s9248_s11  ;;  %p9255_p12 = scmp.lt.u32.totalorder %s9253_s22, %s9248_s11 }
  0x9d   : > { %p9257_p0 = scmp.lt.u32.totalorder %s9248_s11, %s9641_s13 }
  0x9e   : > { %p9251_p1 = pnand %p9250_p8, %p9249_p10  ;;  %p9256_p13 = por %p9255_p12, %p9254_p11 }
  0xa0   : > { %p9252_p3 = pneg %p9251_p1  ;;  %p9258_p5 = por %p9257_p0, %p9256_p13 }
  0xa2   : > { %p9259_p7 = pnand %p9258_p5, %p9252_p3 }
  0xa4   : > { %9262 = shalt.err (!%p9259_p7)
}
  0xa5   : > { %s9263_s21 = scalar_lea.vmem %s9647_s3, 128  ;;  %s9369_s30 = smov [#allocation2]  }
  0xa6   : > { %p9264_p10 = scmp.ne.s32.totalorder %s9647_s3, %s9263_s21  ;;  %s9268_s6 = sshll.u32 %s9369_s30, 4  ;;  %s9269_s6 = int_to_ptr.vmem [resolvable:$false] %s9268_s6 }
  0xa7   : > { %s9270_s28 = scalar_lea.vmem %s9269_s6, 256  ;;  %p9271_p6 = scmp.lt.s32.totalorder %s9647_s3, %s9269_s6 }
  0xa8   : > { %p9266_p1 = pnand %p9264_p10, %p9250_p8  ;;  %p9272_p11 = scmp.lt.s32.totalorder %s9270_s28, %s9263_s21 }
  0xaa   : > { %p9267_p9 = pneg %p9266_p1  ;;  %p9273_p12 = por %p9272_p11, %p9271_p6 }
  0xac   : > { %p9274_p13 = pnand %p9273_p12, %p9267_p9 }
  0xae   : > { %9277 = shalt.err (!%p9274_p13)
}
  0xaf   : > { %s9370_s11 = smov 64   ;;  %s9371_s22 = smov 4  }
  0xb0   : > { %8636 = dma.hbm_to_vmem [thread:$0]  (!%p9643_p4), %s9641_s13, 128, %s9647_s3, %s9649_s27, %s9370_s11, %s9370_s11, %s9371_s22  }
  0xb1   : > { %p10841_p8 = scmp.ne.s32.totalorder %s10829_s24, 0 }
  0xb2   : > { %s9680_s9 = sand.u32 (!%p10841_p8), 1, %s9348_s18  }
  0xb3   : > { %413 = sbr.rel (%p10841_p8) target bundleno = 14867 (0x3a13), region = 64  ;;  %s7100_s29 = sshll.u32 (!%p10841_p8), %s9680_s9, 3 }
  0xb4   : > { %s416_s21 = scalar_lea.sflag (!%p10841_p8), [#allocation3], %s9680_s9  ;;  %s9684_s30 = scalar_lea.vmem (!%p10841_p8), [#allocation2], %s7100_s29 }
  0xba   : > { %9323 = dma.done.wait (%p9623_p2), %s416_s21, 128  }
  0xbb   : > { %9325 = vsyncadd (%p9623_p2), %s416_s21, 4294967168  ;;  %p10842_p6 = scmp.eq.s32.totalorder %s9465_s23, 0 }
  0xbd   : > { %9327 = dma.done.wait (%p10842_p6), [#allocation6], 192   ;;  %p10843_p9 = pmov %p10842_p6 }
  0xbe   : > { %p10844_p4 = pmov %p10842_p6 }
  0xbf   : > { %9329 = vsyncadd (%p10843_p9), [#allocation6], 4294967104 }
  0xc0   : > { %9331 = dma.done.wait (%p10844_p4), [#allocation9], 6336   ;;  %p10845_p3 = pmov %p10844_p4 }
  0xc2   : > { %9333 = vsyncadd (%p10845_p3), [#allocation9], 4294960960  ;;  %p10846_p0 = pmov %p10845_p3 }
  0xc4   : > { %9335 = dma.done.wait (%p10846_p0), [#allocation12], 96   ;;  %p10847_p5 = pmov %p10846_p0 }
  0xc5   : > { %v9372_v0 = vmov 0.0   ;;  %vm9373_vm0 = vmmov 0   ;;  %s10848_s1 = sld [smem:[#allocation20_spill]]  ;;  %v8807_v9 = vld [vmem:[%s9684_s30] sm:$0xff]   ;;  %v9374_v13 = vmov 0.0|0.0   ;;  %v631_v14 = vld [vmem:[%s10793_s5 + $0x10] sm:$0xff]  ;;  %v788_v48 = vlaneseq }
  0xc6   : > { %9337 = vsyncadd (%p10847_p5), [#allocation12], 4294967200  ;;  %7637 = vmatprep.subr.bf16.mxu0 %v9372_v0  ;;  %7653 = vmatprep.mubr.msk.bf16.mxu0 %vm9373_vm0, %v9372_v0  ;;  %v629_v10 = vld [vmem:[%s10793_s5] sm:$0xff]  ;;  %v630_v11 = vld [vmem:[%s10793_s5 + $0x8] sm:$0xff]  ;;  %vm618_vm1 = vcmask 523264   ;;  %s10849_s29 = sld [smem:[#allocation22_spill]] }
  0xc7   : > { %7673 = vmatprep.mubr.msk.f32.mxu1 %vm9373_vm0, %v9372_v0  ;;  %v9745_v12 = vpack.c.bf16 %v630_v11, %v629_v10  ;;  %8377 = vmatprep.subr.bf16.mxu1 %v9374_v13  ;;  %v632_v15 = vld [vmem:[%s10793_s5 + $0x18] sm:$0xff]  ;;  %v633_v17 = vld [vmem:[%s10793_s5 + $0x20] sm:$0xff]  ;;  %v634_v18 = vld [vmem:[%s10793_s5 + $0x28] sm:$0xff]  ;;  %vm714_vm2 = vcmask 261120   ;;  %v9825_v49 = vshrl.u32 %v788_v48, 7  ;;  %s10813_s27 = smov 112  }
  0xc8   : > { %v9756_v16 = vpack.c.bf16 %v632_v15, %v631_v14  ;;  %v635_v19 = vld [vmem:[%s10793_s5 + $0x30] sm:$0xff]  ;;  %v9769_v20 = vpack.c.bf16 %v634_v18, %v633_v17  ;;  %v636_v21 = vld [vmem:[%s10793_s5 + $0x38] sm:$0xff]  ;;  %v7106_v23 = vld [vmem:[%s10790_s2] ss:$0 sm:$0xff]  ;;  %v9375_v18 = vmov 0   ;;  %s10815_s6 = smov 64  }
  0xc9   : > { %8379 = vmatpush3.bf16.msra.mxu1 %v9745_v12  ;;  %v9775_v22 = vpack.c.bf16 %v636_v21, %v635_v19  ;;  %v9828_v50 = vsub.s32 0, %v9825_v49  ;;  %v8811_v10 = vld [vmem:[#allocation8 + $0x10] ss:$8 sps:$4 sm:$0xff]   ;;  %v8816_v11 = vld [vmem:[#allocation8 + $0x24] ss:$8 sps:$4 sm:$0xff]   ;;  %s10819_s28 = smov 32  }
  0xca   : > { %8380 = vmatprep.subr.bf16.mxu1 %v9374_v13  ;;  %v8814_v14 = vld [vmem:[#allocation8 + $0x20] ss:$8 sps:$4 sm:$0xff]   ;;  %v8819_v15 = vld [vmem:[#allocation8 + $0x34] ss:$8 sps:$4 sm:$0xff]   ;;  %v8817_v17 = vld [vmem:[#allocation8 + $0x30] ss:$8 sps:$4 sm:$0xff]  }
  0xcb   : > { %v8799_v1 = vld [vmem:[%s10848_s1] sm:$0xff]   ;;  %v8800_v2 = vld [vmem:[%s10848_s1 + $0x8] sm:$0xff]   ;;  %v8801_v3 = vld [vmem:[%s10848_s1 + $0x10] sm:$0xff]   ;;  %s10817_s30 = smov 48   ;;  %s10821_s11 = smov 16   ;;  %vm1078_vm3 = vcmask 130048  }
  0xcc   : > { %7638 = vmatpush3.bf16.msra.mxu0 %v8799_v1  ;;  %v8802_v4 = vld [vmem:[%s10848_s1 + $0x18] sm:$0xff]   ;;  %v8803_v5 = vld [vmem:[%s10848_s1 + $0x20] sm:$0xff]   ;;  %v8804_v6 = vld [vmem:[%s10848_s1 + $0x28] sm:$0xff]   ;;  %s10811_s22 = smov 96   ;;  %s10809_s21 = smov 80   ;;  %vm1585_vm4 = vcmask 392192  }
  0xcd   : > { %7639 = vmatprep.subr.bf16.mxu0 %v9372_v0  ;;  %v8805_v7 = vld [vmem:[%s10848_s1 + $0x30] sm:$0xff]   ;;  %v8806_v8 = vld [vmem:[%s10848_s1 + $0x38] sm:$0xff]   ;;  %8382 = vmatpush3.bf16.msra.mxu1 %v9756_v16  ;;  %v710_v38 = vld [vmem:[%s10849_s29] sm:$0xff]  ;;  %s10850_s13 = sld [smem:[#allocation23_spill]]  ;;  %s10855_s24 = smov 32   ;;  %vm6959_vm5 = vcmask 516096  }
  0xce   : > { %8383 = vmatprep.subr.bf16.mxu1 %v9374_v13  ;;  %v711_v39 = vld [vmem:[%s10849_s29 + $0x8] sm:$0xff]  ;;  %v712_v43 = vld [vmem:[%s10849_s29 + $0x10] sm:$0xff]  ;;  %v713_v44 = vld [vmem:[%s10849_s29 + $0x18] sm:$0xff]  ;;  %s10858_s1 = sld [smem:[#allocation24_spill]]  ;;  %p10859_p7 = scmp.ne.s32.totalorder %s10837_s26, 0 }
  0xcf   : > { %v9797_v41 = vpack.c.bf16 %v711_v39, %v710_v38  ;;  %v9807_v45 = vpack.c.bf16 %v713_v44, %v712_v43  ;;  %v9852_v38 = vsub.s32 1, %v9825_v49 }
  0xd0   : > { %7640 = vmatpush3.bf16.msra.mxu0 %v8800_v2 }
  0xd1   : > { %7641 = vmatprep.subr.bf16.mxu0 %v9372_v0  ;;  %8385 = vmatpush3.bf16.msra.mxu1 %v9769_v20 }
  0xd2   : > { %8386 = vmatprep.subr.bf16.mxu1 %v9374_v13 }
  0xd4   : > { %7642 = vmatpush3.bf16.msra.mxu0 %v8801_v3 }
  0xd5   : > { %7643 = vmatprep.subr.bf16.mxu0 %v9372_v0  ;;  %8388 = vmatpush3.bf16.msra.mxu1 %v9775_v22 }
  0xd6   : > { %8389 = vmatprep.subr.bf16.mxu1 %v9374_v13 }
  0xd8   : > { %7644 = vmatpush3.bf16.msra.mxu0 %v8802_v4 }
  0xd9   : > { %7645 = vmatprep.subr.bf16.mxu0 %v9372_v0 }
  0xdc   : > { %7646 = vmatpush3.bf16.msra.mxu0 %v8803_v5 }
  0xdd   : > { %7647 = vmatprep.subr.bf16.mxu0 %v9372_v0 }
  0xe0   : > { %7648 = vmatpush3.bf16.msra.mxu0 %v8804_v6 }
  0xe1   : > { %7649 = vmatprep.subr.bf16.mxu0 %v9372_v0 }
  0xe4   : > { %7650 = vmatpush3.bf16.msra.mxu0 %v8805_v7  ;;  %v8810_v7 = vld [vmem:[#allocation8 + $0x4] ss:$8 sps:$4 sm:$0xff]  }
  0xe5   : > { %7651 = vmatprep.subr.bf16.mxu0 %v9372_v0 }
  0xe8   : > { %7652 = vmatpush3.bf16.msra.mxu0 %v8806_v8  ;;  %v8808_v8 = vld [vmem:[#allocation8] ss:$8 sps:$4 sm:$0xff]  }
  0xe9   : > { %1030 = vmatprep.subr.bf16.mxu0 %v8810_v7 }
  0xeb   : > { %7654 = vmatmul.mubr.bf16.vlgmr.msra.gmra.mrb[0].mxu0 %v8807_v9  ;;  %v8813_v9 = vld [vmem:[#allocation8 + $0x14] ss:$8 sps:$4 sm:$0xff]  }
  0xec   : > { %1031 = vmatpush1.bf16.msra.mxu0 %v8808_v8  ;;  %1062 = vmatprep.mubr.bf16.mxu0 %v9375_v18 }
  0xed   : > { %1032 = vmatprep.subr.bf16.mxu0 %v8813_v9 }
  0xf0   : > { %1033 = vmatpush1.bf16.msra.mxu0 %v8811_v10 }
  0xf1   : > { %1034 = vmatprep.subr.bf16.mxu0 %v8816_v11 }
  0xf4   : > { %1035 = vmatpush1.bf16.msra.mxu0 %v8814_v14 }
  0xf5   : > { %1036 = vmatprep.subr.bf16.mxu0 %v8819_v15 }
  0xf8   : > { %1037 = vmatpush1.bf16.msra.mxu0 %v8817_v17 }
  0xf9   : > { %7729 = vmatprep.subr.bf16.mxu0 %v9372_v0 }
 0x1be   : > { %v591_v24 = vpop.f32.mrb[0].mxu0 }
 0x1bf   : > { %v9783_v25 = vadd.f32 %v7106_v23, %v591_v24  ;;  %v7655_v26 = vpop.f32.mrb[1].mxu0 }
 0x1c0   : > { %v594_v27 = vpop.f32.mrb[2].mxu0 }
 0x1c1   : > { %v9785_v28 = vadd.f32 %v7106_v23, %v594_v27  ;;  %v7656_v29 = vpop.f32.mrb[3].mxu0  ;;  %v619_v30 = vsel %vm618_vm1, %v9783_v25, 0.0  ;;  %v7120_v27 = vld [vmem:[#allocation5] ss:$0 sm:$0xff] }
 0x1c3   : > { %v620_v31 = vsel %vm618_vm1, %v9785_v28, 0.0 }
 0x1c4   : > { %v621_v32 = vadd.f32 %v620_v31, %v619_v30  ;;  %v7121_v31 = vld [vmem:[#allocation7] ss:$0 sm:$0xff] }
 0x1c6   : > { %v622_v33 = vrot.slane %v621_v32, 4 }
 0x1c8   : > { %v623_v34 = vadd.f32 %v622_v33, %v621_v32 }
 0x1ca   : > { %v624_v35 = vrot.slane %v623_v34, 2 }
 0x1cc   : > { %v625_v36 = vadd.f32 %v624_v35, %v623_v34 }
 0x1ce   : > { %v626_v37 = vrot.slane %v625_v36, 1 }
 0x1d0   : > { %v627_v40 = vadd.f32 %v626_v37, %v625_v36  ;;  %v608_v37 = vld [vmem:[#allocation10] sm:$0x3] }
 0x1d1   : > { %v980_v39 = vrot.slane %v608_v37, %v9828_v50 }
 0x1d2   : > { %v628_v42 = vmul.f32 0.0625, %v627_v40 }
 0x1d4   : > { %7674 = vmatmul.mubr.msk.f32.vlgmr.msra.gmra.mrb[0].mxu1 %vm618_vm1, %v628_v42  ;;  %v984_v42 = vrot.slane %v608_v37, %v9852_v38 }
 0x1d5   : > { %8391 = vmatpush3.bf16.msra.mxu1 %v9797_v41  ;;  %7684 = vmatprep.mubr.msk.f32.mxu1 %vm9373_vm0, %v9372_v0 }
 0x1d6   : > { %8392 = vmatprep.subr.bf16.mxu1 %v9374_v13 }
 0x1d9   : > { %8394 = vmatpush3.bf16.msra.mxu1 %v9807_v45 }
 0x1da   : > { %8395 = vmatprep.subr.bf16.mxu1 %v9374_v13 }
 0x2a7   : > { %v706_v46 = vpop.f32.mrb[0].mxu1 }
 0x2a8   : > { %v7675_v47 = vpop.f32.mrb[1].mxu1  ;;  %7685 = vmatmul.mubr.msk.f32.vlgmr.msra.gmra.mrb[2].mxu1 %vm714_vm2, %v706_v46 }
 0x2a9   : > { %8397 = vmatpush3.bf16.msra.mxu1 %v9745_v12  ;;  %7703 = vmatprep.mubr.msk.f32.mxu1 %vm9373_vm0, %v9372_v0 }
 0x2aa   : > { %8398 = vmatprep.subr.bf16.mxu1 %v9374_v13 }
 0x2ad   : > { %8400 = vmatpush3.bf16.msra.mxu1 %v9756_v16 }
 0x2ae   : > { %8401 = vmatprep.subr.bf16.mxu1 %v9374_v13 }
 0x2b1   : > { %8403 = vmatpush3.bf16.msra.mxu1 %v9769_v20 }
 0x2b2   : > { %8404 = vmatprep.subr.bf16.mxu1 %v9374_v13 }
 0x2b5   : > { %8406 = vmatpush3.bf16.msra.mxu1 %v9775_v22 }
 0x2b6   : > { %8407 = vmatprep.subr.bf16.mxu1 %v9374_v13 }
 0x37b   : > { %v784_v51 = vpop.f32.mrb[2].mxu1 }
 0x37c   : > { %v791_v52 = vrot.slane %v784_v51, %v9828_v50  ;;  %v7686_v53 = vpop.f32.mrb[3].mxu1 }
 0x37e   : > { %v792_v54 = vsub.f32 %v9783_v25, %v791_v52  ;;  %v793_v55 = vsub.f32 %v9785_v28, %v791_v52 }
 0x380   : > { %v794_v56 = vmul.f32 %v792_v54, %v792_v54  ;;  %v795_v57 = vmul.f32 %v793_v55, %v793_v55 }
 0x382   : > { %v796_v58 = vsel %vm618_vm1, %v794_v56, 0.0  ;;  %v797_v59 = vsel %vm618_vm1, %v795_v57, 0.0 }
 0x383   : > { %v798_v60 = vadd.f32 %v797_v59, %v796_v58 }
 0x385   : > { %v799_v61 = vrot.slane %v798_v60, 4 }
 0x387   : > { %v800_v62 = vadd.f32 %v799_v61, %v798_v60 }
 0x389   : > { %v801_v63 = vrot.slane %v800_v62, 2 }
 0x38b   : > { %v802_v1 = vadd.f32 %v801_v63, %v800_v62 }
 0x38d   : > { %v803_v2 = vrot.slane %v802_v1, 1 }
 0x38f   : > { %v804_v3 = vadd.f32 %v803_v2, %v802_v1 }
 0x391   : > { %v805_v4 = vmul.f32 0.0625, %v804_v3 }
 0x393   : > { %7704 = vmatmul.mubr.msk.f32.vlgmr.msra.gmra.mrb[4].mxu1 %vm618_vm1, %v805_v4 }
 0x394   : > { %8409 = vmatpush3.bf16.msra.mxu1 %v9797_v41  ;;  %7714 = vmatprep.mubr.msk.f32.mxu1 %vm9373_vm0, %v9372_v0 }
 0x395   : > { %8410 = vmatprep.subr.bf16.mxu1 %v9374_v13 }
 0x398   : > { %8412 = vmatpush3.bf16.msra.mxu1 %v9807_v45 }
 0x399   : > { %7717 = vmatprep.subr.bf16.mxu1 %v9372_v0 }
 0x466   : > { %v875_v5 = vpop.f32.mrb[4].mxu1 }
 0x467   : > { %v7705_v6 = vpop.f32.mrb[5].mxu1  ;;  %7715 = vmatmul.mubr.msk.f32.vlgmr.msra.gmra.mrb[6].mxu1 %vm714_vm2, %v875_v5 }
 0x468   : > { %7719 = vmatprep.mubr.msk.bf16.mxu1 %vm9373_vm0, %v9372_v0 }
 0x53a   : > { %v948_v19 = vpop.f32.mrb[6].mxu1 }
 0x53b   : > { %v949_v21 = vadd.f32 1e-05, %v948_v19  ;;  %v7716_v23 = vpop.f32.mrb[7].mxu1 }
 0x53d   : > { %8904 = vrsqrt.f32 %v949_v21 }
 0x547   : > { %v8905_v24 = vpop.eup %8904 }
 0x548   : > { %v956_v26 = vrot.slane %v8905_v24, %v9828_v50 }
 0x54a   : > { %v957_v29 = vmul.f32 %v956_v26, %v792_v54  ;;  %v958_v30 = vmul.f32 %v956_v26, %v793_v55 }
 0x54c   : > { %v965_v32 = vmul.f32 %v7120_v27, %v957_v29  ;;  %v966_v33 = vmul.f32 %v7120_v27, %v958_v30 }
 0x54e   : > { %v973_v34 = vadd.f32 %v7121_v31, %v965_v32  ;;  %v974_v35 = vadd.f32 %v7121_v31, %v966_v33 }
 0x550   : > { %v975_v36 = vpack.c.bf16 %v974_v35, %v973_v34 }
 0x552   : > { %7130 = vmatmul.mubr.msk.bf16.vlgmr.msra.gmra.mrb[4].mxu0 %vm618_vm1, %v975_v36 }
 0x553   : > { %7731 = vmatprep.mubr.msk.bf16.mxu0 %vm9373_vm0, %v9372_v0 }
 0x625   : > { %v1064_v40 = vpop.f32.mrb[4].mxu0 }
 0x626   : > { %v1066_v43 = vpop.f32.mrb[5].mxu0  ;;  %v1065_v46 = vadd.f32 %v1064_v40, %v980_v39 }
 0x627   : > { %v1068_v44 = vpop.f32.mrb[6].mxu0  ;;  %v1067_v51 = vadd.f32 %v1066_v43, %v984_v42 }
 0x628   : > { %v1069_v47 = vadd.f32 %v1068_v44, %v980_v39  ;;  %v1070_v48 = vpop.f32.mrb[7].mxu0 }
 0x629   : > { %v1071_v52 = vadd.f32 %v1070_v48, %v984_v42 }
 0x62a   : > { %v1073_v53 = vpack.c.bf16 %v1069_v47, %v1065_v46 }
 0x62b   : > { %v9856_v54 = vpack.c.bf16 %v1071_v52, %v1067_v51 }
 0x62c   : > { %1193 = vrot.lane.b32.xlu1 %v1073_v53, %s10813_s27  ;;  %1076 = vrot.lane.b32.xlu0 %v1073_v53, %s10815_s6 }
 0x630   : > { %1317 = vrot.lane.b32.xlu1 %v1073_v53, %s10819_s28  ;;  %1195 = vrot.lane.b32.xlu0 %v1073_v53, %s10817_s30 }
 0x634   : > { %1438 = vrot.lane.b32.xlu1 %v1073_v53, %s10821_s11  ;;  %1315 = vrot.lane.b32.xlu0 %v1073_v53, %s10811_s22 }
 0x638   : > { %1436 = vrot.lane.b32.xlu0 %v1073_v53, %s10809_s21 }
 0x69e   : > { %v1077_v49 = vpop.permute.xlu0 %1076  ;;  %v1194_v56 = vpop.permute.xlu1 %1193 }
 0x69f   : > { %v1083_v55 = vsel %vm1078_vm3, %v1077_v49, 0 }
 0x6a0   : > { %7718 = vmatpush3.bf16.xpose.msra.mxu1 %v1083_v55 }
 0x6a1   : > { %7723 = vmatprep.subr.bf16.mxu1 %v9372_v0 }
 0x6a2   : > { %v1196_v57 = vpop.permute.xlu0 %1195  ;;  %v1318_v59 = vpop.permute.xlu1 %1317 }
 0x6a3   : > { %v1201_v58 = vsel %vm1078_vm3, %v1196_v57, 0  ;;  %v1323_v60 = vsel %vm1078_vm3, %v1318_v59, 0 }
 0x6a4   : > { %7730 = vmatpush3.bf16.xpose.msra.mxu0 %v1201_v58 }
 0x6a5   : > { %7741 = vmatprep.subr.bf16.mxu0 %v9372_v0 }
 0x6a6   : > { %v1439_v61 = vpop.permute.xlu1 %1438  ;;  %v1316_v62 = vpop.permute.xlu0 %1315 }
 0x6a7   : > { %7720 = vmatmul.mubr.msk.bf16.vlgmr.msra.gmra.mrb[8].mxu1 %vm1078_vm3, %v1073_v53  ;;  %v1444_v63 = vsel %vm1078_vm3, %v1439_v61, 0 }
 0x6a8   : > { %7724 = vmatpush3.bf16.msra.mxu1 %v9856_v54  ;;  %7725 = vmatprep.mubr.msk.bf16.mxu1 %vm9373_vm0, %v9372_v0 }
 0x6a9   : > { %7735 = vmatprep.subr.bf16.mxu1 %v9372_v0 }
 0x6aa   : > { %v1437_v1 = vpop.permute.xlu0 %1436 }
 0x6ab   : > { %7732 = vmatmul.mubr.msk.bf16.vlgmr.msra.gmra.mrb[8].mxu0 %vm1078_vm3, %v1194_v56 }
 0x6ac   : > { %7742 = vmatpush3.bf16.xpose.msra.mxu0 %v1323_v60  ;;  %7743 = vmatprep.mubr.msk.bf16.mxu0 %vm9373_vm0, %v9372_v0 }
 0x6ad   : > { %7753 = vmatprep.subr.bf16.mxu0 %v9372_v0 }
 0x6b3   : > { %7744 = vmatmul.mubr.msk.bf16.vlgmr.msra.gmra.mrb[12].mxu0 %vm1078_vm3, %v1316_v62 }
 0x6b4   : > { %7754 = vmatpush3.bf16.xpose.msra.mxu0 %v1444_v63  ;;  %7755 = vmatprep.mubr.msk.bf16.mxu0 %vm9373_vm0, %v9372_v0 }
 0x6b5   : > { %7765 = vmatprep.subr.bf16.mxu0 %v9372_v0 }
 0x6bb   : > { %7756 = vmatmul.mubr.msk.bf16.vlgmr.msra.gmra.mrb[16].mxu0 %vm1078_vm3, %v1437_v1 }
 0x6bc   : > { %7773 = vmatprep.mubr.msk.bf16.mxu0 %vm9373_vm0, %v9372_v0 }
 0x77a   : > { %v1119_v2 = vpop.f32.mrb[8].mxu1 }
 0x77b   : > { %v7721_v3 = vpop.f32.mrb[9].mxu1  ;;  %v1126_v4 = vsel %vm1078_vm3, %v1119_v2, -inf }
 0x77c   : > { %1127 = vmax.xlane.f32.xlu1 %v1126_v4  ;;  %v1122_v5 = vpop.f32.mrb[10].mxu1 }
 0x77d   : > { %v7722_v6 = vpop.f32.mrb[11].mxu1  ;;  %v1129_v7 = vsel %vm1078_vm3, %v1122_v5, -inf }
 0x77e   : > { %1130 = vmax.xlane.f32.xlu0 %v1129_v7  ;;  %v1237_v8 = vpop.f32.mrb[8].mxu0 }
 0x77f   : > { %v7733_v9 = vpop.f32.mrb[9].mxu0  ;;  %v1244_v14 = vsel %vm1078_vm3, %v1237_v8, -inf }
 0x780   : > { %v1240_v10 = vpop.f32.mrb[10].mxu0 }
 0x781   : > { %v7734_v11 = vpop.f32.mrb[11].mxu0  ;;  %v1247_v15 = vsel %vm1078_vm3, %v1240_v10, -inf }
 0x782   : > { %1245 = vmax.xlane.f32.xlu0 %v1244_v14  ;;  %1248 = vmax.xlane.f32.xlu1 %v1247_v15 }
 0x786   : > { %v1359_v17 = vpop.f32.mrb[12].mxu0 }
 0x787   : > { %v7745_v19 = vpop.f32.mrb[13].mxu0  ;;  %v1366_v21 = vsel %vm1078_vm3, %v1359_v17, -inf }
 0x788   : > { %1367 = vmax.xlane.f32.xlu0 %v1366_v21  ;;  %v1362_v23 = vpop.f32.mrb[14].mxu0 }
 0x789   : > { %v7746_v24 = vpop.f32.mrb[15].mxu0  ;;  %v1369_v26 = vsel %vm1078_vm3, %v1362_v23, -inf }
 0x78a   : > { %1370 = vmax.xlane.f32.xlu1 %v1369_v26 }
 0x78e   : > { %v1480_v27 = vpop.f32.mrb[16].mxu0 }
 0x78f   : > { %v7757_v29 = vpop.f32.mrb[17].mxu0  ;;  %v1487_v30 = vsel %vm1078_vm3, %v1480_v27, -inf }
 0x790   : > { %1488 = vmax.xlane.f32.xlu0 %v1487_v30  ;;  %v1483_v31 = vpop.f32.mrb[18].mxu0 }
 0x791   : > { %v7758_v32 = vpop.f32.mrb[19].mxu0  ;;  %v1490_v33 = vsel %vm1078_vm3, %v1483_v31, -inf }
 0x792   : > { %1491 = vmax.xlane.f32.xlu1 %v1490_v33 }
 0x809   : > { %v1128_v34 = vpop.xlane.xlu1 %1127 }
 0x80a   : > { %v1132_v35 = vsub.f32 %v1119_v2, %v1128_v34 }
 0x80b   : > { %v1131_v36 = vpop.xlane.xlu0 %1130 }
 0x80c   : > { %v1134_v37 = vmul.f32 1.442695, %v1132_v35  ;;  %v1133_v39 = vsub.f32 %v1122_v5, %v1131_v36 }
 0x80e   : > { %8906 = vpow2.f32 %v1134_v37  ;;  %v1136_v40 = vmul.f32 1.442695, %v1133_v39 }
 0x80f   : > { %v1249_v42 = vpop.xlane.xlu1 %1248  ;;  %v1246_v43 = vpop.xlane.xlu0 %1245 }
 0x810   : > { %8908 = vpow2.f32 %v1136_v40  ;;  %v1251_v44 = vsub.f32 %v1240_v10, %v1249_v42  ;;  %v1250_v46 = vsub.f32 %v1237_v8, %v1246_v43 }
 0x812   : > { %v1254_v47 = vmul.f32 1.442695, %v1251_v44  ;;  %v1252_v48 = vmul.f32 1.442695, %v1250_v46 }
 0x814   : > { %8910 = vpow2.f32 %v1254_v47 }
 0x815   : > { %8912 = vpow2.f32 %v1252_v48  ;;  %v1368_v51 = vpop.xlane.xlu0 %1367 }
 0x816   : > { %v1372_v52 = vsub.f32 %v1359_v17, %v1368_v51 }
 0x817   : > { %v1371_v53 = vpop.xlane.xlu1 %1370 }
 0x818   : > { %v8907_v49 = vpop.eup %8906  ;;  %v1374_v55 = vmul.f32 1.442695, %v1372_v52  ;;  %v1373_v56 = vsub.f32 %v1362_v23, %v1371_v53 }
 0x819   : > { %v1138_v57 = vsel %vm1078_vm3, %v8907_v49, 0.0 }
 0x81a   : > { %v8909_v58 = vpop.eup %8908  ;;  %8914 = vpow2.f32 %v1374_v55  ;;  %v1376_v59 = vmul.f32 1.442695, %v1373_v56  ;;  %1139 = vadd.xlane.f32.xlu0 %v1138_v57 }
 0x81b   : > { %v1141_v60 = vsel %vm1078_vm3, %v8909_v58, 0.0 }
 0x81c   : > { %8916 = vpow2.f32 %v1376_v59  ;;  %1142 = vadd.xlane.f32.xlu1 %v1141_v60 }
 0x81d   : > { %v1489_v61 = vpop.xlane.xlu0 %1488 }
 0x81e   : > { %v8911_v62 = vpop.eup %8910  ;;  %v1493_v63 = vsub.f32 %v1480_v27, %v1489_v61 }
 0x81f   : > { %v8913_v1 = vpop.eup %8912  ;;  %v1259_v2 = vsel %vm1078_vm3, %v8911_v62, 0.0  ;;  %v1492_v11 = vpop.xlane.xlu1 %1491 }
 0x820   : > { %v1495_v3 = vmul.f32 1.442695, %v1493_v63  ;;  %1260 = vadd.xlane.f32.xlu1 %v1259_v2  ;;  %v1256_v4 = vsel %vm1078_vm3, %v8913_v1, 0.0  ;;  %v1494_v14 = vsub.f32 %v1483_v31, %v1492_v11 }
 0x821   : > { %1257 = vadd.xlane.f32.xlu0 %v1256_v4 }
 0x822   : > { %8918 = vpow2.f32 %v1495_v3  ;;  %v1497_v15 = vmul.f32 1.442695, %v1494_v14  ;;  %v8820_v3 = vld [vmem:[%s10850_s13] sm:$0xff]  }
 0x823   : > { %7766 = vmatpush3.bf16.msra.mxu0 %v8820_v3 }
 0x824   : > { %v8915_v5 = vpop.eup %8914  ;;  %8920 = vpow2.f32 %v1497_v15  ;;  %7767 = vmatprep.subr.bf16.mxu0 %v9372_v0  ;;  %v8823_v15 = vld [vmem:[%s10850_s13 + $0x18] sm:$0xff]  }
 0x825   : > { %v1378_v6 = vsel %vm1078_vm3, %v8915_v5, 0.0 }
 0x826   : > { %v8917_v7 = vpop.eup %8916  ;;  %1379 = vadd.xlane.f32.xlu0 %v1378_v6  ;;  %v8821_v6 = vld [vmem:[%s10850_s13 + $0x8] sm:$0xff]  }
 0x827   : > { %v1381_v8 = vsel %vm1078_vm3, %v8917_v7, 0.0  ;;  %7768 = vmatpush3.bf16.msra.mxu0 %v8821_v6 }
 0x828   : > { %1382 = vadd.xlane.f32.xlu1 %v1381_v8  ;;  %v8822_v8 = vld [vmem:[%s10850_s13 + $0x10] sm:$0xff]   ;;  %7769 = vmatprep.subr.bf16.mxu0 %v9372_v0 }
 0x82b   : > { %7770 = vmatpush3.bf16.msra.mxu0 %v8822_v8 }
 0x82c   : > { %v8919_v9 = vpop.eup %8918  ;;  %7771 = vmatprep.subr.bf16.mxu0 %v9372_v0 }
 0x82d   : > { %v1499_v10 = vsel %vm1078_vm3, %v8919_v9, 0.0 }
 0x82e   : > { %1500 = vadd.xlane.f32.xlu0 %v1499_v10  ;;  %v8921_v17 = vpop.eup %8920 }
 0x82f   : > { %v1502_v19 = vsel %vm1078_vm3, %v8921_v17, 0.0  ;;  %7772 = vmatpush3.bf16.msra.mxu0 %v8823_v15 }
 0x830   : > { %8425 = vmatprep.subr.bf16.mxu0 %v9374_v13 }
 0x839   : > { %1389 = vrot.lane.b32.xlu1 %v9856_v54, %s10811_s22  ;;  %s10851_s22 = smov 96  }
 0x844   : > { %1268 = vrot.lane.b32.xlu0 %v9856_v54, %s10813_s27 }
 0x85d   : > { %1503 = vadd.xlane.f32.xlu1 %v1502_v19 }
 0x86e   : > { %1510 = vrot.lane.b32.xlu1 %v9856_v54, %s10809_s21  ;;  %s10852_s21 = smov 80  }
 0x8a7   : > { %v1140_v21 = vpop.xlane.xlu0 %1139 }
 0x8a8   : > { %8922 = vrcp.f32 %v1140_v21 }
 0x8a9   : > { %v1143_v23 = vpop.xlane.xlu1 %1142 }
 0x8aa   : > { %8924 = vrcp.f32 %v1143_v23 }
 0x8ad   : > { %v1261_v24 = vpop.xlane.xlu1 %1260 }
 0x8ae   : > { %v1258_v26 = vpop.xlane.xlu0 %1257  ;;  %8926 = vrcp.f32 %v1261_v24 }
 0x8af   : > { %8928 = vrcp.f32 %v1258_v26 }
 0x8b2   : > { %v8923_v27 = vpop.eup %8922 }
 0x8b3   : > { %v1146_v30 = vmul.f32 %v8923_v27, %v8907_v49  ;;  %v1380_v33 = vpop.xlane.xlu0 %1379 }
 0x8b4   : > { %v8925_v29 = vpop.eup %8924 }
 0x8b5   : > { %v1147_v31 = vmul.f32 %v8925_v29, %v8909_v58  ;;  %v1383_v32 = vpop.xlane.xlu1 %1382 }
 0x8b6   : > { %8930 = vrcp.f32 %v1383_v32 }
 0x8b7   : > { %v1148_v34 = vpack.c.bf16 %v1147_v31, %v1146_v30  ;;  %8932 = vrcp.f32 %v1380_v33 }
 0x8b8   : > { %v8927_v35 = vpop.eup %8926 }
 0x8b9   : > { %7726 = vmatmul.mubr.msk.bf16.vlgmr.msra.gmra.mrb[12].mxu1 %vm1078_vm3, %v1148_v34  ;;  %v8929_v54 = vpop.eup %8928  ;;  %v1265_v37 = vmul.f32 %v8927_v35, %v8911_v62  ;;  %v1390_v44 = vpop.permute.xlu1 %1389 }
 0x8ba   : > { %7737 = vmatprep.mubr.msk.bf16.mxu1 %vm9373_vm0, %v9372_v0  ;;  %v1264_v39 = vmul.f32 %v8929_v54, %v8913_v1 }
 0x8bb   : > { %v1501_v36 = vpop.xlane.xlu0 %1500 }
 0x8bc   : > { %v1266_v42 = vpack.c.bf16 %v1265_v37, %v1264_v39  ;;  %8934 = vrcp.f32 %v1501_v36 }
 0x8bf   : > { %v1269_v40 = vpop.permute.xlu0 %1268 }
 0x8c0   : > { %7736 = vmatpush3.bf16.msra.mxu1 %v1269_v40  ;;  %v8931_v43 = vpop.eup %8930 }
 0x8c1   : > { %7747 = vmatprep.subr.bf16.mxu1 %v9372_v0  ;;  %v8933_v46 = vpop.eup %8932  ;;  %v1387_v47 = vmul.f32 %v8931_v43, %v8917_v7 }
 0x8c2   : > { %v1386_v48 = vmul.f32 %v8933_v46, %v8915_v5 }
 0x8c3   : > { %7738 = vmatmul.mubr.msk.bf16.vlgmr.msra.gmra.mrb[16].mxu1 %vm1078_vm3, %v1266_v42 }
 0x8c4   : > { %7748 = vmatpush3.bf16.msra.mxu1 %v1390_v44  ;;  %7749 = vmatprep.mubr.msk.bf16.mxu1 %vm9373_vm0, %v9372_v0  ;;  %v1388_v51 = vpack.c.bf16 %v1387_v47, %v1386_v48  ;;  %v7144_v44 = vld [vmem:[#allocation11] ss:$0 sm:$0xff] }
 0x8c5   : > { %7759 = vmatprep.subr.bf16.mxu1 %v9372_v0 }
 0x8c6   : > { %v8935_v49 = vpop.eup %8934 }
 0x8c7   : > { %v1507_v56 = vmul.f32 %v8935_v49, %v8919_v9 }
 0x8cb   : > { %7750 = vmatmul.mubr.msk.bf16.vlgmr.msra.gmra.mrb[20].mxu1 %vm1078_vm3, %v1388_v51 }
 0x8cc   : > { %7761 = vmatprep.mubr.msk.bf16.mxu1 %vm9373_vm0, %v9372_v0 }
 0x8ea   : > { %v1504_v52 = vpop.xlane.xlu1 %1503 }
 0x8eb   : > { %8936 = vrcp.f32 %v1504_v52 }
 0x8ee   : > { %v1511_v53 = vpop.permute.xlu1 %1510 }
 0x8ef   : > { %7760 = vmatpush3.bf16.msra.mxu1 %v1511_v53 }
 0x8f0   : > { %8413 = vmatprep.subr.bf16.mxu1 %v9374_v13 }
 0x8f5   : > { %v8937_v55 = vpop.eup %8936 }
 0x8f6   : > { %v1508_v57 = vmul.f32 %v8937_v55, %v8921_v17 }
 0x8f8   : > { %v1509_v58 = vpack.c.bf16 %v1508_v57, %v1507_v56 }
 0x8fa   : > { %7762 = vmatmul.mubr.msk.bf16.vlgmr.msra.gmra.mrb[24].mxu1 %vm1078_vm3, %v1509_v58 }
 0x8fb   : > { %8415 = vmatpush3.bf16.msra.mxu1 %v9745_v12  ;;  %7793 = vmatprep.mubr.msk.f32.mxu1 %vm9373_vm0, %v9372_v0 }
 0x8fc   : > { %8416 = vmatprep.subr.bf16.mxu1 %v9374_v13 }
 0x8ff   : > { %8418 = vmatpush3.bf16.msra.mxu1 %v9756_v16 }
 0x900   : > { %8419 = vmatprep.subr.bf16.mxu1 %v9374_v13 }
 0x903   : > { %8421 = vmatpush3.bf16.msra.mxu1 %v9769_v20 }
 0x904   : > { %8422 = vmatprep.subr.bf16.mxu1 %v9374_v13 }
 0x907   : > { %8424 = vmatpush3.bf16.msra.mxu1 %v9775_v22 }
 0x908   : > { %8431 = vmatprep.subr.bf16.mxu1 %v9374_v13 }
 0x98c   : > { %v1186_v59 = vpop.f32.mrb[12].mxu1 }
 0x98d   : > { %v7727_v60 = vpop.f32.mrb[13].mxu1 }
 0x98e   : > { %v1189_v61 = vpop.f32.mrb[14].mxu1 }
 0x98f   : > { %v7728_v62 = vpop.f32.mrb[15].mxu1 }
 0x996   : > { %v1308_v63 = vpop.f32.mrb[16].mxu1 }
 0x997   : > { %v7739_v1 = vpop.f32.mrb[17].mxu1 }
 0x998   : > { %v1311_v2 = vpop.f32.mrb[18].mxu1 }
 0x999   : > { %v8709_v4 = vpack.i.bf16 %v1311_v2, %v1308_v63  ;;  %v7740_v5 = vpop.f32.mrb[19].mxu1 }
 0x99b   : > { %8710 = vrot.lane.b32.xlu0 %v8709_v4, %s10821_s11 }
 0x99e   : > { %v1429_v7 = vpop.f32.mrb[20].mxu1 }
 0x99f   : > { %v7751_v9 = vpop.f32.mrb[21].mxu1 }
 0x9a0   : > { %v1432_v10 = vpop.f32.mrb[22].mxu1 }
 0x9a1   : > { %v8714_v11 = vpack.i.bf16 %v1432_v10, %v1429_v7  ;;  %v7752_v14 = vpop.f32.mrb[23].mxu1 }
 0x9a3   : > { %8715 = vrot.lane.b32.xlu1 %v8714_v11, %s10819_s28 }
 0x9cd   : > { %v1550_v17 = vpop.f32.mrb[24].mxu1 }
 0x9ce   : > { %v7763_v19 = vpop.f32.mrb[25].mxu1 }
 0x9cf   : > { %v1553_v21 = vpop.f32.mrb[26].mxu1 }
 0x9d0   : > { %v8719_v23 = vpack.i.bf16 %v1553_v21, %v1550_v17  ;;  %v7764_v24 = vpop.f32.mrb[27].mxu1 }
 0x9d2   : > { %8720 = vrot.lane.b32.xlu0 %v8719_v23, %s10817_s30 }
 0xa0d   : > { %v8711_v26 = vpop.permute.xlu0 %8710 }
 0xa0e   : > { %v8713_v29 = vunpack.i.h.bf16 %v8711_v26  ;;  %v8712_v30 = vunpack.i.l.bf16 %v8711_v26 }
 0xa10   : > { %v1582_v34 = vsel %vm1078_vm3, %v1189_v61, %v8713_v29  ;;  %v1581_v35 = vsel %vm1078_vm3, %v1186_v59, %v8712_v30  ;;  %v8826_v30 = vld [vmem:[#allocation8 + $0x44] ss:$8 sps:$4 sm:$0xff]  }
 0xa15   : > { %v8716_v27 = vpop.permute.xlu1 %8715 }
 0xa16   : > { %v8718_v31 = vunpack.i.h.bf16 %v8716_v27  ;;  %v8717_v32 = vunpack.i.l.bf16 %v8716_v27 }
 0xa18   : > { %v1584_v37 = vsel %vm714_vm2, %v1582_v34, %v8718_v31  ;;  %v1583_v39 = vsel %vm714_vm2, %v1581_v35, %v8717_v32  ;;  %v8824_v31 = vld [vmem:[#allocation8 + $0x40] ss:$8 sps:$4 sm:$0xff]   ;;  %v8829_v32 = vld [vmem:[#allocation8 + $0x54] ss:$8 sps:$4 sm:$0xff]   ;;  %v8832_v34 = vld [vmem:[#allocation8 + $0x64] ss:$8 sps:$4 sm:$0xff]  }
 0xa19   : > { %v8830_v35 = vld [vmem:[#allocation8 + $0x60] ss:$8 sps:$4 sm:$0xff]  }
 0xa44   : > { %v8721_v33 = vpop.permute.xlu0 %8720 }
 0xa45   : > { %v8723_v54 = vunpack.i.h.bf16 %v8721_v33  ;;  %v8722_v36 = vunpack.i.l.bf16 %v8721_v33  ;;  %v8827_v33 = vld [vmem:[#allocation8 + $0x50] ss:$8 sps:$4 sm:$0xff]  }
 0xa47   : > { %v1587_v40 = vsel %vm1585_vm4, %v1584_v37, %v8723_v54  ;;  %v1586_v42 = vsel %vm1585_vm4, %v1583_v39, %v8722_v36  ;;  %v8835_v54 = vld [vmem:[#allocation8 + $0x74] ss:$8 sps:$4 sm:$0xff]   ;;  %v8833_v36 = vld [vmem:[#allocation8 + $0x70] ss:$8 sps:$4 sm:$0xff]  }
 0xa48   : > { %v1588_v43 = vpack.c.bf16 %v1587_v40, %v1586_v42 }
 0xa4a   : > { %7774 = vmatmul.mubr.msk.bf16.vlgmr.msra.gmra.mrb[20].mxu0 %vm618_vm1, %v1588_v43 }
 0xa4b   : > { %8427 = vmatpush3.bf16.msra.mxu0 %v9797_v41  ;;  %7804 = vmatprep.mubr.msk.f32.mxu0 %vm9373_vm0, %v9372_v0 }
 0xa4c   : > { %8428 = vmatprep.subr.bf16.mxu0 %v9374_v13 }
 0xa4f   : > { %8430 = vmatpush3.bf16.msra.mxu0 %v9807_v45 }
 0xa50   : > { %8443 = vmatprep.subr.bf16.mxu0 %v9374_v13 }
 0xb1d   : > { %v1650_v46 = vpop.f32.mrb[20].mxu0 }
 0xb1e   : > { %v1657_v47 = vadd.f32 %v1650_v46, %v9783_v25  ;;  %v7775_v48 = vpop.f32.mrb[21].mxu0 }
 0xb1f   : > { %v1653_v51 = vpop.f32.mrb[22].mxu0  ;;  %v7158_v48 = vld [vmem:[#allocation7 + $0x1] ss:$0 sm:$0xff] }
 0xb20   : > { %v9965_v52 = vadd.f32 %v7144_v44, %v1657_v47  ;;  %v1658_v53 = vadd.f32 %v1653_v51, %v9785_v28  ;;  %v7776_v49 = vpop.f32.mrb[23].mxu0 }
 0xb22   : > { %v9968_v55 = vadd.f32 %v7144_v44, %v1658_v53  ;;  %v1693_v56 = vsel %vm618_vm1, %v9965_v52, 0.0  ;;  %v7157_v44 = vld [vmem:[#allocation5 + $0x1] ss:$0 sm:$0xff] }
 0xb24   : > { %v1694_v57 = vsel %vm618_vm1, %v9968_v55, 0.0 }
 0xb25   : > { %v1695_v58 = vadd.f32 %v1694_v57, %v1693_v56 }
 0xb27   : > { %v1696_v59 = vrot.slane %v1695_v58, 4 }
 0xb29   : > { %v1697_v60 = vadd.f32 %v1696_v59, %v1695_v58  ;;  %v1681_v58 = vld [vmem:[#allocation10 + $0x2] sm:$0x3] }
 0xb2a   : > { %v2041_v59 = vrot.slane %v1681_v58, %v9828_v50 }
 0xb2b   : > { %v1698_v61 = vrot.slane %v1697_v60, 2 }
 0xb2d   : > { %v1699_v25 = vadd.f32 %v1698_v61, %v1697_v60  ;;  %v2045_v61 = vrot.slane %v1681_v58, %v9852_v38 }
 0xb2f   : > { %v1700_v62 = vrot.slane %v1699_v25, 1 }
 0xb31   : > { %v1701_v63 = vadd.f32 %v1700_v62, %v1699_v25 }
 0xb33   : > { %v1702_v1 = vmul.f32 0.0625, %v1701_v63 }
 0xb35   : > { %7794 = vmatmul.mubr.msk.f32.vlgmr.msra.gmra.mrb[28].mxu1 %vm618_vm1, %v1702_v1 }
 0xb36   : > { %8433 = vmatpush3.bf16.msra.mxu1 %v9745_v12  ;;  %7823 = vmatprep.mubr.msk.f32.mxu1 %vm9373_vm0, %v9372_v0 }
 0xb37   : > { %8434 = vmatprep.subr.bf16.mxu1 %v9374_v13 }
 0xb3a   : > { %8436 = vmatpush3.bf16.msra.mxu1 %v9756_v16 }
 0xb3b   : > { %8437 = vmatprep.subr.bf16.mxu1 %v9374_v13 }
 0xb3e   : > { %8439 = vmatpush3.bf16.msra.mxu1 %v9769_v20 }
 0xb3f   : > { %8440 = vmatprep.subr.bf16.mxu1 %v9374_v13 }
 0xb42   : > { %8442 = vmatpush3.bf16.msra.mxu1 %v9775_v22 }
 0xb43   : > { %7837 = vmatprep.subr.bf16.mxu1 %v9372_v0 }
 0xc08   : > { %v1772_v28 = vpop.f32.mrb[28].mxu1 }
 0xc09   : > { %v7795_v2 = vpop.f32.mrb[29].mxu1  ;;  %7805 = vmatmul.mubr.msk.f32.vlgmr.msra.gmra.mrb[24].mxu0 %vm714_vm2, %v1772_v28 }
 0xc0a   : > { %8445 = vmatpush3.bf16.msra.mxu0 %v9797_v41  ;;  %7834 = vmatprep.mubr.msk.f32.mxu0 %vm9373_vm0, %v9372_v0 }
 0xc0b   : > { %8446 = vmatprep.subr.bf16.mxu0 %v9374_v13 }
 0xc0e   : > { %8448 = vmatpush3.bf16.msra.mxu0 %v9807_v45 }
 0xc0f   : > { %2091 = vmatprep.subr.bf16.mxu0 %v8826_v30 }
 0xcdc   : > { %v1845_v3 = vpop.f32.mrb[24].mxu0 }
 0xcdd   : > { %v1852_v4 = vrot.slane %v1845_v3, %v9828_v50  ;;  %v7806_v5 = vpop.f32.mrb[25].mxu0 }
 0xcdf   : > { %v1853_v6 = vsub.f32 %v9965_v52, %v1852_v4  ;;  %v1854_v7 = vsub.f32 %v9968_v55, %v1852_v4 }
 0xce1   : > { %v1855_v8 = vmul.f32 %v1853_v6, %v1853_v6  ;;  %v1856_v9 = vmul.f32 %v1854_v7, %v1854_v7 }
 0xce3   : > { %v1857_v10 = vsel %vm618_vm1, %v1855_v8, 0.0  ;;  %v1858_v11 = vsel %vm618_vm1, %v1856_v9, 0.0 }
 0xce4   : > { %v1859_v14 = vadd.f32 %v1858_v11, %v1857_v10 }
 0xce6   : > { %v1860_v15 = vrot.slane %v1859_v14, 4 }
 0xce8   : > { %v1861_v17 = vadd.f32 %v1860_v15, %v1859_v14 }
 0xcea   : > { %v1862_v19 = vrot.slane %v1861_v17, 2 }
 0xcec   : > { %v1863_v21 = vadd.f32 %v1862_v19, %v1861_v17 }
 0xcee   : > { %v1864_v23 = vrot.slane %v1863_v21, 1 }
 0xcf0   : > { %v1865_v24 = vadd.f32 %v1864_v23, %v1863_v21 }
 0xcf2   : > { %v1866_v26 = vmul.f32 0.0625, %v1865_v24 }
 0xcf4   : > { %7824 = vmatmul.mubr.msk.f32.vlgmr.msra.gmra.mrb[30].mxu1 %vm618_vm1, %v1866_v26 }
 0xcf5   : > { %7839 = vmatprep.mubr.msk.bf16.mxu1 %vm9373_vm0, %v9372_v0 }
 0xdc7   : > { %v1936_v27 = vpop.f32.mrb[30].mxu1 }
 0xdc8   : > { %v7825_v29 = vpop.f32.mrb[31].mxu1  ;;  %7835 = vmatmul.mubr.msk.f32.vlgmr.msra.gmra.mrb[26].mxu0 %vm714_vm2, %v1936_v27 }
 0xdc9   : > { %2123 = vmatprep.mubr.bf16.mxu0 %v9375_v18  ;;  %2092 = vmatpush1.bf16.msra.mxu0 %v8824_v31 }
 0xdca   : > { %2093 = vmatprep.subr.bf16.mxu0 %v8829_v32 }
 0xdcd   : > { %2094 = vmatpush1.bf16.msra.mxu0 %v8827_v33 }
 0xdce   : > { %2095 = vmatprep.subr.bf16.mxu0 %v8832_v34 }
 0xdd1   : > { %2096 = vmatpush1.bf16.msra.mxu0 %v8830_v35 }
 0xdd2   : > { %2097 = vmatprep.subr.bf16.mxu0 %v8835_v54 }
 0xdd5   : > { %2098 = vmatpush1.bf16.msra.mxu0 %v8833_v36 }
 0xdd6   : > { %7849 = vmatprep.subr.bf16.mxu0 %v9372_v0 }
 0xe9b   : > { %v2009_v37 = vpop.f32.mrb[26].mxu0 }
 0xe9c   : > { %v2010_v39 = vadd.f32 1e-05, %v2009_v37  ;;  %v7836_v40 = vpop.f32.mrb[27].mxu0 }
 0xe9e   : > { %8938 = vrsqrt.f32 %v2010_v39 }
 0xea8   : > { %v8939_v42 = vpop.eup %8938 }
 0xea9   : > { %v2017_v43 = vrot.slane %v8939_v42, %v9828_v50 }
 0xeab   : > { %v2018_v46 = vmul.f32 %v2017_v43, %v1853_v6  ;;  %v2019_v47 = vmul.f32 %v2017_v43, %v1854_v7 }
 0xead   : > { %v2026_v51 = vmul.f32 %v7157_v44, %v2018_v46  ;;  %v2027_v53 = vmul.f32 %v7157_v44, %v2019_v47 }
 0xeaf   : > { %v2034_v49 = vadd.f32 %v7158_v48, %v2026_v51  ;;  %v2035_v56 = vadd.f32 %v7158_v48, %v2027_v53 }
 0xeb1   : > { %v2036_v57 = vpack.c.bf16 %v2035_v56, %v2034_v49 }
 0xeb3   : > { %7167 = vmatmul.mubr.msk.bf16.vlgmr.msra.gmra.mrb[28].mxu0 %vm618_vm1, %v2036_v57 }
 0xeb4   : > { %7851 = vmatprep.mubr.msk.bf16.mxu0 %vm9373_vm0, %v9372_v0 }
 0xf86   : > { %v2125_v60 = vpop.f32.mrb[28].mxu0 }
 0xf87   : > { %v2127_v25 = vpop.f32.mrb[29].mxu0  ;;  %v2126_v63 = vadd.f32 %v2125_v60, %v2041_v59 }
 0xf88   : > { %v2129_v62 = vpop.f32.mrb[30].mxu0  ;;  %v2128_v2 = vadd.f32 %v2127_v25, %v2045_v61 }
 0xf89   : > { %v2130_v1 = vadd.f32 %v2129_v62, %v2041_v59  ;;  %v2131_v28 = vpop.f32.mrb[31].mxu0 }
 0xf8a   : > { %v2132_v3 = vadd.f32 %v2131_v28, %v2045_v61 }
 0xf8b   : > { %v2134_v4 = vpack.c.bf16 %v2130_v1, %v2126_v63 }
 0xf8c   : > { %v10008_v5 = vpack.c.bf16 %v2132_v3, %v2128_v2 }
 0xf8d   : > { %2255 = vrot.lane.b32.xlu0 %v2134_v4, %s10817_s30  ;;  %2137 = vrot.lane.b32.xlu1 %v2134_v4, %s10815_s6  ;;  %s10854_s6 = smov 112  }
 0xf91   : > { %2377 = vrot.lane.b32.xlu0 %v2134_v4, %s10819_s28  ;;  %2253 = vrot.lane.b32.xlu1 %v2134_v4, %s10813_s27 }
 0xf95   : > { %2498 = vrot.lane.b32.xlu0 %v2134_v4, %s10821_s11  ;;  %2375 = vrot.lane.b32.xlu1 %v2134_v4, %s10851_s22 }
 0xf99   : > { %2496 = vrot.lane.b32.xlu1 %v2134_v4, %s10852_s21 }
 0xfff   : > { %v2256_v6 = vpop.permute.xlu0 %2255  ;;  %v2138_v7 = vpop.permute.xlu1 %2137 }
0x1000   : > { %v2261_v8 = vsel %vm1078_vm3, %v2256_v6, 0  ;;  %v2143_v9 = vsel %vm1078_vm3, %v2138_v7, 0 }
0x1001   : > { %7838 = vmatpush3.bf16.xpose.msra.mxu1 %v2143_v9  ;;  %7850 = vmatpush3.bf16.xpose.msra.mxu0 %v2261_v8 }
0x1002   : > { %7843 = vmatprep.subr.bf16.mxu1 %v9372_v0  ;;  %7861 = vmatprep.subr.bf16.mxu0 %v9372_v0 }
0x1003   : > { %v2378_v10 = vpop.permute.xlu0 %2377  ;;  %v2254_v11 = vpop.permute.xlu1 %2253 }
0x1004   : > { %v2383_v14 = vsel %vm1078_vm3, %v2378_v10, 0 }
0x1007   : > { %v2499_v15 = vpop.permute.xlu0 %2498  ;;  %v2376_v17 = vpop.permute.xlu1 %2375 }
0x1008   : > { %7840 = vmatmul.mubr.msk.bf16.vlgmr.msra.gmra.mrb[32].mxu1 %vm1078_vm3, %v2134_v4  ;;  %7852 = vmatmul.mubr.msk.bf16.vlgmr.msra.gmra.mrb[32].mxu0 %vm1078_vm3, %v2254_v11  ;;  %v2504_v19 = vsel %vm1078_vm3, %v2499_v15, 0 }
0x1009   : > { %7844 = vmatpush3.bf16.msra.mxu1 %v10008_v5  ;;  %7862 = vmatpush3.bf16.xpose.msra.mxu0 %v2383_v14 }
0x100a   : > { %7863 = vmatprep.mubr.msk.bf16.mxu0 %vm9373_vm0, %v9372_v0  ;;  %7873 = vmatprep.subr.bf16.mxu0 %v9372_v0 }
0x100b   : > { %7845 = vmatprep.mubr.msk.bf16.mxu1 %vm9373_vm0, %v9372_v0  ;;  %7855 = vmatprep.subr.bf16.mxu1 %v9372_v0  ;;  %v2497_v21 = vpop.permute.xlu1 %2496 }
0x1010   : > { %7864 = vmatmul.mubr.msk.bf16.vlgmr.msra.gmra.mrb[36].mxu0 %vm1078_vm3, %v2376_v17 }
0x1011   : > { %7874 = vmatpush3.bf16.xpose.msra.mxu0 %v2504_v19  ;;  %7875 = vmatprep.mubr.msk.bf16.mxu0 %vm9373_vm0, %v9372_v0 }
0x1012   : > { %7885 = vmatprep.subr.bf16.mxu0 %v9372_v0 }
0x1018   : > { %7876 = vmatmul.mubr.msk.bf16.vlgmr.msra.gmra.mrb[40].mxu0 %vm1078_vm3, %v2497_v21 }
0x1019   : > { %7893 = vmatprep.mubr.msk.bf16.mxu0 %vm9373_vm0, %v9372_v0 }
0x10db   : > { %v2179_v23 = vpop.f32.mrb[32].mxu1  ;;  %v10039_v24 = vpop.f32.mrb[32].mxu0 }
0x10dc   : > { %v7841_v26 = vpop.f32.mrb[33].mxu1  ;;  %v7853_v27 = vpop.f32.mrb[33].mxu0  ;;  %v2186_v29 = vsel %vm1078_vm3, %v2179_v23, -inf  ;;  %v2304_v35 = vsel %vm1078_vm3, %v10039_v24, -inf }
0x10dd   : > { %v2300_v30 = vpop.f32.mrb[34].mxu0  ;;  %2187 = vmax.xlane.f32.xlu0 %v2186_v29  ;;  %v2182_v31 = vpop.f32.mrb[34].mxu1 }
0x10de   : > { %v7842_v32 = vpop.f32.mrb[35].mxu1  ;;  %v7854_v33 = vpop.f32.mrb[35].mxu0  ;;  %v2189_v34 = vsel %vm1078_vm3, %v2182_v31, -inf  ;;  %v2307_v37 = vsel %vm1078_vm3, %v2300_v30, -inf }
0x10df   : > { %2190 = vmax.xlane.f32.xlu1 %v2189_v34 }
0x10e1   : > { %2305 = vmax.xlane.f32.xlu0 %v2304_v35 }
0x10e3   : > { %v2419_v54 = vpop.f32.mrb[36].mxu0 }
0x10e4   : > { %v7865_v36 = vpop.f32.mrb[37].mxu0  ;;  %v2426_v39 = vsel %vm1078_vm3, %v2419_v54, -inf }
0x10e5   : > { %v2422_v40 = vpop.f32.mrb[38].mxu0  ;;  %2308 = vmax.xlane.f32.xlu0 %v2307_v37  ;;  %2427 = vmax.xlane.f32.xlu1 %v2426_v39 }
0x10e6   : > { %v7866_v42 = vpop.f32.mrb[39].mxu0  ;;  %v2429_v43 = vsel %vm1078_vm3, %v2422_v40, -inf }
0x10e9   : > { %2430 = vmax.xlane.f32.xlu0 %v2429_v43 }
0x10eb   : > { %v2540_v44 = vpop.f32.mrb[40].mxu0 }
0x10ec   : > { %v7877_v46 = vpop.f32.mrb[41].mxu0  ;;  %v2547_v47 = vsel %vm1078_vm3, %v2540_v44, -inf }
0x10ed   : > { %v2543_v48 = vpop.f32.mrb[42].mxu0  ;;  %2548 = vmax.xlane.f32.xlu1 %v2547_v47 }
0x10ee   : > { %v7878_v51 = vpop.f32.mrb[43].mxu0  ;;  %v2550_v53 = vsel %vm1078_vm3, %v2543_v48, -inf }
0x10ef   : > { %2551 = vmax.xlane.f32.xlu0 %v2550_v53 }
0x116a   : > { %v2188_v49 = vpop.xlane.xlu0 %2187 }
0x116b   : > { %v2192_v56 = vsub.f32 %v2179_v23, %v2188_v49 }
0x116c   : > { %v2191_v57 = vpop.xlane.xlu1 %2190 }
0x116d   : > { %v2194_v58 = vmul.f32 1.442695, %v2192_v56  ;;  %v2193_v59 = vsub.f32 %v2182_v31, %v2191_v57 }
0x116e   : > { %v2306_v60 = vpop.xlane.xlu0 %2305 }
0x116f   : > { %8940 = vpow2.f32 %v2194_v58  ;;  %v2196_v61 = vmul.f32 1.442695, %v2193_v59  ;;  %v2310_v23 = vsub.f32 %v10039_v24, %v2306_v60 }
0x1171   : > { %8942 = vpow2.f32 %v2196_v61  ;;  %v2312_v27 = vmul.f32 1.442695, %v2310_v23 }
0x1172   : > { %v2309_v25 = vpop.xlane.xlu0 %2308  ;;  %v2428_v26 = vpop.xlane.xlu1 %2427 }
0x1173   : > { %v2311_v62 = vsub.f32 %v2300_v30, %v2309_v25  ;;  %v2432_v29 = vsub.f32 %v2419_v54, %v2428_v26  ;;  %v8837_v26 = vld [vmem:[%s10850_s13 + $0x28] sm:$0xff]  }
0x1175   : > { %v2314_v63 = vmul.f32 1.442695, %v2311_v62  ;;  %v2434_v31 = vmul.f32 1.442695, %v2432_v29 }
0x1176   : > { %v2431_v1 = vpop.xlane.xlu0 %2430 }
0x1177   : > { %8944 = vpow2.f32 %v2314_v63  ;;  %v2433_v28 = vsub.f32 %v2422_v40, %v2431_v1 }
0x1179   : > { %v8941_v2 = vpop.eup %8940  ;;  %v2436_v3 = vmul.f32 1.442695, %v2433_v28 }
0x117a   : > { %v2198_v4 = vsel %vm1078_vm3, %v8941_v2, 0.0  ;;  %v2549_v30 = vpop.xlane.xlu1 %2548 }
0x117b   : > { %v8943_v6 = vpop.eup %8942  ;;  %8946 = vpow2.f32 %v2436_v3  ;;  %2199 = vadd.xlane.f32.xlu1 %v2198_v4  ;;  %v2553_v32 = vsub.f32 %v2540_v44, %v2549_v30 }
0x117c   : > { %v2552_v7 = vpop.xlane.xlu0 %2551  ;;  %v2201_v8 = vsel %vm1078_vm3, %v8943_v6, 0.0 }
0x117d   : > { %v2554_v9 = vsub.f32 %v2543_v48, %v2552_v7  ;;  %2202 = vadd.xlane.f32.xlu0 %v2201_v8  ;;  %v2555_v33 = vmul.f32 1.442695, %v2553_v32 }
0x117f   : > { %v2557_v10 = vmul.f32 1.442695, %v2554_v9 }
0x1181   : > { %v8945_v11 = vpop.eup %8944  ;;  %8948 = vpow2.f32 %v2557_v10 }
0x1182   : > { %v2319_v14 = vsel %vm1078_vm3, %v8945_v11, 0.0  ;;  %8950 = vpow2.f32 %v2312_v27 }
0x1183   : > { %2320 = vadd.xlane.f32.xlu0 %v2319_v14  ;;  %8952 = vpow2.f32 %v2434_v31  ;;  %v8838_v31 = vld [vmem:[%s10850_s13 + $0x30] sm:$0xff]  }
0x1184   : > { %8954 = vpow2.f32 %v2555_v33 }
0x1185   : > { %v10053_v15 = vpop.eup %8946 }
0x1186   : > { %v2441_v17 = vsel %vm1078_vm3, %v10053_v15, 0.0 }
0x1187   : > { %2442 = vadd.xlane.f32.xlu0 %v2441_v17 }
0x118b   : > { %v10057_v19 = vpop.eup %8948 }
0x118c   : > { %2328 = vrot.lane.b32.xlu1 %v10008_v5, %s10813_s27  ;;  %v2562_v21 = vsel %vm1078_vm3, %v10057_v19, 0.0  ;;  %v8951_v34 = vpop.eup %8950  ;;  %s10853_s27 = smov 64  }
0x118d   : > { %2563 = vadd.xlane.f32.xlu0 %v2562_v21  ;;  %v2316_v35 = vsel %vm1078_vm3, %v8951_v34, 0.0  ;;  %v8953_v36 = vpop.eup %8952 }
0x118e   : > { %v2438_v24 = vsel %vm1078_vm3, %v8953_v36, 0.0  ;;  %v8955_v37 = vpop.eup %8954 }
0x118f   : > { %v2559_v54 = vsel %vm1078_vm3, %v8955_v37, 0.0 }
0x11a3   : > { %2449 = vrot.lane.b32.xlu0 %v10008_v5, %s10851_s22 }
0x11b0   : > { %2317 = vadd.xlane.f32.xlu1 %v2316_v35 }
0x11b4   : > { %2439 = vadd.xlane.f32.xlu1 %v2438_v24 }
0x11b8   : > { %2560 = vadd.xlane.f32.xlu1 %v2559_v54 }
0x11c9   : > { %2570 = vrot.lane.b32.xlu1 %v10008_v5, %s10852_s21 }
0x1208   : > { %v2200_v39 = vpop.xlane.xlu1 %2199 }
0x1209   : > { %8956 = vrcp.f32 %v2200_v39 }
0x120a   : > { %v2203_v40 = vpop.xlane.xlu0 %2202 }
0x120b   : > { %8958 = vrcp.f32 %v2203_v40 }
0x120c   : > { %v2329_v48 = vpop.permute.xlu1 %2328 }
0x1210   : > { %v2321_v51 = vpop.xlane.xlu0 %2320 }
0x1211   : > { %8960 = vrcp.f32 %v2321_v51 }
0x1213   : > { %v8957_v42 = vpop.eup %8956 }
0x1214   : > { %v2206_v44 = vmul.f32 %v8957_v42, %v8941_v2  ;;  %v2443_v53 = vpop.xlane.xlu0 %2442 }
0x1215   : > { %v8959_v43 = vpop.eup %8958 }
0x1216   : > { %v2207_v46 = vmul.f32 %v8959_v43, %v8943_v6 }
0x1218   : > { %v2208_v47 = vpack.c.bf16 %v2207_v46, %v2206_v44 }
0x121a   : > { %7846 = vmatmul.mubr.msk.bf16.vlgmr.msra.gmra.mrb[36].mxu1 %vm1078_vm3, %v2208_v47  ;;  %v2564_v57 = vpop.xlane.xlu0 %2563 }
0x121b   : > { %7856 = vmatpush3.bf16.msra.mxu1 %v2329_v48  ;;  %7857 = vmatprep.mubr.msk.bf16.mxu1 %vm9373_vm0, %v9372_v0  ;;  %v8961_v56 = vpop.eup %8960 }
0x121c   : > { %7867 = vmatprep.subr.bf16.mxu1 %v9372_v0  ;;  %v2325_v60 = vmul.f32 %v8961_v56, %v8945_v11 }
0x121e   : > { %v2450_v63 = vpop.permute.xlu0 %2449 }
0x123d   : > { %v2318_v5 = vpop.xlane.xlu1 %2317 }
0x123e   : > { %8962 = vrcp.f32 %v2318_v5 }
0x1241   : > { %v2440_v49 = vpop.xlane.xlu1 %2439 }
0x1242   : > { %8964 = vrcp.f32 %v2440_v49 }
0x1243   : > { %8966 = vrcp.f32 %v2443_v53 }
0x1245   : > { %v2561_v58 = vpop.xlane.xlu1 %2560 }
0x1246   : > { %8968 = vrcp.f32 %v2561_v58 }
0x1247   : > { %8970 = vrcp.f32 %v2564_v57 }
0x1248   : > { %v8963_v59 = vpop.eup %8962 }
0x1249   : > { %v2324_v61 = vmul.f32 %v8963_v59, %v8951_v34  ;;  %v2571_v6 = vpop.permute.xlu1 %2570  ;;  %v8839_v34 = vld [vmem:[%s10850_s13 + $0x38] sm:$0xff]  }
0x124b   : > { %v2326_v25 = vpack.c.bf16 %v2325_v60, %v2324_v61 }
0x124c   : > { %v8965_v62 = vpop.eup %8964 }
0x124d   : > { %7858 = vmatmul.mubr.msk.bf16.vlgmr.msra.gmra.mrb[40].mxu1 %vm1078_vm3, %v2326_v25  ;;  %v8967_v1 = vpop.eup %8966  ;;  %v2446_v28 = vmul.f32 %v8965_v62, %v8953_v36  ;;  %v7181_v62 = vld [vmem:[#allocation11 + $0x1] ss:$0 sm:$0xff] }
0x124e   : > { %7868 = vmatpush3.bf16.msra.mxu1 %v2450_v63  ;;  %7869 = vmatprep.mubr.msk.bf16.mxu1 %vm9373_vm0, %v9372_v0  ;;  %v2447_v2 = vmul.f32 %v8967_v1, %v10053_v15 }
0x124f   : > { %7879 = vmatprep.subr.bf16.mxu1 %v9372_v0 }
0x1250   : > { %v2448_v3 = vpack.c.bf16 %v2447_v2, %v2446_v28  ;;  %v8969_v4 = vpop.eup %8968 }
0x1251   : > { %v8971_v7 = vpop.eup %8970  ;;  %v2567_v8 = vmul.f32 %v8969_v4, %v8955_v37 }
0x1252   : > { %v2568_v9 = vmul.f32 %v8971_v7, %v10057_v19  ;;  %v8836_v19 = vld [vmem:[%s10850_s13 + $0x20] sm:$0xff]  }
0x1253   : > { %7886 = vmatpush3.bf16.msra.mxu0 %v8836_v19 }
0x1254   : > { %v2569_v10 = vpack.c.bf16 %v2568_v9, %v2567_v8  ;;  %7887 = vmatprep.subr.bf16.mxu0 %v9372_v0 }
0x1255   : > { %7870 = vmatmul.mubr.msk.bf16.vlgmr.msra.gmra.mrb[44].mxu1 %vm1078_vm3, %v2448_v3 }
0x1256   : > { %7880 = vmatpush3.bf16.msra.mxu1 %v2571_v6  ;;  %7881 = vmatprep.mubr.msk.bf16.mxu1 %vm9373_vm0, %v9372_v0 }
0x1257   : > { %8449 = vmatprep.subr.bf16.mxu1 %v9374_v13  ;;  %7888 = vmatpush3.bf16.msra.mxu0 %v8837_v26 }
0x1258   : > { %7889 = vmatprep.subr.bf16.mxu0 %v9372_v0 }
0x125b   : > { %7890 = vmatpush3.bf16.msra.mxu0 %v8838_v31 }
0x125c   : > { %7891 = vmatprep.subr.bf16.mxu0 %v9372_v0 }
0x125d   : > { %7882 = vmatmul.mubr.msk.bf16.vlgmr.msra.gmra.mrb[48].mxu1 %vm1078_vm3, %v2569_v10 }
0x125e   : > { %8451 = vmatpush3.bf16.msra.mxu1 %v9745_v12  ;;  %7913 = vmatprep.mubr.msk.f32.mxu1 %vm9373_vm0, %v9372_v0 }
0x125f   : > { %8452 = vmatprep.subr.bf16.mxu1 %v9374_v13  ;;  %7892 = vmatpush3.bf16.msra.mxu0 %v8839_v34 }
0x1260   : > { %8461 = vmatprep.subr.bf16.mxu0 %v9374_v13 }
0x1262   : > { %8454 = vmatpush3.bf16.msra.mxu1 %v9756_v16 }
0x1263   : > { %8455 = vmatprep.subr.bf16.mxu1 %v9374_v13 }
0x1266   : > { %8457 = vmatpush3.bf16.msra.mxu1 %v9769_v20 }
0x1267   : > { %8458 = vmatprep.subr.bf16.mxu1 %v9374_v13 }
0x126a   : > { %8460 = vmatpush3.bf16.msra.mxu1 %v9775_v22 }
0x126b   : > { %8467 = vmatprep.subr.bf16.mxu1 %v9374_v13 }
0x12ed   : > { %v2246_v11 = vpop.f32.mrb[36].mxu1 }
0x12ee   : > { %v7847_v14 = vpop.f32.mrb[37].mxu1 }
0x12ef   : > { %v2249_v15 = vpop.f32.mrb[38].mxu1 }
0x12f0   : > { %v7848_v17 = vpop.f32.mrb[39].mxu1 }
0x1320   : > { %v2368_v21 = vpop.f32.mrb[40].mxu1 }
0x1321   : > { %v7859_v23 = vpop.f32.mrb[41].mxu1 }
0x1322   : > { %v2371_v27 = vpop.f32.mrb[42].mxu1 }
0x1323   : > { %v8724_v29 = vpack.i.bf16 %v2371_v27, %v2368_v21  ;;  %v7860_v30 = vpop.f32.mrb[43].mxu1 }
0x1325   : > { %8725 = vrot.lane.b32.xlu1 %v8724_v29, %s10821_s11 }
0x1328   : > { %v2489_v32 = vpop.f32.mrb[44].mxu1 }
0x1329   : > { %v7871_v33 = vpop.f32.mrb[45].mxu1 }
0x132a   : > { %v2492_v35 = vpop.f32.mrb[46].mxu1 }
0x132b   : > { %v8729_v36 = vpack.i.bf16 %v2492_v35, %v2489_v32  ;;  %v7872_v24 = vpop.f32.mrb[47].mxu1 }
0x132d   : > { %8730 = vrot.lane.b32.xlu0 %v8729_v36, %s10819_s28 }
0x1330   : > { %v2610_v37 = vpop.f32.mrb[48].mxu1 }
0x1331   : > { %v7883_v54 = vpop.f32.mrb[49].mxu1 }
0x1332   : > { %v2613_v39 = vpop.f32.mrb[50].mxu1 }
0x1333   : > { %v8734_v40 = vpack.i.bf16 %v2613_v39, %v2610_v37  ;;  %v7884_v42 = vpop.f32.mrb[51].mxu1 }
0x1335   : > { %8735 = vrot.lane.b32.xlu1 %v8734_v40, %s10817_s30 }
0x1397   : > { %v8726_v43 = vpop.permute.xlu1 %8725 }
0x1398   : > { %v8728_v46 = vunpack.i.h.bf16 %v8726_v43  ;;  %v8727_v47 = vunpack.i.l.bf16 %v8726_v43 }
0x139a   : > { %v2642_v53 = vsel %vm1078_vm3, %v2249_v15, %v8728_v46  ;;  %v2641_v49 = vsel %vm1078_vm3, %v2246_v11, %v8727_v47  ;;  %v8842_v47 = vld [vmem:[#allocation8 + $0x84] ss:$8 sps:$4 sm:$0xff]  }
0x139f   : > { %v8731_v44 = vpop.permute.xlu0 %8730 }
0x13a0   : > { %v8733_v48 = vunpack.i.h.bf16 %v8731_v44  ;;  %v8732_v51 = vunpack.i.l.bf16 %v8731_v44 }
0x13a2   : > { %v2644_v58 = vsel %vm714_vm2, %v2642_v53, %v8733_v48  ;;  %v2643_v59 = vsel %vm714_vm2, %v2641_v49, %v8732_v51  ;;  %v8840_v48 = vld [vmem:[#allocation8 + $0x80] ss:$8 sps:$4 sm:$0xff]   ;;  %v8845_v51 = vld [vmem:[#allocation8 + $0x94] ss:$8 sps:$4 sm:$0xff]   ;;  %v8848_v53 = vld [vmem:[#allocation8 + $0xa4] ss:$8 sps:$4 sm:$0xff]  }
0x13a3   : > { %v8846_v49 = vld [vmem:[#allocation8 + $0xa0] ss:$8 sps:$4 sm:$0xff]  }
0x13a7   : > { %v8736_v5 = vpop.permute.xlu1 %8735 }
0x13a8   : > { %v8738_v56 = vunpack.i.h.bf16 %v8736_v5  ;;  %v8737_v57 = vunpack.i.l.bf16 %v8736_v5  ;;  %v8843_v5 = vld [vmem:[#allocation8 + $0x90] ss:$8 sps:$4 sm:$0xff]  }
0x13aa   : > { %v2646_v60 = vsel %vm1585_vm4, %v2644_v58, %v8738_v56  ;;  %v2645_v61 = vsel %vm1585_vm4, %v2643_v59, %v8737_v57  ;;  %v8851_v56 = vld [vmem:[#allocation8 + $0xb4] ss:$8 sps:$4 sm:$0xff]   ;;  %v8849_v57 = vld [vmem:[#allocation8 + $0xb0] ss:$8 sps:$4 sm:$0xff]  }
0x13ab   : > { %v2647_v25 = vpack.c.bf16 %v2646_v60, %v2645_v61 }
0x13ad   : > { %7894 = vmatmul.mubr.msk.bf16.vlgmr.msra.gmra.mrb[44].mxu0 %vm618_vm1, %v2647_v25 }
0x13ae   : > { %8463 = vmatpush3.bf16.msra.mxu0 %v9797_v41  ;;  %7924 = vmatprep.mubr.msk.f32.mxu0 %vm9373_vm0, %v9372_v0 }
0x13af   : > { %8464 = vmatprep.subr.bf16.mxu0 %v9374_v13 }
0x13b2   : > { %8466 = vmatpush3.bf16.msra.mxu0 %v9807_v45 }
0x13b3   : > { %8479 = vmatprep.subr.bf16.mxu0 %v9374_v13 }
0x1480   : > { %v2709_v63 = vpop.f32.mrb[44].mxu0 }
0x1481   : > { %v2716_v1 = vadd.f32 %v2709_v63, %v9965_v52  ;;  %v7895_v28 = vpop.f32.mrb[45].mxu0 }
0x1482   : > { %v2712_v2 = vpop.f32.mrb[46].mxu0  ;;  %v7195_v28 = vld [vmem:[#allocation7 + $0x2] ss:$0 sm:$0xff] }
0x1483   : > { %v10129_v3 = vadd.f32 %v7181_v62, %v2716_v1  ;;  %v2717_v4 = vadd.f32 %v2712_v2, %v9968_v55  ;;  %v7896_v6 = vpop.f32.mrb[47].mxu0 }
0x1485   : > { %v10132_v7 = vadd.f32 %v7181_v62, %v2717_v4  ;;  %v2752_v8 = vsel %vm618_vm1, %v10129_v3, 0.0  ;;  %v7194_v62 = vld [vmem:[#allocation5 + $0x2] ss:$0 sm:$0xff] }
0x1487   : > { %v2753_v9 = vsel %vm618_vm1, %v10132_v7, 0.0 }
0x1488   : > { %v2754_v10 = vadd.f32 %v2753_v9, %v2752_v8 }
0x148a   : > { %v2755_v11 = vrot.slane %v2754_v10, 4 }
0x148c   : > { %v2756_v14 = vadd.f32 %v2755_v11, %v2754_v10  ;;  %v2740_v10 = vld [vmem:[#allocation10 + $0x4] sm:$0x3] }
0x148d   : > { %v3100_v11 = vrot.slane %v2740_v10, %v9828_v50 }
0x148e   : > { %v2757_v15 = vrot.slane %v2756_v14, 2 }
0x1490   : > { %v2758_v52 = vadd.f32 %v2757_v15, %v2756_v14  ;;  %v3104_v15 = vrot.slane %v2740_v10, %v9852_v38 }
0x1492   : > { %v2759_v17 = vrot.slane %v2758_v52, 1 }
0x1494   : > { %v2760_v19 = vadd.f32 %v2759_v17, %v2758_v52 }
0x1496   : > { %v2761_v21 = vmul.f32 0.0625, %v2760_v19 }
0x1498   : > { %7914 = vmatmul.mubr.msk.f32.vlgmr.msra.gmra.mrb[52].mxu1 %vm618_vm1, %v2761_v21 }
0x1499   : > { %8469 = vmatpush3.bf16.msra.mxu1 %v9745_v12  ;;  %7943 = vmatprep.mubr.msk.f32.mxu1 %vm9373_vm0, %v9372_v0 }
0x149a   : > { %8470 = vmatprep.subr.bf16.mxu1 %v9374_v13 }
0x149d   : > { %8472 = vmatpush3.bf16.msra.mxu1 %v9756_v16 }
0x149e   : > { %8473 = vmatprep.subr.bf16.mxu1 %v9374_v13 }
0x14a1   : > { %8475 = vmatpush3.bf16.msra.mxu1 %v9769_v20 }
0x14a2   : > { %8476 = vmatprep.subr.bf16.mxu1 %v9374_v13 }
0x14a5   : > { %8478 = vmatpush3.bf16.msra.mxu1 %v9775_v22 }
0x14a6   : > { %7957 = vmatprep.subr.bf16.mxu1 %v9372_v0 }
0x156b   : > { %v2831_v55 = vpop.f32.mrb[52].mxu1 }
0x156c   : > { %v7915_v23 = vpop.f32.mrb[53].mxu1  ;;  %7925 = vmatmul.mubr.msk.f32.vlgmr.msra.gmra.mrb[48].mxu0 %vm714_vm2, %v2831_v55 }
0x156d   : > { %8481 = vmatpush3.bf16.msra.mxu0 %v9797_v41  ;;  %7954 = vmatprep.mubr.msk.f32.mxu0 %vm9373_vm0, %v9372_v0 }
0x156e   : > { %8482 = vmatprep.subr.bf16.mxu0 %v9374_v13 }
0x1571   : > { %8484 = vmatpush3.bf16.msra.mxu0 %v9807_v45 }
0x1572   : > { %3150 = vmatprep.subr.bf16.mxu0 %v8842_v47 }
0x163f   : > { %v2904_v26 = vpop.f32.mrb[48].mxu0 }
0x1640   : > { %v2911_v27 = vrot.slane %v2904_v26, %v9828_v50  ;;  %v7926_v29 = vpop.f32.mrb[49].mxu0 }
0x1642   : > { %v2912_v30 = vsub.f32 %v10129_v3, %v2911_v27  ;;  %v2913_v31 = vsub.f32 %v10132_v7, %v2911_v27 }
0x1644   : > { %v2914_v32 = vmul.f32 %v2912_v30, %v2912_v30  ;;  %v2915_v33 = vmul.f32 %v2913_v31, %v2913_v31 }
0x1646   : > { %v2916_v34 = vsel %vm618_vm1, %v2914_v32, 0.0  ;;  %v2917_v35 = vsel %vm618_vm1, %v2915_v33, 0.0 }
0x1647   : > { %v2918_v36 = vadd.f32 %v2917_v35, %v2916_v34 }
0x1649   : > { %v2919_v24 = vrot.slane %v2918_v36, 4 }
0x164b   : > { %v2920_v37 = vadd.f32 %v2919_v24, %v2918_v36 }
0x164d   : > { %v2921_v54 = vrot.slane %v2920_v37, 2 }
0x164f   : > { %v2922_v39 = vadd.f32 %v2921_v54, %v2920_v37 }
0x1651   : > { %v2923_v40 = vrot.slane %v2922_v39, 1 }
0x1653   : > { %v2924_v42 = vadd.f32 %v2923_v40, %v2922_v39 }
0x1655   : > { %v2925_v43 = vmul.f32 0.0625, %v2924_v42 }
0x1657   : > { %7944 = vmatmul.mubr.msk.f32.vlgmr.msra.gmra.mrb[54].mxu1 %vm618_vm1, %v2925_v43 }
0x1658   : > { %7959 = vmatprep.mubr.msk.bf16.mxu1 %vm9373_vm0, %v9372_v0 }
0x172a   : > { %v2995_v44 = vpop.f32.mrb[54].mxu1 }
0x172b   : > { %v7945_v46 = vpop.f32.mrb[55].mxu1  ;;  %7955 = vmatmul.mubr.msk.f32.vlgmr.msra.gmra.mrb[50].mxu0 %vm714_vm2, %v2995_v44 }
0x172c   : > { %3182 = vmatprep.mubr.bf16.mxu0 %v9375_v18  ;;  %3151 = vmatpush1.bf16.msra.mxu0 %v8840_v48 }
0x172d   : > { %3152 = vmatprep.subr.bf16.mxu0 %v8845_v51 }
0x1730   : > { %3153 = vmatpush1.bf16.msra.mxu0 %v8843_v5 }
0x1731   : > { %3154 = vmatprep.subr.bf16.mxu0 %v8848_v53 }
0x1734   : > { %3155 = vmatpush1.bf16.msra.mxu0 %v8846_v49 }
0x1735   : > { %3156 = vmatprep.subr.bf16.mxu0 %v8851_v56 }
0x1738   : > { %3157 = vmatpush1.bf16.msra.mxu0 %v8849_v57 }
0x1739   : > { %7969 = vmatprep.subr.bf16.mxu0 %v9372_v0 }
0x17fe   : > { %v3068_v58 = vpop.f32.mrb[50].mxu0 }
0x17ff   : > { %v3069_v59 = vadd.f32 1e-05, %v3068_v58  ;;  %v7956_v60 = vpop.f32.mrb[51].mxu0 }
0x1801   : > { %8972 = vrsqrt.f32 %v3069_v59 }
0x180b   : > { %v8973_v61 = vpop.eup %8972 }
0x180c   : > { %v3076_v25 = vrot.slane %v8973_v61, %v9828_v50 }
0x180e   : > { %v3077_v63 = vmul.f32 %v3076_v25, %v2912_v30  ;;  %v3078_v1 = vmul.f32 %v3076_v25, %v2913_v31 }
0x1810   : > { %v3085_v2 = vmul.f32 %v7194_v62, %v3077_v63  ;;  %v3086_v4 = vmul.f32 %v7194_v62, %v3078_v1 }
0x1812   : > { %v3093_v6 = vadd.f32 %v7195_v28, %v3085_v2  ;;  %v3094_v8 = vadd.f32 %v7195_v28, %v3086_v4 }
0x1814   : > { %v3095_v9 = vpack.c.bf16 %v3094_v8, %v3093_v6 }
0x1816   : > { %7204 = vmatmul.mubr.msk.bf16.vlgmr.msra.gmra.mrb[52].mxu0 %vm618_vm1, %v3095_v9 }
0x1817   : > { %7971 = vmatprep.mubr.msk.bf16.mxu0 %vm9373_vm0, %v9372_v0 }
0x18e9   : > { %v3184_v14 = vpop.f32.mrb[52].mxu0 }
0x18ea   : > { %v3186_v52 = vpop.f32.mrb[53].mxu0  ;;  %v3185_v19 = vadd.f32 %v3184_v14, %v3100_v11 }
0x18eb   : > { %v3188_v17 = vpop.f32.mrb[54].mxu0  ;;  %v3187_v23 = vadd.f32 %v3186_v52, %v3104_v15 }
0x18ec   : > { %v3189_v21 = vadd.f32 %v3188_v17, %v3100_v11  ;;  %v3190_v55 = vpop.f32.mrb[55].mxu0 }
0x18ed   : > { %v3191_v26 = vadd.f32 %v3190_v55, %v3104_v15 }
0x18ee   : > { %v3193_v27 = vpack.c.bf16 %v3189_v21, %v3185_v19 }
0x18ef   : > { %v10172_v29 = vpack.c.bf16 %v3191_v26, %v3187_v23 }
0x18f0   : > { %3314 = vrot.lane.b32.xlu1 %v3193_v27, %s10817_s30  ;;  %3196 = vrot.lane.b32.xlu0 %v3193_v27, %s10853_s27  ;;  %s10857_s30 = smov 16  }
0x18f4   : > { %3436 = vrot.lane.b32.xlu1 %v3193_v27, %s10819_s28  ;;  %3312 = vrot.lane.b32.xlu0 %v3193_v27, %s10854_s6  ;;  %s10856_s28 = smov 48  }
0x18f8   : > { %3557 = vrot.lane.b32.xlu1 %v3193_v27, %s10821_s11  ;;  %3434 = vrot.lane.b32.xlu0 %v3193_v27, %s10851_s22 }
0x18fc   : > { %3555 = vrot.lane.b32.xlu0 %v3193_v27, %s10852_s21 }
0x1962   : > { %v3315_v30 = vpop.permute.xlu1 %3314  ;;  %v3197_v31 = vpop.permute.xlu0 %3196 }
0x1963   : > { %v3320_v32 = vsel %vm1078_vm3, %v3315_v30, 0  ;;  %v3202_v33 = vsel %vm1078_vm3, %v3197_v31, 0 }
0x1964   : > { %7958 = vmatpush3.bf16.xpose.msra.mxu1 %v3202_v33  ;;  %7970 = vmatpush3.bf16.xpose.msra.mxu0 %v3320_v32 }
0x1965   : > { %7963 = vmatprep.subr.bf16.mxu1 %v9372_v0  ;;  %7981 = vmatprep.subr.bf16.mxu0 %v9372_v0 }
0x1966   : > { %v3437_v34 = vpop.permute.xlu1 %3436  ;;  %v3313_v35 = vpop.permute.xlu0 %3312 }
0x1967   : > { %v3442_v36 = vsel %vm1078_vm3, %v3437_v34, 0 }
0x196a   : > { %v3558_v24 = vpop.permute.xlu1 %3557  ;;  %v3435_v37 = vpop.permute.xlu0 %3434 }
0x196b   : > { %7960 = vmatmul.mubr.msk.bf16.vlgmr.msra.gmra.mrb[56].mxu1 %vm1078_vm3, %v3193_v27  ;;  %7972 = vmatmul.mubr.msk.bf16.vlgmr.msra.gmra.mrb[56].mxu0 %vm1078_vm3, %v3313_v35  ;;  %v3563_v54 = vsel %vm1078_vm3, %v3558_v24, 0 }
0x196c   : > { %7964 = vmatpush3.bf16.msra.mxu1 %v10172_v29  ;;  %7982 = vmatpush3.bf16.xpose.msra.mxu0 %v3442_v36 }
0x196d   : > { %7983 = vmatprep.mubr.msk.bf16.mxu0 %vm9373_vm0, %v9372_v0  ;;  %7993 = vmatprep.subr.bf16.mxu0 %v9372_v0 }
0x196e   : > { %7965 = vmatprep.mubr.msk.bf16.mxu1 %vm9373_vm0, %v9372_v0  ;;  %7975 = vmatprep.subr.bf16.mxu1 %v9372_v0  ;;  %v3556_v39 = vpop.permute.xlu0 %3555 }
0x1973   : > { %7984 = vmatmul.mubr.msk.bf16.vlgmr.msra.gmra.mrb[60].mxu0 %vm1078_vm3, %v3435_v37 }
0x1974   : > { %7994 = vmatpush3.bf16.xpose.msra.mxu0 %v3563_v54  ;;  %7995 = vmatprep.mubr.msk.bf16.mxu0 %vm9373_vm0, %v9372_v0 }
0x1975   : > { %8005 = vmatprep.subr.bf16.mxu0 %v9372_v0 }
0x197b   : > { %7996 = vmatmul.mubr.msk.bf16.vlgmr.msra.gmra.mrb[64].mxu0 %vm1078_vm3, %v3556_v39 }
0x197c   : > { %8013 = vmatprep.mubr.msk.bf16.mxu0 %vm9373_vm0, %v9372_v0 }
0x1a3e   : > { %v3238_v40 = vpop.f32.mrb[56].mxu1  ;;  %v3356_v42 = vpop.f32.mrb[56].mxu0 }
0x1a3f   : > { %v7961_v43 = vpop.f32.mrb[57].mxu1  ;;  %v7973_v44 = vpop.f32.mrb[57].mxu0  ;;  %v3245_v46 = vsel %vm1078_vm3, %v3238_v40, -inf  ;;  %v3363_v56 = vsel %vm1078_vm3, %v3356_v42, -inf }
0x1a40   : > { %v3359_v47 = vpop.f32.mrb[58].mxu0  ;;  %3246 = vmax.xlane.f32.xlu1 %v3245_v46  ;;  %v3241_v48 = vpop.f32.mrb[58].mxu1 }
0x1a41   : > { %v7962_v51 = vpop.f32.mrb[59].mxu1  ;;  %v7974_v5 = vpop.f32.mrb[59].mxu0  ;;  %v3248_v53 = vsel %vm1078_vm3, %v3241_v48, -inf  ;;  %v3366_v49 = vsel %vm1078_vm3, %v3359_v47, -inf }
0x1a42   : > { %3249 = vmax.xlane.f32.xlu0 %v3248_v53 }
0x1a44   : > { %3367 = vmax.xlane.f32.xlu1 %v3366_v49 }
0x1a46   : > { %v3478_v57 = vpop.f32.mrb[60].mxu0  ;;  %3364 = vmax.xlane.f32.xlu0 %v3363_v56 }
0x1a47   : > { %v7985_v58 = vpop.f32.mrb[61].mxu0  ;;  %v3485_v25 = vsel %vm1078_vm3, %v3478_v57, -inf }
0x1a48   : > { %v3481_v59 = vpop.f32.mrb[62].mxu0 }
0x1a49   : > { %v7986_v60 = vpop.f32.mrb[63].mxu0  ;;  %v3488_v61 = vsel %vm1078_vm3, %v3481_v59, -inf }
0x1a4a   : > { %3489 = vmax.xlane.f32.xlu1 %v3488_v61  ;;  %3486 = vmax.xlane.f32.xlu0 %v3485_v25 }
0x1a4e   : > { %v3599_v62 = vpop.f32.mrb[64].mxu0 }
0x1a4f   : > { %v7997_v63 = vpop.f32.mrb[65].mxu0  ;;  %v3606_v1 = vsel %vm1078_vm3, %v3599_v62, -inf }
0x1a50   : > { %v3602_v28 = vpop.f32.mrb[66].mxu0  ;;  %3607 = vmax.xlane.f32.xlu0 %v3606_v1 }
0x1a51   : > { %v7998_v2 = vpop.f32.mrb[67].mxu0  ;;  %v3609_v4 = vsel %vm1078_vm3, %v3602_v28, -inf }
0x1a52   : > { %3610 = vmax.xlane.f32.xlu1 %v3609_v4 }
0x1acd   : > { %v3247_v6 = vpop.xlane.xlu1 %3246 }
0x1ace   : > { %v3251_v8 = vsub.f32 %v3238_v40, %v3247_v6 }
0x1acf   : > { %v3250_v9 = vpop.xlane.xlu0 %3249 }
0x1ad0   : > { %v3253_v10 = vmul.f32 1.442695, %v3251_v8  ;;  %v3252_v11 = vsub.f32 %v3241_v48, %v3250_v9 }
0x1ad1   : > { %v3368_v14 = vpop.xlane.xlu1 %3367 }
0x1ad2   : > { %8974 = vpow2.f32 %v3253_v10  ;;  %v3255_v15 = vmul.f32 1.442695, %v3252_v11  ;;  %v3370_v52 = vsub.f32 %v3359_v47, %v3368_v14 }
0x1ad3   : > { %v3365_v17 = vpop.xlane.xlu0 %3364 }
0x1ad4   : > { %8976 = vpow2.f32 %v3255_v15  ;;  %v3373_v19 = vmul.f32 1.442695, %v3370_v52  ;;  %v3369_v21 = vsub.f32 %v3356_v42, %v3365_v17 }
0x1ad6   : > { %8978 = vpow2.f32 %v3373_v19  ;;  %v3371_v55 = vmul.f32 1.442695, %v3369_v21 }
0x1ad7   : > { %v3490_v23 = vpop.xlane.xlu1 %3489  ;;  %v3487_v26 = vpop.xlane.xlu0 %3486 }
0x1ad8   : > { %8980 = vpow2.f32 %v3371_v55  ;;  %v3492_v27 = vsub.f32 %v3481_v59, %v3490_v23  ;;  %v3491_v30 = vsub.f32 %v3478_v57, %v3487_v26 }
0x1ada   : > { %v3495_v31 = vmul.f32 1.442695, %v3492_v27  ;;  %v3493_v32 = vmul.f32 1.442695, %v3491_v30 }
0x1adc   : > { %v8975_v33 = vpop.eup %8974  ;;  %8982 = vpow2.f32 %v3495_v31 }
0x1add   : > { %8984 = vpow2.f32 %v3493_v32  ;;  %v3608_v34 = vpop.xlane.xlu0 %3607  ;;  %v3257_v35 = vsel %vm1078_vm3, %v8975_v33, 0.0 }
0x1ade   : > { %v8977_v36 = vpop.eup %8976  ;;  %v3612_v24 = vsub.f32 %v3599_v62, %v3608_v34  ;;  %3258 = vadd.xlane.f32.xlu0 %v3257_v35 }
0x1adf   : > { %v3260_v37 = vsel %vm1078_vm3, %v8977_v36, 0.0  ;;  %v3611_v53 = vpop.xlane.xlu1 %3610 }
0x1ae0   : > { %v8979_v54 = vpop.eup %8978  ;;  %v3614_v39 = vmul.f32 1.442695, %v3612_v24  ;;  %3261 = vadd.xlane.f32.xlu1 %v3260_v37  ;;  %v3613_v49 = vsub.f32 %v3602_v28, %v3611_v53 }
0x1ae1   : > { %v3378_v42 = vsel %vm1078_vm3, %v8979_v54, 0.0 }
0x1ae2   : > { %v8981_v40 = vpop.eup %8980  ;;  %8986 = vpow2.f32 %v3614_v39  ;;  %v3616_v56 = vmul.f32 1.442695, %v3613_v49 }
0x1ae3   : > { %v3375_v43 = vsel %vm1078_vm3, %v8981_v40, 0.0 }
0x1ae4   : > { %3379 = vadd.xlane.f32.xlu1 %v3378_v42  ;;  %3376 = vadd.xlane.f32.xlu0 %v3375_v43  ;;  %8988 = vpow2.f32 %v3616_v56  ;;  %v8852_v42 = vld [vmem:[%s10850_s13 + $0x40] sm:$0xff]   ;;  %v8855_v56 = vld [vmem:[%s10850_s13 + $0x58] sm:$0xff]  }
0x1ae5   : > { %8006 = vmatpush3.bf16.msra.mxu0 %v8852_v42 }
0x1ae6   : > { %v8983_v44 = vpop.eup %8982  ;;  %8007 = vmatprep.subr.bf16.mxu0 %v9372_v0 }
0x1ae7   : > { %v8985_v46 = vpop.eup %8984  ;;  %v3500_v47 = vsel %vm1078_vm3, %v8983_v44, 0.0 }
0x1ae8   : > { %3501 = vadd.xlane.f32.xlu1 %v3500_v47  ;;  %v3497_v48 = vsel %vm1078_vm3, %v8985_v46, 0.0 }
0x1ae9   : > { %3498 = vadd.xlane.f32.xlu0 %v3497_v48  ;;  %v8854_v48 = vld [vmem:[%s10850_s13 + $0x50] sm:$0xff]  }
0x1aec   : > { %v8987_v51 = vpop.eup %8986 }
0x1aed   : > { %v3618_v5 = vsel %vm1078_vm3, %v8987_v51, 0.0 }
0x1aee   : > { %3619 = vadd.xlane.f32.xlu0 %v3618_v5  ;;  %v8989_v57 = vpop.eup %8988 }
0x1aef   : > { %v3621_v58 = vsel %vm1078_vm3, %v8989_v57, 0.0 }
0x1af9   : > { %3508 = vrot.lane.b32.xlu1 %v10172_v29, %s10851_s22 }
0x1b04   : > { %3387 = vrot.lane.b32.xlu0 %v10172_v29, %s10854_s6 }
0x1b1d   : > { %3622 = vadd.xlane.f32.xlu1 %v3621_v58 }
0x1b2e   : > { %3629 = vrot.lane.b32.xlu1 %v10172_v29, %s10852_s21 }
0x1b6b   : > { %v3259_v59 = vpop.xlane.xlu0 %3258 }
0x1b6c   : > { %8990 = vrcp.f32 %v3259_v59 }
0x1b6d   : > { %v3262_v60 = vpop.xlane.xlu1 %3261 }
0x1b6e   : > { %8992 = vrcp.f32 %v3262_v60 }
0x1b71   : > { %v3380_v61 = vpop.xlane.xlu1 %3379  ;;  %v3377_v25 = vpop.xlane.xlu0 %3376 }
0x1b72   : > { %8994 = vrcp.f32 %v3380_v61 }
0x1b73   : > { %8996 = vrcp.f32 %v3377_v25 }
0x1b75   : > { %v3502_v63 = vpop.xlane.xlu1 %3501 }
0x1b76   : > { %v8991_v62 = vpop.eup %8990  ;;  %v3499_v1 = vpop.xlane.xlu0 %3498  ;;  %8998 = vrcp.f32 %v3502_v63 }
0x1b77   : > { %v3265_v2 = vmul.f32 %v8991_v62, %v8975_v33  ;;  %9000 = vrcp.f32 %v3499_v1 }
0x1b78   : > { %v8993_v28 = vpop.eup %8992 }
0x1b79   : > { %v3266_v4 = vmul.f32 %v8993_v28, %v8977_v36  ;;  %v3509_v19 = vpop.permute.xlu1 %3508 }
0x1b7b   : > { %v3620_v6 = vpop.xlane.xlu0 %3619  ;;  %v3267_v8 = vpack.c.bf16 %v3266_v4, %v3265_v2 }
0x1b7c   : > { %v8995_v9 = vpop.eup %8994  ;;  %9002 = vrcp.f32 %v3620_v6 }
0x1b7d   : > { %v8997_v29 = vpop.eup %8996  ;;  %7966 = vmatmul.mubr.msk.bf16.vlgmr.msra.gmra.mrb[60].mxu1 %vm1078_vm3, %v3267_v8  ;;  %v3384_v10 = vmul.f32 %v8995_v9, %v8979_v54 }
0x1b7e   : > { %7977 = vmatprep.mubr.msk.bf16.mxu1 %vm9373_vm0, %v9372_v0  ;;  %v3383_v11 = vmul.f32 %v8997_v29, %v8981_v40 }
0x1b7f   : > { %v3388_v14 = vpop.permute.xlu0 %3387 }
0x1b80   : > { %7976 = vmatpush3.bf16.msra.mxu1 %v3388_v14  ;;  %v8999_v15 = vpop.eup %8998  ;;  %v3385_v52 = vpack.c.bf16 %v3384_v10, %v3383_v11 }
0x1b81   : > { %7987 = vmatprep.subr.bf16.mxu1 %v9372_v0  ;;  %v9001_v17 = vpop.eup %9000  ;;  %v3506_v21 = vmul.f32 %v8999_v15, %v8983_v44 }
0x1b82   : > { %v3505_v55 = vmul.f32 %v9001_v17, %v8985_v46  ;;  %v8853_v46 = vld [vmem:[%s10850_s13 + $0x48] sm:$0xff]  }
0x1b83   : > { %8008 = vmatpush3.bf16.msra.mxu0 %v8853_v46  ;;  %v7218_v17 = vld [vmem:[#allocation11 + $0x2] ss:$0 sm:$0xff] }
0x1b84   : > { %v3507_v23 = vpack.c.bf16 %v3506_v21, %v3505_v55  ;;  %8009 = vmatprep.subr.bf16.mxu0 %v9372_v0 }
0x1b85   : > { %7978 = vmatmul.mubr.msk.bf16.vlgmr.msra.gmra.mrb[64].mxu1 %vm1078_vm3, %v3385_v52 }
0x1b86   : > { %7988 = vmatpush3.bf16.msra.mxu1 %v3509_v19  ;;  %7989 = vmatprep.mubr.msk.bf16.mxu1 %vm9373_vm0, %v9372_v0  ;;  %v9003_v30 = vpop.eup %9002 }
0x1b87   : > { %7999 = vmatprep.subr.bf16.mxu1 %v9372_v0  ;;  %v3626_v32 = vmul.f32 %v9003_v30, %v8987_v51  ;;  %8010 = vmatpush3.bf16.msra.mxu0 %v8854_v48 }
0x1b88   : > { %8011 = vmatprep.subr.bf16.mxu0 %v9372_v0 }
0x1b8b   : > { %8012 = vmatpush3.bf16.msra.mxu0 %v8855_v56 }
0x1b8c   : > { %8497 = vmatprep.subr.bf16.mxu0 %v9374_v13 }
0x1b8d   : > { %7990 = vmatmul.mubr.msk.bf16.vlgmr.msra.gmra.mrb[68].mxu1 %vm1078_vm3, %v3507_v23 }
0x1b8e   : > { %8001 = vmatprep.mubr.msk.bf16.mxu1 %vm9373_vm0, %v9372_v0 }
0x1baa   : > { %v3623_v26 = vpop.xlane.xlu1 %3622 }
0x1bab   : > { %9004 = vrcp.f32 %v3623_v26 }
0x1bae   : > { %v3630_v27 = vpop.permute.xlu1 %3629 }
0x1baf   : > { %8000 = vmatpush3.bf16.msra.mxu1 %v3630_v27 }
0x1bb0   : > { %8485 = vmatprep.subr.bf16.mxu1 %v9374_v13 }
0x1bb5   : > { %v9005_v31 = vpop.eup %9004 }
0x1bb6   : > { %v3627_v33 = vmul.f32 %v9005_v31, %v8989_v57 }
0x1bb8   : > { %v3628_v34 = vpack.c.bf16 %v3627_v33, %v3626_v32 }
0x1bba   : > { %8002 = vmatmul.mubr.msk.bf16.vlgmr.msra.gmra.mrb[72].mxu1 %vm1078_vm3, %v3628_v34 }
0x1bbb   : > { %8487 = vmatpush3.bf16.msra.mxu1 %v9745_v12  ;;  %8033 = vmatprep.mubr.msk.f32.mxu1 %vm9373_vm0, %v9372_v0 }
0x1bbc   : > { %8488 = vmatprep.subr.bf16.mxu1 %v9374_v13 }
0x1bbf   : > { %8490 = vmatpush3.bf16.msra.mxu1 %v9756_v16 }
0x1bc0   : > { %8491 = vmatprep.subr.bf16.mxu1 %v9374_v13 }
0x1bc3   : > { %8493 = vmatpush3.bf16.msra.mxu1 %v9769_v20 }
0x1bc4   : > { %8494 = vmatprep.subr.bf16.mxu1 %v9374_v13 }
0x1bc7   : > { %8496 = vmatpush3.bf16.msra.mxu1 %v9775_v22 }
0x1bc8   : > { %8503 = vmatprep.subr.bf16.mxu1 %v9374_v13 }
0x1c50   : > { %v3305_v35 = vpop.f32.mrb[60].mxu1 }
0x1c51   : > { %v7967_v36 = vpop.f32.mrb[61].mxu1 }
0x1c52   : > { %v3308_v24 = vpop.f32.mrb[62].mxu1 }
0x1c53   : > { %v7968_v37 = vpop.f32.mrb[63].mxu1 }
0x1c58   : > { %v3427_v54 = vpop.f32.mrb[64].mxu1 }
0x1c59   : > { %v7979_v39 = vpop.f32.mrb[65].mxu1 }
0x1c5a   : > { %v3430_v40 = vpop.f32.mrb[66].mxu1 }
0x1c5b   : > { %v8739_v43 = vpack.i.bf16 %v3430_v40, %v3427_v54  ;;  %v7980_v44 = vpop.f32.mrb[67].mxu1 }
0x1c5d   : > { %8740 = vrot.lane.b32.xlu0 %v8739_v43, %s10821_s11 }
0x1c60   : > { %v3548_v47 = vpop.f32.mrb[68].mxu1 }
0x1c61   : > { %v7991_v51 = vpop.f32.mrb[69].mxu1 }
0x1c62   : > { %v3551_v5 = vpop.f32.mrb[70].mxu1 }
0x1c63   : > { %v8744_v53 = vpack.i.bf16 %v3551_v5, %v3548_v47  ;;  %v7992_v49 = vpop.f32.mrb[71].mxu1 }
0x1c65   : > { %8745 = vrot.lane.b32.xlu1 %v8744_v53, %s10855_s24 }
0x1c8d   : > { %v3669_v57 = vpop.f32.mrb[72].mxu1 }
0x1c8e   : > { %v8003_v58 = vpop.f32.mrb[73].mxu1 }
0x1c8f   : > { %v3672_v59 = vpop.f32.mrb[74].mxu1 }
0x1c90   : > { %v8749_v60 = vpack.i.bf16 %v3672_v59, %v3669_v57  ;;  %v8004_v61 = vpop.f32.mrb[75].mxu1 }
0x1c92   : > { %8750 = vrot.lane.b32.xlu0 %v8749_v60, %s10856_s28 }
0x1ccf   : > { %v8741_v25 = vpop.permute.xlu0 %8740 }
0x1cd0   : > { %v8743_v63 = vunpack.i.h.bf16 %v8741_v25  ;;  %v8742_v1 = vunpack.i.l.bf16 %v8741_v25 }
0x1cd2   : > { %v3701_v6 = vsel %vm1078_vm3, %v3308_v24, %v8743_v63  ;;  %v3700_v8 = vsel %vm1078_vm3, %v3305_v35, %v8742_v1  ;;  %v8858_v1 = vld [vmem:[#allocation8 + $0xc4] ss:$8 sps:$4 sm:$0xff]  }
0x1cd7   : > { %v8746_v62 = vpop.permute.xlu1 %8745 }
0x1cd8   : > { %v8748_v28 = vunpack.i.h.bf16 %v8746_v62  ;;  %v8747_v2 = vunpack.i.l.bf16 %v8746_v62 }
0x1cda   : > { %v3703_v10 = vsel %vm714_vm2, %v3701_v6, %v8748_v28  ;;  %v3702_v11 = vsel %vm714_vm2, %v3700_v8, %v8747_v2  ;;  %v8856_v28 = vld [vmem:[#allocation8 + $0xc0] ss:$8 sps:$4 sm:$0xff]   ;;  %v8861_v2 = vld [vmem:[#allocation8 + $0xd4] ss:$8 sps:$4 sm:$0xff]   ;;  %v8864_v6 = vld [vmem:[#allocation8 + $0xe4] ss:$8 sps:$4 sm:$0xff]  }
0x1cdb   : > { %v8862_v8 = vld [vmem:[#allocation8 + $0xe0] ss:$8 sps:$4 sm:$0xff]  }
0x1d04   : > { %v8751_v4 = vpop.permute.xlu0 %8750 }
0x1d05   : > { %v8753_v9 = vunpack.i.h.bf16 %v8751_v4  ;;  %v8752_v29 = vunpack.i.l.bf16 %v8751_v4  ;;  %v8859_v4 = vld [vmem:[#allocation8 + $0xd0] ss:$8 sps:$4 sm:$0xff]  }
0x1d07   : > { %v3705_v14 = vsel %vm1585_vm4, %v3703_v10, %v8753_v9  ;;  %v3704_v15 = vsel %vm1585_vm4, %v3702_v11, %v8752_v29  ;;  %v8867_v9 = vld [vmem:[#allocation8 + $0xf4] ss:$8 sps:$4 sm:$0xff]   ;;  %v8865_v29 = vld [vmem:[#allocation8 + $0xf0] ss:$8 sps:$4 sm:$0xff]  }
0x1d08   : > { %v3706_v52 = vpack.c.bf16 %v3705_v14, %v3704_v15 }
0x1d0a   : > { %8014 = vmatmul.mubr.msk.bf16.vlgmr.msra.gmra.mrb[68].mxu0 %vm618_vm1, %v3706_v52 }
0x1d0b   : > { %8499 = vmatpush3.bf16.msra.mxu0 %v9797_v41  ;;  %8044 = vmatprep.mubr.msk.f32.mxu0 %vm9373_vm0, %v9372_v0 }
0x1d0c   : > { %8500 = vmatprep.subr.bf16.mxu0 %v9374_v13 }
0x1d0f   : > { %8502 = vmatpush3.bf16.msra.mxu0 %v9807_v45 }
0x1d10   : > { %8515 = vmatprep.subr.bf16.mxu0 %v9374_v13 }
0x1ddd   : > { %v3768_v19 = vpop.f32.mrb[68].mxu0 }
0x1dde   : > { %v3775_v21 = vadd.f32 %v3768_v19, %v10129_v3  ;;  %v8015_v55 = vpop.f32.mrb[69].mxu0 }
0x1ddf   : > { %v3771_v23 = vpop.f32.mrb[70].mxu0  ;;  %v7232_v55 = vld [vmem:[#allocation7 + $0x3] ss:$0 sm:$0xff] }
0x1de0   : > { %v10281_v26 = vadd.f32 %v7218_v17, %v3775_v21  ;;  %v3776_v27 = vadd.f32 %v3771_v23, %v10132_v7  ;;  %v8016_v30 = vpop.f32.mrb[71].mxu0 }
0x1de2   : > { %v10284_v31 = vadd.f32 %v7218_v17, %v3776_v27  ;;  %v3811_v32 = vsel %vm618_vm1, %v10281_v26, 0.0  ;;  %v7231_v17 = vld [vmem:[#allocation5 + $0x3] ss:$0 sm:$0xff] }
0x1de4   : > { %v3812_v33 = vsel %vm618_vm1, %v10284_v31, 0.0 }
0x1de5   : > { %v3813_v34 = vadd.f32 %v3812_v33, %v3811_v32 }
0x1de7   : > { %v3814_v35 = vrot.slane %v3813_v34, 4 }
0x1de9   : > { %v3815_v36 = vadd.f32 %v3814_v35, %v3813_v34  ;;  %v3799_v34 = vld [vmem:[#allocation10 + $0x6] sm:$0x3] }
0x1dea   : > { %v4159_v35 = vrot.slane %v3799_v34, %v9828_v50 }
0x1deb   : > { %v3816_v24 = vrot.slane %v3815_v36, 2 }
0x1ded   : > { %v3817_v3 = vadd.f32 %v3816_v24, %v3815_v36  ;;  %v4163_v24 = vrot.slane %v3799_v34, %v9852_v38 }
0x1def   : > { %v3818_v37 = vrot.slane %v3817_v3, 1 }
0x1df1   : > { %v3819_v54 = vadd.f32 %v3818_v37, %v3817_v3 }
0x1df3   : > { %v3820_v39 = vmul.f32 0.0625, %v3819_v54 }
0x1df5   : > { %8034 = vmatmul.mubr.msk.f32.vlgmr.msra.gmra.mrb[76].mxu1 %vm618_vm1, %v3820_v39 }
0x1df6   : > { %8505 = vmatpush3.bf16.msra.mxu1 %v9745_v12  ;;  %8063 = vmatprep.mubr.msk.f32.mxu1 %vm9373_vm0, %v9372_v0 }
0x1df7   : > { %8506 = vmatprep.subr.bf16.mxu1 %v9374_v13 }
0x1dfa   : > { %8508 = vmatpush3.bf16.msra.mxu1 %v9756_v16 }
0x1dfb   : > { %8509 = vmatprep.subr.bf16.mxu1 %v9374_v13 }
0x1dfe   : > { %8511 = vmatpush3.bf16.msra.mxu1 %v9769_v20 }
0x1dff   : > { %8512 = vmatprep.subr.bf16.mxu1 %v9374_v13 }
0x1e02   : > { %8514 = vmatpush3.bf16.msra.mxu1 %v9775_v22 }
0x1e03   : > { %8077 = vmatprep.subr.bf16.mxu1 %v9372_v0 }
0x1ec8   : > { %v3890_v7 = vpop.f32.mrb[76].mxu1 }
0x1ec9   : > { %v8035_v40 = vpop.f32.mrb[77].mxu1  ;;  %8045 = vmatmul.mubr.msk.f32.vlgmr.msra.gmra.mrb[72].mxu0 %vm714_vm2, %v3890_v7 }
0x1eca   : > { %8517 = vmatpush3.bf16.msra.mxu0 %v9797_v41  ;;  %8074 = vmatprep.mubr.msk.f32.mxu0 %vm9373_vm0, %v9372_v0 }
0x1ecb   : > { %8518 = vmatprep.subr.bf16.mxu0 %v9374_v13 }
0x1ece   : > { %8520 = vmatpush3.bf16.msra.mxu0 %v9807_v45 }
0x1ecf   : > { %4209 = vmatprep.subr.bf16.mxu0 %v8858_v1 }
0x1f9c   : > { %v3963_v42 = vpop.f32.mrb[72].mxu0 }
0x1f9d   : > { %v3970_v43 = vrot.slane %v3963_v42, %v9828_v50  ;;  %v8046_v44 = vpop.f32.mrb[73].mxu0 }
0x1f9f   : > { %v3971_v46 = vsub.f32 %v10281_v26, %v3970_v43  ;;  %v3972_v47 = vsub.f32 %v10284_v31, %v3970_v43 }
0x1fa1   : > { %v3973_v48 = vmul.f32 %v3971_v46, %v3971_v46  ;;  %v3974_v51 = vmul.f32 %v3972_v47, %v3972_v47 }
0x1fa3   : > { %v3975_v5 = vsel %vm618_vm1, %v3973_v48, 0.0  ;;  %v3976_v53 = vsel %vm618_vm1, %v3974_v51, 0.0 }
0x1fa4   : > { %v3977_v49 = vadd.f32 %v3976_v53, %v3975_v5 }
0x1fa6   : > { %v3978_v56 = vrot.slane %v3977_v49, 4 }
0x1fa8   : > { %v3979_v57 = vadd.f32 %v3978_v56, %v3977_v49 }
0x1faa   : > { %v3980_v58 = vrot.slane %v3979_v57, 2 }
0x1fac   : > { %v3981_v59 = vadd.f32 %v3980_v58, %v3979_v57 }
0x1fae   : > { %v3982_v60 = vrot.slane %v3981_v59, 1 }
0x1fb0   : > { %v3983_v61 = vadd.f32 %v3982_v60, %v3981_v59 }
0x1fb2   : > { %v3984_v25 = vmul.f32 0.0625, %v3983_v61 }
0x1fb4   : > { %8064 = vmatmul.mubr.msk.f32.vlgmr.msra.gmra.mrb[78].mxu1 %vm618_vm1, %v3984_v25 }
0x1fb5   : > { %8079 = vmatprep.mubr.msk.bf16.mxu1 %vm9373_vm0, %v9372_v0 }
0x2087   : > { %v4054_v62 = vpop.f32.mrb[78].mxu1 }
0x2088   : > { %v8065_v63 = vpop.f32.mrb[79].mxu1  ;;  %8075 = vmatmul.mubr.msk.f32.vlgmr.msra.gmra.mrb[74].mxu0 %vm714_vm2, %v4054_v62 }
0x2089   : > { %4241 = vmatprep.mubr.bf16.mxu0 %v9375_v18  ;;  %4210 = vmatpush1.bf16.msra.mxu0 %v8856_v28 }
0x208a   : > { %4211 = vmatprep.subr.bf16.mxu0 %v8861_v2 }
0x208d   : > { %4212 = vmatpush1.bf16.msra.mxu0 %v8859_v4 }
0x208e   : > { %4213 = vmatprep.subr.bf16.mxu0 %v8864_v6 }
0x2091   : > { %4214 = vmatpush1.bf16.msra.mxu0 %v8862_v8 }
0x2092   : > { %4215 = vmatprep.subr.bf16.mxu0 %v8867_v9 }
0x2095   : > { %4216 = vmatpush1.bf16.msra.mxu0 %v8865_v29 }
0x2096   : > { %8089 = vmatprep.subr.bf16.mxu0 %v9372_v0 }
0x215b   : > { %v4127_v10 = vpop.f32.mrb[74].mxu0 }
0x215c   : > { %v4128_v11 = vadd.f32 1e-05, %v4127_v10  ;;  %v8076_v14 = vpop.f32.mrb[75].mxu0 }
0x215e   : > { %9006 = vrsqrt.f32 %v4128_v11 }
0x2168   : > { %v9007_v15 = vpop.eup %9006 }
0x2169   : > { %v4135_v52 = vrot.slane %v9007_v15, %v9828_v50 }
0x216b   : > { %v4136_v19 = vmul.f32 %v4135_v52, %v3971_v46  ;;  %v4137_v21 = vmul.f32 %v4135_v52, %v3972_v47 }
0x216d   : > { %v4144_v23 = vmul.f32 %v7231_v17, %v4136_v19  ;;  %v4145_v27 = vmul.f32 %v7231_v17, %v4137_v21 }
0x216f   : > { %v4152_v30 = vadd.f32 %v7232_v55, %v4144_v23  ;;  %v4153_v32 = vadd.f32 %v7232_v55, %v4145_v27 }
0x2171   : > { %v4154_v33 = vpack.c.bf16 %v4153_v32, %v4152_v30 }
0x2173   : > { %7241 = vmatmul.mubr.msk.bf16.vlgmr.msra.gmra.mrb[76].mxu0 %vm618_vm1, %v4154_v33 }
0x2174   : > { %8091 = vmatprep.mubr.msk.bf16.mxu0 %vm9373_vm0, %v9372_v0 }
0x2246   : > { %v4243_v36 = vpop.f32.mrb[76].mxu0 }
0x2247   : > { %v4245_v3 = vpop.f32.mrb[77].mxu0  ;;  %v4244_v54 = vadd.f32 %v4243_v36, %v4159_v35 }
0x2248   : > { %v4247_v37 = vpop.f32.mrb[78].mxu0  ;;  %v4246_v40 = vadd.f32 %v4245_v3, %v4163_v24 }
0x2249   : > { %v4248_v39 = vadd.f32 %v4247_v37, %v4159_v35  ;;  %v4249_v7 = vpop.f32.mrb[79].mxu0 }
0x224a   : > { %v4250_v42 = vadd.f32 %v4249_v7, %v4163_v24 }
0x224b   : > { %v4252_v43 = vpack.c.bf16 %v4248_v39, %v4244_v54 }
0x224c   : > { %v10324_v44 = vpack.c.bf16 %v4250_v42, %v4246_v40 }
0x224d   : > { %4373 = vrot.lane.b32.xlu0 %v4252_v43, %s10856_s28  ;;  %4255 = vrot.lane.b32.xlu1 %v4252_v43, %s10853_s27 }
0x2251   : > { %4495 = vrot.lane.b32.xlu0 %v4252_v43, %s10855_s24  ;;  %4371 = vrot.lane.b32.xlu1 %v4252_v43, %s10854_s6 }
0x2255   : > { %4616 = vrot.lane.b32.xlu0 %v4252_v43, %s10821_s11  ;;  %4493 = vrot.lane.b32.xlu1 %v4252_v43, %s10851_s22 }
0x2259   : > { %4614 = vrot.lane.b32.xlu1 %v4252_v43, %s10852_s21 }
0x22bf   : > { %v4374_v46 = vpop.permute.xlu0 %4373  ;;  %v4256_v47 = vpop.permute.xlu1 %4255 }
0x22c0   : > { %v4379_v48 = vsel %vm1078_vm3, %v4374_v46, 0  ;;  %v4261_v51 = vsel %vm1078_vm3, %v4256_v47, 0 }
0x22c1   : > { %8078 = vmatpush3.bf16.xpose.msra.mxu1 %v4261_v51  ;;  %8090 = vmatpush3.bf16.xpose.msra.mxu0 %v4379_v48 }
0x22c2   : > { %8083 = vmatprep.subr.bf16.mxu1 %v9372_v0  ;;  %8101 = vmatprep.subr.bf16.mxu0 %v9372_v0 }
0x22c3   : > { %v4496_v5 = vpop.permute.xlu0 %4495  ;;  %v4372_v53 = vpop.permute.xlu1 %4371 }
0x22c4   : > { %v4501_v49 = vsel %vm1078_vm3, %v4496_v5, 0 }
0x22c7   : > { %v4617_v56 = vpop.permute.xlu0 %4616  ;;  %v4494_v57 = vpop.permute.xlu1 %4493 }
0x22c8   : > { %8080 = vmatmul.mubr.msk.bf16.vlgmr.msra.gmra.mrb[80].mxu1 %vm1078_vm3, %v4252_v43  ;;  %8092 = vmatmul.mubr.msk.bf16.vlgmr.msra.gmra.mrb[80].mxu0 %vm1078_vm3, %v4372_v53  ;;  %v4622_v58 = vsel %vm1078_vm3, %v4617_v56, 0 }
0x22c9   : > { %8084 = vmatpush3.bf16.msra.mxu1 %v10324_v44  ;;  %8102 = vmatpush3.bf16.xpose.msra.mxu0 %v4501_v49 }
0x22ca   : > { %8103 = vmatprep.mubr.msk.bf16.mxu0 %vm9373_vm0, %v9372_v0  ;;  %8113 = vmatprep.subr.bf16.mxu0 %v9372_v0 }
0x22cb   : > { %8085 = vmatprep.mubr.msk.bf16.mxu1 %vm9373_vm0, %v9372_v0  ;;  %8095 = vmatprep.subr.bf16.mxu1 %v9372_v0  ;;  %v4615_v59 = vpop.permute.xlu1 %4614 }
0x22d0   : > { %8104 = vmatmul.mubr.msk.bf16.vlgmr.msra.gmra.mrb[84].mxu0 %vm1078_vm3, %v4494_v57 }
0x22d1   : > { %8114 = vmatpush3.bf16.xpose.msra.mxu0 %v4622_v58  ;;  %8115 = vmatprep.mubr.msk.bf16.mxu0 %vm9373_vm0, %v9372_v0 }
0x22d2   : > { %8125 = vmatprep.subr.bf16.mxu0 %v9372_v0 }
0x22d8   : > { %8116 = vmatmul.mubr.msk.bf16.vlgmr.msra.gmra.mrb[88].mxu0 %vm1078_vm3, %v4615_v59 }
0x22d9   : > { %8133 = vmatprep.mubr.msk.bf16.mxu0 %vm9373_vm0, %v9372_v0 }
0x239b   : > { %v4297_v60 = vpop.f32.mrb[80].mxu1  ;;  %v10355_v61 = vpop.f32.mrb[80].mxu0 }
0x239c   : > { %v8081_v25 = vpop.f32.mrb[81].mxu1  ;;  %v8093_v62 = vpop.f32.mrb[81].mxu0  ;;  %v4304_v63 = vsel %vm1078_vm3, %v4297_v60, -inf  ;;  %v4422_v8 = vsel %vm1078_vm3, %v10355_v61, -inf }
0x239d   : > { %v4418_v1 = vpop.f32.mrb[82].mxu0  ;;  %4305 = vmax.xlane.f32.xlu0 %v4304_v63  ;;  %v4300_v28 = vpop.f32.mrb[82].mxu1 }
0x239e   : > { %v8082_v2 = vpop.f32.mrb[83].mxu1  ;;  %v8094_v4 = vpop.f32.mrb[83].mxu0  ;;  %v4307_v6 = vsel %vm1078_vm3, %v4300_v28, -inf  ;;  %v4425_v10 = vsel %vm1078_vm3, %v4418_v1, -inf }
0x239f   : > { %4308 = vmax.xlane.f32.xlu1 %v4307_v6 }
0x23a1   : > { %4423 = vmax.xlane.f32.xlu0 %v4422_v8 }
0x23a3   : > { %v4537_v9 = vpop.f32.mrb[84].mxu0 }
0x23a4   : > { %v8105_v29 = vpop.f32.mrb[85].mxu0  ;;  %v4544_v11 = vsel %vm1078_vm3, %v4537_v9, -inf }
0x23a5   : > { %v4540_v14 = vpop.f32.mrb[86].mxu0  ;;  %4426 = vmax.xlane.f32.xlu0 %v4425_v10  ;;  %4545 = vmax.xlane.f32.xlu1 %v4544_v11 }
0x23a6   : > { %v8106_v15 = vpop.f32.mrb[87].mxu0  ;;  %v4547_v52 = vsel %vm1078_vm3, %v4540_v14, -inf }
0x23a9   : > { %4548 = vmax.xlane.f32.xlu0 %v4547_v52 }
0x23ab   : > { %v4658_v17 = vpop.f32.mrb[88].mxu0 }
0x23ac   : > { %v8117_v19 = vpop.f32.mrb[89].mxu0  ;;  %v4665_v21 = vsel %vm1078_vm3, %v4658_v17, -inf }
0x23ad   : > { %v4661_v55 = vpop.f32.mrb[90].mxu0  ;;  %4666 = vmax.xlane.f32.xlu1 %v4665_v21 }
0x23ae   : > { %v8118_v23 = vpop.f32.mrb[91].mxu0  ;;  %v4668_v27 = vsel %vm1078_vm3, %v4661_v55, -inf }
0x23af   : > { %4669 = vmax.xlane.f32.xlu0 %v4668_v27 }
0x242a   : > { %v4306_v30 = vpop.xlane.xlu0 %4305 }
0x242b   : > { %v4310_v32 = vsub.f32 %v4297_v60, %v4306_v30 }
0x242c   : > { %v4309_v33 = vpop.xlane.xlu1 %4308 }
0x242d   : > { %v4312_v34 = vmul.f32 1.442695, %v4310_v32  ;;  %v4311_v35 = vsub.f32 %v4300_v28, %v4309_v33 }
0x242e   : > { %v4424_v36 = vpop.xlane.xlu0 %4423 }
0x242f   : > { %9008 = vpow2.f32 %v4312_v34  ;;  %v4314_v24 = vmul.f32 1.442695, %v4311_v35  ;;  %v4428_v60 = vsub.f32 %v10355_v61, %v4424_v36 }
0x2431   : > { %9010 = vpow2.f32 %v4314_v24  ;;  %v4430_v62 = vmul.f32 1.442695, %v4428_v60 }
0x2432   : > { %v4427_v3 = vpop.xlane.xlu0 %4426  ;;  %v4546_v25 = vpop.xlane.xlu1 %4545 }
0x2433   : > { %v4429_v37 = vsub.f32 %v4418_v1, %v4427_v3  ;;  %v4550_v63 = vsub.f32 %v4537_v9, %v4546_v25  ;;  %v8869_v25 = vld [vmem:[%s10850_s13 + $0x68] sm:$0xff]  }
0x2435   : > { %v4432_v54 = vmul.f32 1.442695, %v4429_v37  ;;  %v4552_v28 = vmul.f32 1.442695, %v4550_v63 }
0x2436   : > { %v4549_v39 = vpop.xlane.xlu0 %4548 }
0x2437   : > { %9012 = vpow2.f32 %v4432_v54  ;;  %v4551_v7 = vsub.f32 %v4540_v14, %v4549_v39 }
0x2439   : > { %v9009_v40 = vpop.eup %9008  ;;  %v4554_v42 = vmul.f32 1.442695, %v4551_v7 }
0x243a   : > { %v4316_v43 = vsel %vm1078_vm3, %v9009_v40, 0.0  ;;  %v4667_v1 = vpop.xlane.xlu1 %4666 }
0x243b   : > { %v9011_v46 = vpop.eup %9010  ;;  %9014 = vpow2.f32 %v4554_v42  ;;  %4317 = vadd.xlane.f32.xlu1 %v4316_v43  ;;  %v4671_v2 = vsub.f32 %v4658_v17, %v4667_v1 }
0x243c   : > { %v4670_v47 = vpop.xlane.xlu0 %4669  ;;  %v4319_v48 = vsel %vm1078_vm3, %v9011_v46, 0.0 }
0x243d   : > { %v4672_v51 = vsub.f32 %v4661_v55, %v4670_v47  ;;  %4320 = vadd.xlane.f32.xlu0 %v4319_v48  ;;  %v4673_v4 = vmul.f32 1.442695, %v4671_v2 }
0x243f   : > { %v4675_v5 = vmul.f32 1.442695, %v4672_v51 }
0x2441   : > { %v9013_v53 = vpop.eup %9012  ;;  %9016 = vpow2.f32 %v4675_v5 }
0x2442   : > { %v4437_v49 = vsel %vm1078_vm3, %v9013_v53, 0.0  ;;  %9018 = vpow2.f32 %v4430_v62 }
0x2443   : > { %4438 = vadd.xlane.f32.xlu0 %v4437_v49  ;;  %9020 = vpow2.f32 %v4552_v28  ;;  %v8870_v28 = vld [vmem:[%s10850_s13 + $0x70] sm:$0xff]  }
0x2444   : > { %9022 = vpow2.f32 %v4673_v4 }
0x2445   : > { %v10369_v56 = vpop.eup %9014 }
0x2446   : > { %v4559_v57 = vsel %vm1078_vm3, %v10369_v56, 0.0 }
0x2447   : > { %4560 = vadd.xlane.f32.xlu0 %v4559_v57 }
0x244b   : > { %v10373_v58 = vpop.eup %9016 }
0x244c   : > { %4446 = vrot.lane.b32.xlu1 %v10324_v44, %s10854_s6  ;;  %v4680_v59 = vsel %vm1078_vm3, %v10373_v58, 0.0  ;;  %v9019_v6 = vpop.eup %9018 }
0x244d   : > { %4681 = vadd.xlane.f32.xlu0 %v4680_v59  ;;  %v4434_v8 = vsel %vm1078_vm3, %v9019_v6, 0.0  ;;  %v9021_v29 = vpop.eup %9020 }
0x244e   : > { %v4556_v61 = vsel %vm1078_vm3, %v9021_v29, 0.0  ;;  %v9023_v10 = vpop.eup %9022 }
0x244f   : > { %v4677_v9 = vsel %vm1078_vm3, %v9023_v10, 0.0 }
0x2463   : > { %4567 = vrot.lane.b32.xlu0 %v10324_v44, %s10851_s22 }
0x2470   : > { %4435 = vadd.xlane.f32.xlu1 %v4434_v8 }
0x2474   : > { %4557 = vadd.xlane.f32.xlu1 %v4556_v61 }
0x2478   : > { %4678 = vadd.xlane.f32.xlu1 %v4677_v9 }
0x2489   : > { %4688 = vrot.lane.b32.xlu1 %v10324_v44, %s10852_s21 }
0x24c8   : > { %v4318_v11 = vpop.xlane.xlu1 %4317 }
0x24c9   : > { %9024 = vrcp.f32 %v4318_v11 }
0x24ca   : > { %v4321_v14 = vpop.xlane.xlu0 %4320 }
0x24cb   : > { %9026 = vrcp.f32 %v4321_v14 }
0x24cc   : > { %v4447_v55 = vpop.permute.xlu1 %4446 }
0x24d0   : > { %v4439_v23 = vpop.xlane.xlu0 %4438 }
0x24d1   : > { %9028 = vrcp.f32 %v4439_v23 }
0x24d3   : > { %v9025_v15 = vpop.eup %9024 }
0x24d4   : > { %v4324_v17 = vmul.f32 %v9025_v15, %v9009_v40  ;;  %v4561_v27 = vpop.xlane.xlu0 %4560 }
0x24d5   : > { %v9027_v52 = vpop.eup %9026 }
0x24d6   : > { %v4325_v19 = vmul.f32 %v9027_v52, %v9011_v46 }
0x24d8   : > { %v4326_v21 = vpack.c.bf16 %v4325_v19, %v4324_v17 }
0x24da   : > { %8086 = vmatmul.mubr.msk.bf16.vlgmr.msra.gmra.mrb[84].mxu1 %vm1078_vm3, %v4326_v21  ;;  %v4682_v33 = vpop.xlane.xlu0 %4681 }
0x24db   : > { %8096 = vmatpush3.bf16.msra.mxu1 %v4447_v55  ;;  %8097 = vmatprep.mubr.msk.bf16.mxu1 %vm9373_vm0, %v9372_v0  ;;  %v9029_v32 = vpop.eup %9028 }
0x24dc   : > { %8107 = vmatprep.subr.bf16.mxu1 %v9372_v0  ;;  %v4443_v36 = vmul.f32 %v9029_v32, %v9013_v53 }
0x24de   : > { %v4568_v54 = vpop.permute.xlu0 %4567 }
0x24fd   : > { %v4436_v44 = vpop.xlane.xlu1 %4435 }
0x24fe   : > { %9030 = vrcp.f32 %v4436_v44 }
0x2501   : > { %v4558_v30 = vpop.xlane.xlu1 %4557 }
0x2502   : > { %9032 = vrcp.f32 %v4558_v30 }
0x2503   : > { %9034 = vrcp.f32 %v4561_v27 }
0x2505   : > { %v4679_v34 = vpop.xlane.xlu1 %4678 }
0x2506   : > { %9036 = vrcp.f32 %v4679_v34 }
0x2507   : > { %9038 = vrcp.f32 %v4682_v33 }
0x2508   : > { %v9031_v35 = vpop.eup %9030 }
0x2509   : > { %v4442_v24 = vmul.f32 %v9031_v35, %v9019_v6  ;;  %v4689_v46 = vpop.permute.xlu1 %4688  ;;  %v8871_v6 = vld [vmem:[%s10850_s13 + $0x78] sm:$0xff]  }
0x250b   : > { %v4444_v3 = vpack.c.bf16 %v4443_v36, %v4442_v24 }
0x250c   : > { %v9033_v37 = vpop.eup %9032 }
0x250d   : > { %8098 = vmatmul.mubr.msk.bf16.vlgmr.msra.gmra.mrb[88].mxu1 %vm1078_vm3, %v4444_v3  ;;  %v9035_v39 = vpop.eup %9034  ;;  %v4564_v7 = vmul.f32 %v9033_v37, %v9021_v29  ;;  %v7255_v37 = vld [vmem:[#allocation11 + $0x3] ss:$0 sm:$0xff] }
0x250e   : > { %8108 = vmatpush3.bf16.msra.mxu1 %v4568_v54  ;;  %8109 = vmatprep.mubr.msk.bf16.mxu1 %vm9373_vm0, %v9372_v0  ;;  %v4565_v40 = vmul.f32 %v9035_v39, %v10369_v56 }
0x250f   : > { %8119 = vmatprep.subr.bf16.mxu1 %v9372_v0 }
0x2510   : > { %v4566_v42 = vpack.c.bf16 %v4565_v40, %v4564_v7  ;;  %v9037_v43 = vpop.eup %9036 }
0x2511   : > { %v9039_v47 = vpop.eup %9038  ;;  %v4685_v48 = vmul.f32 %v9037_v43, %v9023_v10 }
0x2512   : > { %v4686_v51 = vmul.f32 %v9039_v47, %v10373_v58  ;;  %v8868_v58 = vld [vmem:[%s10850_s13 + $0x60] sm:$0xff]  }
0x2513   : > { %8126 = vmatpush3.bf16.msra.mxu0 %v8868_v58 }
0x2514   : > { %v4687_v5 = vpack.c.bf16 %v4686_v51, %v4685_v48  ;;  %8127 = vmatprep.subr.bf16.mxu0 %v9372_v0 }
0x2515   : > { %8110 = vmatmul.mubr.msk.bf16.vlgmr.msra.gmra.mrb[92].mxu1 %vm1078_vm3, %v4566_v42 }
0x2516   : > { %8120 = vmatpush3.bf16.msra.mxu1 %v4689_v46  ;;  %8121 = vmatprep.mubr.msk.bf16.mxu1 %vm9373_vm0, %v9372_v0 }
0x2517   : > { %8521 = vmatprep.subr.bf16.mxu1 %v9374_v13  ;;  %8128 = vmatpush3.bf16.msra.mxu0 %v8869_v25 }
0x2518   : > { %8129 = vmatprep.subr.bf16.mxu0 %v9372_v0 }
0x251b   : > { %8130 = vmatpush3.bf16.msra.mxu0 %v8870_v28 }
0x251c   : > { %8131 = vmatprep.subr.bf16.mxu0 %v9372_v0 }
0x251d   : > { %8122 = vmatmul.mubr.msk.bf16.vlgmr.msra.gmra.mrb[96].mxu1 %vm1078_vm3, %v4687_v5 }
0x251e   : > { %8523 = vmatpush3.bf16.msra.mxu1 %v9745_v12  ;;  %8153 = vmatprep.mubr.msk.f32.mxu1 %vm9373_vm0, %v9372_v0 }
0x251f   : > { %8524 = vmatprep.subr.bf16.mxu1 %v9374_v13  ;;  %8132 = vmatpush3.bf16.msra.mxu0 %v8871_v6 }
0x2520   : > { %8533 = vmatprep.subr.bf16.mxu0 %v9374_v13 }
0x2522   : > { %8526 = vmatpush3.bf16.msra.mxu1 %v9756_v16 }
0x2523   : > { %8527 = vmatprep.subr.bf16.mxu1 %v9374_v13 }
0x2526   : > { %8529 = vmatpush3.bf16.msra.mxu1 %v9769_v20 }
0x2527   : > { %8530 = vmatprep.subr.bf16.mxu1 %v9374_v13 }
0x252a   : > { %8532 = vmatpush3.bf16.msra.mxu1 %v9775_v22 }
0x252b   : > { %8539 = vmatprep.subr.bf16.mxu1 %v9374_v13 }
0x25ad   : > { %v4364_v53 = vpop.f32.mrb[84].mxu1 }
0x25ae   : > { %v8087_v49 = vpop.f32.mrb[85].mxu1 }
0x25af   : > { %v4367_v56 = vpop.f32.mrb[86].mxu1 }
0x25b0   : > { %v8088_v57 = vpop.f32.mrb[87].mxu1 }
0x25e0   : > { %v4486_v59 = vpop.f32.mrb[88].mxu1 }
0x25e1   : > { %v8099_v60 = vpop.f32.mrb[89].mxu1 }
0x25e2   : > { %v4489_v62 = vpop.f32.mrb[90].mxu1 }
0x25e3   : > { %v8754_v63 = vpack.i.bf16 %v4489_v62, %v4486_v59  ;;  %v8100_v1 = vpop.f32.mrb[91].mxu1 }
0x25e5   : > { %8755 = vrot.lane.b32.xlu1 %v8754_v63, %s10857_s30 }
0x25e8   : > { %v4607_v2 = vpop.f32.mrb[92].mxu1 }
0x25e9   : > { %v8111_v4 = vpop.f32.mrb[93].mxu1 }
0x25ea   : > { %v4610_v8 = vpop.f32.mrb[94].mxu1 }
0x25eb   : > { %v8759_v29 = vpack.i.bf16 %v4610_v8, %v4607_v2  ;;  %v8112_v61 = vpop.f32.mrb[95].mxu1 }
0x25ed   : > { %8760 = vrot.lane.b32.xlu0 %v8759_v29, %s10855_s24 }
0x25f0   : > { %v4728_v10 = vpop.f32.mrb[96].mxu1 }
0x25f1   : > { %v8123_v9 = vpop.f32.mrb[97].mxu1 }
0x25f2   : > { %v4731_v11 = vpop.f32.mrb[98].mxu1 }
0x25f3   : > { %v8764_v14 = vpack.i.bf16 %v4731_v11, %v4728_v10  ;;  %v8124_v15 = vpop.f32.mrb[99].mxu1 }
0x25f5   : > { %8765 = vrot.lane.b32.xlu1 %v8764_v14, %s10856_s28 }
0x2657   : > { %v8756_v52 = vpop.permute.xlu1 %8755 }
0x2658   : > { %v8758_v19 = vunpack.i.h.bf16 %v8756_v52  ;;  %v8757_v21 = vunpack.i.l.bf16 %v8756_v52 }
0x265a   : > { %v4760_v27 = vsel %vm1078_vm3, %v4367_v56, %v8758_v19  ;;  %v4759_v30 = vsel %vm1078_vm3, %v4364_v53, %v8757_v21  ;;  %v8874_v21 = vld [vmem:[#allocation8 + $0x104] ss:$8 sps:$4 sm:$0xff]  }
0x265f   : > { %v8761_v17 = vpop.permute.xlu0 %8760 }
0x2660   : > { %v8763_v55 = vunpack.i.h.bf16 %v8761_v17  ;;  %v8762_v23 = vunpack.i.l.bf16 %v8761_v17 }
0x2662   : > { %v4762_v34 = vsel %vm714_vm2, %v4760_v27, %v8763_v55  ;;  %v4761_v35 = vsel %vm714_vm2, %v4759_v30, %v8762_v23  ;;  %v8872_v55 = vld [vmem:[#allocation8 + $0x100] ss:$8 sps:$4 sm:$0xff]   ;;  %v8877_v23 = vld [vmem:[#allocation8 + $0x114] ss:$8 sps:$4 sm:$0xff]   ;;  %v8880_v27 = vld [vmem:[#allocation8 + $0x124] ss:$8 sps:$4 sm:$0xff]  }
0x2663   : > { %v8878_v30 = vld [vmem:[#allocation8 + $0x120] ss:$8 sps:$4 sm:$0xff]  }
0x2667   : > { %v8766_v44 = vpop.permute.xlu1 %8765 }
0x2668   : > { %v8768_v32 = vunpack.i.h.bf16 %v8766_v44  ;;  %v8767_v33 = vunpack.i.l.bf16 %v8766_v44  ;;  %v8875_v44 = vld [vmem:[#allocation8 + $0x110] ss:$8 sps:$4 sm:$0xff]  }
0x266a   : > { %v4764_v36 = vsel %vm1585_vm4, %v4762_v34, %v8768_v32  ;;  %v4763_v24 = vsel %vm1585_vm4, %v4761_v35, %v8767_v33  ;;  %v8883_v32 = vld [vmem:[#allocation8 + $0x134] ss:$8 sps:$4 sm:$0xff]   ;;  %v8881_v33 = vld [vmem:[#allocation8 + $0x130] ss:$8 sps:$4 sm:$0xff]  }
0x266b   : > { %v4765_v3 = vpack.c.bf16 %v4764_v36, %v4763_v24 }
0x266d   : > { %8134 = vmatmul.mubr.msk.bf16.vlgmr.msra.gmra.mrb[92].mxu0 %vm618_vm1, %v4765_v3 }
0x266e   : > { %8535 = vmatpush3.bf16.msra.mxu0 %v9797_v41  ;;  %8164 = vmatprep.mubr.msk.f32.mxu0 %vm9373_vm0, %v9372_v0 }
0x266f   : > { %8536 = vmatprep.subr.bf16.mxu0 %v9374_v13 }
0x2672   : > { %8538 = vmatpush3.bf16.msra.mxu0 %v9807_v45 }
0x2673   : > { %8551 = vmatprep.subr.bf16.mxu0 %v9374_v13 }
0x2740   : > { %v4827_v54 = vpop.f32.mrb[92].mxu0 }
0x2741   : > { %v4834_v39 = vadd.f32 %v4827_v54, %v10281_v26  ;;  %v8135_v7 = vpop.f32.mrb[93].mxu0 }
0x2742   : > { %v4830_v40 = vpop.f32.mrb[94].mxu0  ;;  %v7269_v7 = vld [vmem:[#allocation7 + $0x4] ss:$0 sm:$0xff] }
0x2743   : > { %v10445_v42 = vadd.f32 %v7255_v37, %v4834_v39  ;;  %v4835_v43 = vadd.f32 %v4830_v40, %v10284_v31  ;;  %v8136_v46 = vpop.f32.mrb[95].mxu0 }
0x2745   : > { %v10448_v47 = vadd.f32 %v7255_v37, %v4835_v43  ;;  %v4870_v48 = vsel %vm618_vm1, %v10445_v42, 0.0  ;;  %v7268_v37 = vld [vmem:[#allocation5 + $0x4] ss:$0 sm:$0xff] }
0x2747   : > { %v4871_v51 = vsel %vm618_vm1, %v10448_v47, 0.0 }
0x2748   : > { %v4872_v5 = vadd.f32 %v4871_v51, %v4870_v48 }
0x274a   : > { %v4873_v53 = vrot.slane %v4872_v5, 4 }
0x274c   : > { %v4874_v49 = vadd.f32 %v4873_v53, %v4872_v5  ;;  %v4858_v5 = vld [vmem:[#allocation10 + $0x8] sm:$0x3] }
0x274d   : > { %v5218_v53 = vrot.slane %v4858_v5, %v9828_v50 }
0x274e   : > { %v4875_v56 = vrot.slane %v4874_v49, 2 }
0x2750   : > { %v4876_v26 = vadd.f32 %v4875_v56, %v4874_v49  ;;  %v5222_v56 = vrot.slane %v4858_v5, %v9852_v38 }
0x2752   : > { %v4877_v57 = vrot.slane %v4876_v26, 1 }
0x2754   : > { %v4878_v58 = vadd.f32 %v4877_v57, %v4876_v26 }
0x2756   : > { %v4879_v59 = vmul.f32 0.0625, %v4878_v58 }
0x2758   : > { %8154 = vmatmul.mubr.msk.f32.vlgmr.msra.gmra.mrb[100].mxu1 %vm618_vm1, %v4879_v59 }
0x2759   : > { %8541 = vmatpush3.bf16.msra.mxu1 %v9745_v12  ;;  %8183 = vmatprep.mubr.msk.f32.mxu1 %vm9373_vm0, %v9372_v0 }
0x275a   : > { %8542 = vmatprep.subr.bf16.mxu1 %v9374_v13 }
0x275d   : > { %8544 = vmatpush3.bf16.msra.mxu1 %v9756_v16 }
0x275e   : > { %8545 = vmatprep.subr.bf16.mxu1 %v9374_v13 }
0x2761   : > { %8547 = vmatpush3.bf16.msra.mxu1 %v9769_v20 }
0x2762   : > { %8548 = vmatprep.subr.bf16.mxu1 %v9374_v13 }
0x2765   : > { %8550 = vmatpush3.bf16.msra.mxu1 %v9775_v22 }
0x2766   : > { %8197 = vmatprep.subr.bf16.mxu1 %v9372_v0 }
0x282b   : > { %v4949_v31 = vpop.f32.mrb[100].mxu1 }
0x282c   : > { %v8155_v60 = vpop.f32.mrb[101].mxu1  ;;  %8165 = vmatmul.mubr.msk.f32.vlgmr.msra.gmra.mrb[96].mxu0 %vm714_vm2, %v4949_v31 }
0x282d   : > { %8553 = vmatpush3.bf16.msra.mxu0 %v9797_v41  ;;  %8194 = vmatprep.mubr.msk.f32.mxu0 %vm9373_vm0, %v9372_v0 }
0x282e   : > { %8554 = vmatprep.subr.bf16.mxu0 %v9374_v13 }
0x2831   : > { %8556 = vmatpush3.bf16.msra.mxu0 %v9807_v45 }
0x2832   : > { %5268 = vmatprep.subr.bf16.mxu0 %v8874_v21 }
0x28ff   : > { %v5022_v25 = vpop.f32.mrb[96].mxu0 }
0x2900   : > { %v5029_v62 = vrot.slane %v5022_v25, %v9828_v50  ;;  %v8166_v63 = vpop.f32.mrb[97].mxu0 }
0x2902   : > { %v5030_v1 = vsub.f32 %v10445_v42, %v5029_v62  ;;  %v5031_v28 = vsub.f32 %v10448_v47, %v5029_v62 }
0x2904   : > { %v5032_v2 = vmul.f32 %v5030_v1, %v5030_v1  ;;  %v5033_v4 = vmul.f32 %v5031_v28, %v5031_v28 }
0x2906   : > { %v5034_v6 = vsel %vm618_vm1, %v5032_v2, 0.0  ;;  %v5035_v8 = vsel %vm618_vm1, %v5033_v4, 0.0 }
0x2907   : > { %v5036_v29 = vadd.f32 %v5035_v8, %v5034_v6 }
0x2909   : > { %v5037_v61 = vrot.slane %v5036_v29, 4 }
0x290b   : > { %v5038_v10 = vadd.f32 %v5037_v61, %v5036_v29 }
0x290d   : > { %v5039_v9 = vrot.slane %v5038_v10, 2 }
0x290f   : > { %v5040_v11 = vadd.f32 %v5039_v9, %v5038_v10 }
0x2911   : > { %v5041_v14 = vrot.slane %v5040_v11, 1 }
0x2913   : > { %v5042_v15 = vadd.f32 %v5041_v14, %v5040_v11 }
0x2915   : > { %v5043_v52 = vmul.f32 0.0625, %v5042_v15 }
0x2917   : > { %8184 = vmatmul.mubr.msk.f32.vlgmr.msra.gmra.mrb[102].mxu1 %vm618_vm1, %v5043_v52 }
0x2918   : > { %8199 = vmatprep.mubr.msk.bf16.mxu1 %vm9373_vm0, %v9372_v0 }
0x29ea   : > { %v5113_v17 = vpop.f32.mrb[102].mxu1 }
0x29eb   : > { %v8185_v19 = vpop.f32.mrb[103].mxu1  ;;  %8195 = vmatmul.mubr.msk.f32.vlgmr.msra.gmra.mrb[98].mxu0 %vm714_vm2, %v5113_v17 }
0x29ec   : > { %5300 = vmatprep.mubr.bf16.mxu0 %v9375_v18  ;;  %5269 = vmatpush1.bf16.msra.mxu0 %v8872_v55 }
0x29ed   : > { %5270 = vmatprep.subr.bf16.mxu0 %v8877_v23 }
0x29f0   : > { %5271 = vmatpush1.bf16.msra.mxu0 %v8875_v44 }
0x29f1   : > { %5272 = vmatprep.subr.bf16.mxu0 %v8880_v27 }
0x29f4   : > { %5273 = vmatpush1.bf16.msra.mxu0 %v8878_v30 }
0x29f5   : > { %5274 = vmatprep.subr.bf16.mxu0 %v8883_v32 }
0x29f8   : > { %5275 = vmatpush1.bf16.msra.mxu0 %v8881_v33 }
0x29f9   : > { %8209 = vmatprep.subr.bf16.mxu0 %v9372_v0 }
0x2abe   : > { %v5186_v34 = vpop.f32.mrb[98].mxu0 }
0x2abf   : > { %v5187_v35 = vadd.f32 1e-05, %v5186_v34  ;;  %v8196_v36 = vpop.f32.mrb[99].mxu0 }
0x2ac1   : > { %9040 = vrsqrt.f32 %v5187_v35 }
0x2acb   : > { %v9041_v24 = vpop.eup %9040 }
0x2acc   : > { %v5194_v3 = vrot.slane %v9041_v24, %v9828_v50 }
0x2ace   : > { %v5195_v54 = vmul.f32 %v5194_v3, %v5030_v1  ;;  %v5196_v39 = vmul.f32 %v5194_v3, %v5031_v28 }
0x2ad0   : > { %v5203_v40 = vmul.f32 %v7268_v37, %v5195_v54  ;;  %v5204_v43 = vmul.f32 %v7268_v37, %v5196_v39 }
0x2ad2   : > { %v5211_v46 = vadd.f32 %v7269_v7, %v5203_v40  ;;  %v5212_v48 = vadd.f32 %v7269_v7, %v5204_v43 }
0x2ad4   : > { %v5213_v51 = vpack.c.bf16 %v5212_v48, %v5211_v46 }
0x2ad6   : > { %7278 = vmatmul.mubr.msk.bf16.vlgmr.msra.gmra.mrb[100].mxu0 %vm618_vm1, %v5213_v51 }
0x2ad7   : > { %8211 = vmatprep.mubr.msk.bf16.mxu0 %vm9373_vm0, %v9372_v0 }
0x2ba9   : > { %v5302_v49 = vpop.f32.mrb[100].mxu0 }
0x2baa   : > { %v5304_v26 = vpop.f32.mrb[101].mxu0  ;;  %v5303_v58 = vadd.f32 %v5302_v49, %v5218_v53 }
0x2bab   : > { %v5306_v57 = vpop.f32.mrb[102].mxu0  ;;  %v5305_v60 = vadd.f32 %v5304_v26, %v5222_v56 }
0x2bac   : > { %v5307_v59 = vadd.f32 %v5306_v57, %v5218_v53  ;;  %v5308_v31 = vpop.f32.mrb[103].mxu0 }
0x2bad   : > { %v5309_v25 = vadd.f32 %v5308_v31, %v5222_v56 }
0x2bae   : > { %v5311_v62 = vpack.c.bf16 %v5307_v59, %v5303_v58 }
0x2baf   : > { %v10488_v63 = vpack.c.bf16 %v5309_v25, %v5305_v60 }
0x2bb0   : > { %5432 = vrot.lane.b32.xlu1 %v5311_v62, %s10856_s28  ;;  %5314 = vrot.lane.b32.xlu0 %v5311_v62, %s10853_s27 }
0x2bb4   : > { %5554 = vrot.lane.b32.xlu1 %v5311_v62, %s10855_s24  ;;  %5430 = vrot.lane.b32.xlu0 %v5311_v62, %s10854_s6 }
0x2bb8   : > { %5675 = vrot.lane.b32.xlu1 %v5311_v62, %s10857_s30  ;;  %5552 = vrot.lane.b32.xlu0 %v5311_v62, %s10851_s22 }
0x2bbc   : > { %5673 = vrot.lane.b32.xlu0 %v5311_v62, %s10852_s21 }
0x2c22   : > { %v5433_v1 = vpop.permute.xlu1 %5432  ;;  %v5315_v28 = vpop.permute.xlu0 %5314 }
0x2c23   : > { %v5438_v2 = vsel %vm1078_vm3, %v5433_v1, 0  ;;  %v5320_v4 = vsel %vm1078_vm3, %v5315_v28, 0 }
0x2c24   : > { %8198 = vmatpush3.bf16.xpose.msra.mxu1 %v5320_v4  ;;  %8210 = vmatpush3.bf16.xpose.msra.mxu0 %v5438_v2 }
0x2c25   : > { %8203 = vmatprep.subr.bf16.mxu1 %v9372_v0  ;;  %8221 = vmatprep.subr.bf16.mxu0 %v9372_v0 }
0x2c26   : > { %v5555_v6 = vpop.permute.xlu1 %5554  ;;  %v5431_v8 = vpop.permute.xlu0 %5430 }
0x2c27   : > { %v5560_v29 = vsel %vm1078_vm3, %v5555_v6, 0 }
0x2c2a   : > { %v5676_v61 = vpop.permute.xlu1 %5675  ;;  %v5553_v10 = vpop.permute.xlu0 %5552 }
0x2c2b   : > { %8200 = vmatmul.mubr.msk.bf16.vlgmr.msra.gmra.mrb[104].mxu1 %vm1078_vm3, %v5311_v62  ;;  %8212 = vmatmul.mubr.msk.bf16.vlgmr.msra.gmra.mrb[104].mxu0 %vm1078_vm3, %v5431_v8  ;;  %v5681_v9 = vsel %vm1078_vm3, %v5676_v61, 0 }
0x2c2c   : > { %8204 = vmatpush3.bf16.msra.mxu1 %v10488_v63  ;;  %8222 = vmatpush3.bf16.xpose.msra.mxu0 %v5560_v29 }
0x2c2d   : > { %8223 = vmatprep.mubr.msk.bf16.mxu0 %vm9373_vm0, %v9372_v0  ;;  %8233 = vmatprep.subr.bf16.mxu0 %v9372_v0 }
0x2c2e   : > { %8205 = vmatprep.mubr.msk.bf16.mxu1 %vm9373_vm0, %v9372_v0  ;;  %8215 = vmatprep.subr.bf16.mxu1 %v9372_v0  ;;  %v5674_v11 = vpop.permute.xlu0 %5673 }
0x2c33   : > { %8224 = vmatmul.mubr.msk.bf16.vlgmr.msra.gmra.mrb[108].mxu0 %vm1078_vm3, %v5553_v10 }
0x2c34   : > { %8234 = vmatpush3.bf16.xpose.msra.mxu0 %v5681_v9  ;;  %8235 = vmatprep.mubr.msk.bf16.mxu0 %vm9373_vm0, %v9372_v0 }
0x2c35   : > { %8245 = vmatprep.subr.bf16.mxu0 %v9372_v0 }
0x2c3b   : > { %8236 = vmatmul.mubr.msk.bf16.vlgmr.msra.gmra.mrb[112].mxu0 %vm1078_vm3, %v5674_v11 }
0x2c3c   : > { %8253 = vmatprep.mubr.msk.bf16.mxu0 %vm9373_vm0, %v9372_v0 }
0x2cfe   : > { %v5356_v14 = vpop.f32.mrb[104].mxu1  ;;  %v5474_v15 = vpop.f32.mrb[104].mxu0 }
0x2cff   : > { %v8201_v52 = vpop.f32.mrb[105].mxu1  ;;  %v8213_v17 = vpop.f32.mrb[105].mxu0  ;;  %v5363_v19 = vsel %vm1078_vm3, %v5356_v14, -inf  ;;  %v5481_v32 = vsel %vm1078_vm3, %v5474_v15, -inf }
0x2d00   : > { %v5477_v21 = vpop.f32.mrb[106].mxu0  ;;  %5364 = vmax.xlane.f32.xlu1 %v5363_v19  ;;  %v5359_v55 = vpop.f32.mrb[106].mxu1 }
0x2d01   : > { %v8202_v23 = vpop.f32.mrb[107].mxu1  ;;  %v8214_v44 = vpop.f32.mrb[107].mxu0  ;;  %v5366_v27 = vsel %vm1078_vm3, %v5359_v55, -inf  ;;  %v5484_v30 = vsel %vm1078_vm3, %v5477_v21, -inf }
0x2d02   : > { %5367 = vmax.xlane.f32.xlu0 %v5366_v27 }
0x2d04   : > { %5485 = vmax.xlane.f32.xlu1 %v5484_v30 }
0x2d06   : > { %v5596_v33 = vpop.f32.mrb[108].mxu0  ;;  %5482 = vmax.xlane.f32.xlu0 %v5481_v32 }
0x2d07   : > { %v8225_v34 = vpop.f32.mrb[109].mxu0  ;;  %v5603_v3 = vsel %vm1078_vm3, %v5596_v33, -inf }
0x2d08   : > { %v5599_v35 = vpop.f32.mrb[110].mxu0 }
0x2d09   : > { %v8226_v36 = vpop.f32.mrb[111].mxu0  ;;  %v5606_v24 = vsel %vm1078_vm3, %v5599_v35, -inf }
0x2d0a   : > { %5607 = vmax.xlane.f32.xlu1 %v5606_v24  ;;  %5604 = vmax.xlane.f32.xlu0 %v5603_v3 }
0x2d0e   : > { %v5717_v37 = vpop.f32.mrb[112].mxu0 }
0x2d0f   : > { %v8237_v54 = vpop.f32.mrb[113].mxu0  ;;  %v5724_v39 = vsel %vm1078_vm3, %v5717_v37, -inf }
0x2d10   : > { %v5720_v7 = vpop.f32.mrb[114].mxu0  ;;  %5725 = vmax.xlane.f32.xlu0 %v5724_v39 }
0x2d11   : > { %v8238_v40 = vpop.f32.mrb[115].mxu0  ;;  %v5727_v43 = vsel %vm1078_vm3, %v5720_v7, -inf }
0x2d12   : > { %5728 = vmax.xlane.f32.xlu1 %v5727_v43 }
0x2d8d   : > { %v5365_v46 = vpop.xlane.xlu1 %5364 }
0x2d8e   : > { %v5369_v48 = vsub.f32 %v5356_v14, %v5365_v46 }
0x2d8f   : > { %v5368_v51 = vpop.xlane.xlu0 %5367 }
0x2d90   : > { %v5371_v5 = vmul.f32 1.442695, %v5369_v48  ;;  %v5370_v53 = vsub.f32 %v5359_v55, %v5368_v51 }
0x2d91   : > { %v5486_v49 = vpop.xlane.xlu1 %5485 }
0x2d92   : > { %9042 = vpow2.f32 %v5371_v5  ;;  %v5373_v56 = vmul.f32 1.442695, %v5370_v53  ;;  %v5488_v26 = vsub.f32 %v5477_v21, %v5486_v49 }
0x2d93   : > { %v5483_v57 = vpop.xlane.xlu0 %5482 }
0x2d94   : > { %9044 = vpow2.f32 %v5373_v56  ;;  %v5491_v58 = vmul.f32 1.442695, %v5488_v26  ;;  %v5487_v59 = vsub.f32 %v5474_v15, %v5483_v57 }
0x2d96   : > { %9046 = vpow2.f32 %v5491_v58  ;;  %v5489_v31 = vmul.f32 1.442695, %v5487_v59 }
0x2d97   : > { %v5608_v60 = vpop.xlane.xlu1 %5607  ;;  %v5605_v25 = vpop.xlane.xlu0 %5604 }
0x2d98   : > { %9048 = vpow2.f32 %v5489_v31  ;;  %v5610_v62 = vsub.f32 %v5599_v35, %v5608_v60  ;;  %v5609_v1 = vsub.f32 %v5596_v33, %v5605_v25 }
0x2d9a   : > { %v5613_v28 = vmul.f32 1.442695, %v5610_v62  ;;  %v5611_v2 = vmul.f32 1.442695, %v5609_v1 }
0x2d9c   : > { %v9043_v4 = vpop.eup %9042  ;;  %9050 = vpow2.f32 %v5613_v28 }
0x2d9d   : > { %9052 = vpow2.f32 %v5611_v2  ;;  %v5726_v6 = vpop.xlane.xlu0 %5725  ;;  %v5375_v8 = vsel %vm1078_vm3, %v9043_v4, 0.0 }
0x2d9e   : > { %v9045_v29 = vpop.eup %9044  ;;  %v5730_v61 = vsub.f32 %v5717_v37, %v5726_v6  ;;  %5376 = vadd.xlane.f32.xlu0 %v5375_v8 }
0x2d9f   : > { %v5378_v10 = vsel %vm1078_vm3, %v9045_v29, 0.0  ;;  %v5729_v27 = vpop.xlane.xlu1 %5728 }
0x2da0   : > { %v9047_v9 = vpop.eup %9046  ;;  %v5732_v11 = vmul.f32 1.442695, %v5730_v61  ;;  %5379 = vadd.xlane.f32.xlu1 %v5378_v10  ;;  %v5731_v30 = vsub.f32 %v5720_v7, %v5729_v27 }
0x2da1   : > { %v5496_v15 = vsel %vm1078_vm3, %v9047_v9, 0.0 }
0x2da2   : > { %v9049_v14 = vpop.eup %9048  ;;  %9054 = vpow2.f32 %v5732_v11  ;;  %v5734_v32 = vmul.f32 1.442695, %v5731_v30 }
0x2da3   : > { %v5493_v52 = vsel %vm1078_vm3, %v9049_v14, 0.0 }
0x2da4   : > { %5497 = vadd.xlane.f32.xlu1 %v5496_v15  ;;  %5494 = vadd.xlane.f32.xlu0 %v5493_v52  ;;  %9056 = vpow2.f32 %v5734_v32  ;;  %v8884_v15 = vld [vmem:[%s10850_s13 + $0x80] sm:$0xff]   ;;  %v8887_v32 = vld [vmem:[%s10850_s13 + $0x98] sm:$0xff]  }
0x2da5   : > { %8246 = vmatpush3.bf16.msra.mxu0 %v8884_v15 }
0x2da6   : > { %v9051_v17 = vpop.eup %9050  ;;  %8247 = vmatprep.subr.bf16.mxu0 %v9372_v0 }
0x2da7   : > { %v9053_v19 = vpop.eup %9052  ;;  %v5618_v21 = vsel %vm1078_vm3, %v9051_v17, 0.0 }
0x2da8   : > { %5619 = vadd.xlane.f32.xlu1 %v5618_v21  ;;  %v5615_v55 = vsel %vm1078_vm3, %v9053_v19, 0.0 }
0x2da9   : > { %5616 = vadd.xlane.f32.xlu0 %v5615_v55  ;;  %v8886_v55 = vld [vmem:[%s10850_s13 + $0x90] sm:$0xff]  }
0x2dac   : > { %v9055_v23 = vpop.eup %9054 }
0x2dad   : > { %v5736_v44 = vsel %vm1078_vm3, %v9055_v23, 0.0 }
0x2dae   : > { %5737 = vadd.xlane.f32.xlu0 %v5736_v44  ;;  %v9057_v33 = vpop.eup %9056 }
0x2daf   : > { %v5739_v34 = vsel %vm1078_vm3, %v9057_v33, 0.0 }
0x2db9   : > { %5626 = vrot.lane.b32.xlu1 %v10488_v63, %s10851_s22 }
0x2dc4   : > { %5505 = vrot.lane.b32.xlu0 %v10488_v63, %s10854_s6 }
0x2ddd   : > { %5740 = vadd.xlane.f32.xlu1 %v5739_v34 }
0x2dee   : > { %5747 = vrot.lane.b32.xlu1 %v10488_v63, %s10852_s21 }
0x2e2b   : > { %v5377_v35 = vpop.xlane.xlu0 %5376 }
0x2e2c   : > { %9058 = vrcp.f32 %v5377_v35 }
0x2e2d   : > { %v5380_v36 = vpop.xlane.xlu1 %5379 }
0x2e2e   : > { %9060 = vrcp.f32 %v5380_v36 }
0x2e31   : > { %v5498_v24 = vpop.xlane.xlu1 %5497  ;;  %v5495_v3 = vpop.xlane.xlu0 %5494 }
0x2e32   : > { %9062 = vrcp.f32 %v5498_v24 }
0x2e33   : > { %9064 = vrcp.f32 %v5495_v3 }
0x2e35   : > { %v5620_v54 = vpop.xlane.xlu1 %5619 }
0x2e36   : > { %v9059_v37 = vpop.eup %9058  ;;  %v5617_v39 = vpop.xlane.xlu0 %5616  ;;  %9066 = vrcp.f32 %v5620_v54 }
0x2e37   : > { %v5383_v40 = vmul.f32 %v9059_v37, %v9043_v4  ;;  %9068 = vrcp.f32 %v5617_v39 }
0x2e38   : > { %v9061_v7 = vpop.eup %9060 }
0x2e39   : > { %v5384_v43 = vmul.f32 %v9061_v7, %v9045_v29  ;;  %v5627_v58 = vpop.permute.xlu1 %5626 }
0x2e3b   : > { %v5738_v46 = vpop.xlane.xlu0 %5737  ;;  %v5385_v48 = vpack.c.bf16 %v5384_v43, %v5383_v40 }
0x2e3c   : > { %v9063_v51 = vpop.eup %9062  ;;  %9070 = vrcp.f32 %v5738_v46 }
0x2e3d   : > { %v9065_v63 = vpop.eup %9064  ;;  %8206 = vmatmul.mubr.msk.bf16.vlgmr.msra.gmra.mrb[108].mxu1 %vm1078_vm3, %v5385_v48  ;;  %v5502_v5 = vmul.f32 %v9063_v51, %v9047_v9 }
0x2e3e   : > { %8217 = vmatprep.mubr.msk.bf16.mxu1 %vm9373_vm0, %v9372_v0  ;;  %v5501_v53 = vmul.f32 %v9065_v63, %v9049_v14 }
0x2e3f   : > { %v5506_v49 = vpop.permute.xlu0 %5505 }
0x2e40   : > { %8216 = vmatpush3.bf16.msra.mxu1 %v5506_v49  ;;  %v9067_v56 = vpop.eup %9066  ;;  %v5503_v26 = vpack.c.bf16 %v5502_v5, %v5501_v53 }
0x2e41   : > { %8227 = vmatprep.subr.bf16.mxu1 %v9372_v0  ;;  %v9069_v57 = vpop.eup %9068  ;;  %v5624_v59 = vmul.f32 %v9067_v56, %v9051_v17 }
0x2e42   : > { %v5623_v31 = vmul.f32 %v9069_v57, %v9053_v19  ;;  %v8885_v19 = vld [vmem:[%s10850_s13 + $0x88] sm:$0xff]  }
0x2e43   : > { %8248 = vmatpush3.bf16.msra.mxu0 %v8885_v19  ;;  %v7292_v57 = vld [vmem:[#allocation11 + $0x4] ss:$0 sm:$0xff] }
0x2e44   : > { %v5625_v60 = vpack.c.bf16 %v5624_v59, %v5623_v31  ;;  %8249 = vmatprep.subr.bf16.mxu0 %v9372_v0 }
0x2e45   : > { %8218 = vmatmul.mubr.msk.bf16.vlgmr.msra.gmra.mrb[112].mxu1 %vm1078_vm3, %v5503_v26 }
0x2e46   : > { %8228 = vmatpush3.bf16.msra.mxu1 %v5627_v58  ;;  %8229 = vmatprep.mubr.msk.bf16.mxu1 %vm9373_vm0, %v9372_v0  ;;  %v9071_v1 = vpop.eup %9070 }
0x2e47   : > { %8239 = vmatprep.subr.bf16.mxu1 %v9372_v0  ;;  %v5744_v2 = vmul.f32 %v9071_v1, %v9055_v23  ;;  %8250 = vmatpush3.bf16.msra.mxu0 %v8886_v55 }
0x2e48   : > { %8251 = vmatprep.subr.bf16.mxu0 %v9372_v0 }
0x2e4b   : > { %8252 = vmatpush3.bf16.msra.mxu0 %v8887_v32 }
0x2e4c   : > { %8569 = vmatprep.subr.bf16.mxu0 %v9374_v13 }
0x2e4d   : > { %8230 = vmatmul.mubr.msk.bf16.vlgmr.msra.gmra.mrb[116].mxu1 %vm1078_vm3, %v5625_v60 }
0x2e4e   : > { %8241 = vmatprep.mubr.msk.bf16.mxu1 %vm9373_vm0, %v9372_v0 }
0x2e6a   : > { %v5741_v25 = vpop.xlane.xlu1 %5740 }
0x2e6b   : > { %9072 = vrcp.f32 %v5741_v25 }
0x2e6e   : > { %v5748_v62 = vpop.permute.xlu1 %5747 }
0x2e6f   : > { %8240 = vmatpush3.bf16.msra.mxu1 %v5748_v62 }
0x2e70   : > { %8557 = vmatprep.subr.bf16.mxu1 %v9374_v13 }
0x2e75   : > { %v9073_v28 = vpop.eup %9072 }
0x2e76   : > { %v5745_v4 = vmul.f32 %v9073_v28, %v9057_v33 }
0x2e78   : > { %v5746_v6 = vpack.c.bf16 %v5745_v4, %v5744_v2 }
0x2e7a   : > { %8242 = vmatmul.mubr.msk.bf16.vlgmr.msra.gmra.mrb[120].mxu1 %vm1078_vm3, %v5746_v6 }
0x2e7b   : > { %8559 = vmatpush3.bf16.msra.mxu1 %v9745_v12  ;;  %8273 = vmatprep.mubr.msk.f32.mxu1 %vm9373_vm0, %v9372_v0 }
0x2e7c   : > { %8560 = vmatprep.subr.bf16.mxu1 %v9374_v13 }
0x2e7f   : > { %8562 = vmatpush3.bf16.msra.mxu1 %v9756_v16 }
0x2e80   : > { %8563 = vmatprep.subr.bf16.mxu1 %v9374_v13 }
0x2e83   : > { %8565 = vmatpush3.bf16.msra.mxu1 %v9769_v20 }
0x2e84   : > { %8566 = vmatprep.subr.bf16.mxu1 %v9374_v13 }
0x2e87   : > { %8568 = vmatpush3.bf16.msra.mxu1 %v9775_v22 }
0x2e88   : > { %8575 = vmatprep.subr.bf16.mxu1 %v9374_v13 }
0x2f10   : > { %v5423_v8 = vpop.f32.mrb[108].mxu1 }
0x2f11   : > { %v8207_v29 = vpop.f32.mrb[109].mxu1 }
0x2f12   : > { %v5426_v61 = vpop.f32.mrb[110].mxu1 }
0x2f13   : > { %v8208_v10 = vpop.f32.mrb[111].mxu1 }
0x2f18   : > { %v5545_v9 = vpop.f32.mrb[112].mxu1 }
0x2f19   : > { %v8219_v11 = vpop.f32.mrb[113].mxu1 }
0x2f1a   : > { %v5548_v14 = vpop.f32.mrb[114].mxu1 }
0x2f1b   : > { %v8769_v52 = vpack.i.bf16 %v5548_v14, %v5545_v9  ;;  %v8220_v17 = vpop.f32.mrb[115].mxu1 }
0x2f1d   : > { %8770 = vrot.lane.b32.xlu0 %v8769_v52, %s10857_s30 }
0x2f20   : > { %v5666_v21 = vpop.f32.mrb[116].mxu1 }
0x2f21   : > { %v8231_v23 = vpop.f32.mrb[117].mxu1 }
0x2f22   : > { %v5669_v44 = vpop.f32.mrb[118].mxu1 }
0x2f23   : > { %v8774_v27 = vpack.i.bf16 %v5669_v44, %v5666_v21  ;;  %v8232_v30 = vpop.f32.mrb[119].mxu1 }
0x2f25   : > { %8775 = vrot.lane.b32.xlu1 %v8774_v27, %s10855_s24 }
0x2f4d   : > { %v5787_v33 = vpop.f32.mrb[120].mxu1 }
0x2f4e   : > { %v8243_v34 = vpop.f32.mrb[121].mxu1 }
0x2f4f   : > { %v5790_v35 = vpop.f32.mrb[122].mxu1  ;;  %v8890_v34 = vld [vmem:[#allocation8 + $0x144] ss:$8 sps:$4 sm:$0xff]  }
0x2f50   : > { %v8779_v36 = vpack.i.bf16 %v5790_v35, %v5787_v33  ;;  %v8244_v24 = vpop.f32.mrb[123].mxu1  ;;  %v8888_v35 = vld [vmem:[#allocation8 + $0x140] ss:$8 sps:$4 sm:$0xff]  }
0x2f51   : > { %v8891_v24 = vld [vmem:[#allocation8 + $0x150] ss:$8 sps:$4 sm:$0xff]  }
0x2f52   : > { %8780 = vrot.lane.b32.xlu0 %v8779_v36, %s10856_s28  ;;  %v8893_v36 = vld [vmem:[#allocation8 + $0x154] ss:$8 sps:$4 sm:$0xff]  }
0x2f8f   : > { %v8771_v3 = vpop.permute.xlu0 %8770 }
0x2f90   : > { %v8773_v54 = vunpack.i.h.bf16 %v8771_v3  ;;  %v8772_v39 = vunpack.i.l.bf16 %v8771_v3  ;;  %v8896_v3 = vld [vmem:[#allocation8 + $0x164] ss:$8 sps:$4 sm:$0xff]  }
0x2f92   : > { %v5819_v46 = vsel %vm1078_vm3, %v5426_v61, %v8773_v54  ;;  %v5818_v48 = vsel %vm1078_vm3, %v5423_v8, %v8772_v39  ;;  %v8899_v54 = vld [vmem:[#allocation8 + $0x174] ss:$8 sps:$4 sm:$0xff]   ;;  %v8897_v39 = vld [vmem:[#allocation8 + $0x170] ss:$8 sps:$4 sm:$0xff]  }
0x2f97   : > { %v8776_v37 = vpop.permute.xlu1 %8775 }
0x2f98   : > { %v8778_v7 = vunpack.i.h.bf16 %v8776_v37  ;;  %v8777_v40 = vunpack.i.l.bf16 %v8776_v37  ;;  %v8894_v37 = vld [vmem:[#allocation8 + $0x160] ss:$8 sps:$4 sm:$0xff]  }
0x2f9a   : > { %v5821_v5 = vsel %vm714_vm2, %v5819_v46, %v8778_v7  ;;  %v5820_v53 = vsel %vm714_vm2, %v5818_v48, %v8777_v40  ;;  %v7305_v48 = vld [vmem:[#allocation5 + $0x5] ss:$0 sm:$0xff] }
0x2fc4   : > { %v8781_v43 = vpop.permute.xlu0 %8780 }
0x2fc5   : > { %v8783_v51 = vunpack.i.h.bf16 %v8781_v43  ;;  %v8782_v63 = vunpack.i.l.bf16 %v8781_v43 }
0x2fc7   : > { %v5823_v49 = vsel %vm1585_vm4, %v5821_v5, %v8783_v51  ;;  %v5822_v56 = vsel %vm1585_vm4, %v5820_v53, %v8782_v63  ;;  %v7306_v5 = vld [vmem:[#allocation7 + $0x5] ss:$0 sm:$0xff] }
0x2fc8   : > { %v5824_v26 = vpack.c.bf16 %v5823_v49, %v5822_v56 }
0x2fca   : > { %8254 = vmatmul.mubr.msk.bf16.vlgmr.msra.gmra.mrb[116].mxu0 %vm618_vm1, %v5824_v26 }
0x2fcb   : > { %8571 = vmatpush3.bf16.msra.mxu0 %v9797_v41  ;;  %8284 = vmatprep.mubr.msk.f32.mxu0 %vm9373_vm0, %v9372_v0 }
0x2fcc   : > { %8572 = vmatprep.subr.bf16.mxu0 %v9374_v13 }
0x2fcf   : > { %8574 = vmatpush3.bf16.msra.mxu0 %v9807_v45 }
0x2fd0   : > { %8587 = vmatprep.subr.bf16.mxu0 %v9374_v13 }
0x309d   : > { %v5886_v58 = vpop.f32.mrb[116].mxu0 }
0x309e   : > { %v5893_v59 = vadd.f32 %v5886_v58, %v10445_v42  ;;  %v8255_v31 = vpop.f32.mrb[117].mxu0  ;;  %v5917_v58 = vld [vmem:[#allocation10 + $0xa] sm:$0x3] }
0x309f   : > { %v5889_v60 = vpop.f32.mrb[118].mxu0 }
0x30a0   : > { %v10597_v25 = vadd.f32 %v7292_v57, %v5893_v59  ;;  %v5894_v62 = vadd.f32 %v5889_v60, %v10448_v47  ;;  %v8256_v1 = vpop.f32.mrb[119].mxu0  ;;  %v6277_v59 = vrot.slane %v5917_v58, %v9828_v50  ;;  %v6281_v60 = vrot.slane %v5917_v58, %v9852_v38 }
0x30a2   : > { %v5902_v28 = vadd.f32 %v7292_v57, %v5894_v62  ;;  %v5929_v2 = vsel %vm618_vm1, %v10597_v25, 0.0 }
0x30a4   : > { %v5930_v4 = vsel %vm618_vm1, %v5902_v28, 0.0 }
0x30a5   : > { %v5931_v6 = vadd.f32 %v5930_v4, %v5929_v2 }
0x30a7   : > { %v5932_v8 = vrot.slane %v5931_v6, 4 }
0x30a9   : > { %v5933_v29 = vadd.f32 %v5932_v8, %v5931_v6 }
0x30ab   : > { %v5934_v61 = vrot.slane %v5933_v29, 2 }
0x30ad   : > { %v5935_v10 = vadd.f32 %v5934_v61, %v5933_v29 }
0x30af   : > { %v5936_v9 = vrot.slane %v5935_v10, 1 }
0x30b1   : > { %v5937_v42 = vadd.f32 %v5936_v9, %v5935_v10 }
0x30b3   : > { %v5938_v11 = vmul.f32 0.0625, %v5937_v42 }
0x30b5   : > { %8274 = vmatmul.mubr.msk.f32.vlgmr.msra.gmra.mrb[124].mxu1 %vm618_vm1, %v5938_v11 }
0x30b6   : > { %8577 = vmatpush3.bf16.msra.mxu1 %v9745_v12  ;;  %8303 = vmatprep.mubr.msk.f32.mxu1 %vm9373_vm0, %v9372_v0 }
0x30b7   : > { %8578 = vmatprep.subr.bf16.mxu1 %v9374_v13 }
0x30ba   : > { %8580 = vmatpush3.bf16.msra.mxu1 %v9756_v16 }
0x30bb   : > { %8581 = vmatprep.subr.bf16.mxu1 %v9374_v13 }
0x30be   : > { %8583 = vmatpush3.bf16.msra.mxu1 %v9769_v20 }
0x30bf   : > { %8584 = vmatprep.subr.bf16.mxu1 %v9374_v13 }
0x30c2   : > { %8586 = vmatpush3.bf16.msra.mxu1 %v9775_v22 }
0x30c3   : > { %8317 = vmatprep.subr.bf16.mxu1 %v9372_v0 }
0x3188   : > { %v6008_v47 = vpop.f32.mrb[124].mxu1 }
0x3189   : > { %v8275_v14 = vpop.f32.mrb[125].mxu1  ;;  %8285 = vmatmul.mubr.msk.f32.vlgmr.msra.gmra.mrb[120].mxu0 %vm714_vm2, %v6008_v47 }
0x318a   : > { %8589 = vmatpush3.bf16.msra.mxu0 %v9797_v41  ;;  %8314 = vmatprep.mubr.msk.f32.mxu0 %vm9373_vm0, %v9372_v0 }
0x318b   : > { %8590 = vmatprep.subr.bf16.mxu0 %v9374_v13 }
0x318e   : > { %8592 = vmatpush3.bf16.msra.mxu0 %v9807_v45 }
0x318f   : > { %6327 = vmatprep.subr.bf16.mxu0 %v8890_v34 }
0x325c   : > { %v6081_v12 = vpop.f32.mrb[120].mxu0 }
0x325d   : > { %v6088_v16 = vrot.slane %v6081_v12, %v9828_v50  ;;  %v8286_v20 = vpop.f32.mrb[121].mxu0 }
0x325f   : > { %v6089_v22 = vsub.f32 %v10597_v25, %v6088_v16  ;;  %v6090_v15 = vsub.f32 %v5902_v28, %v6088_v16 }
0x3261   : > { %v6091_v52 = vmul.f32 %v6089_v22, %v6089_v22  ;;  %v6092_v17 = vmul.f32 %v6090_v15, %v6090_v15 }
0x3263   : > { %v6093_v19 = vsel %vm618_vm1, %v6091_v52, 0.0  ;;  %v6094_v41 = vsel %vm618_vm1, %v6092_v17, 0.0 }
0x3264   : > { %v6095_v21 = vadd.f32 %v6094_v41, %v6093_v19 }
0x3266   : > { %v6096_v55 = vrot.slane %v6095_v21, 4 }
0x3268   : > { %v6097_v23 = vadd.f32 %v6096_v55, %v6095_v21 }
0x326a   : > { %v6098_v44 = vrot.slane %v6097_v23, 2 }
0x326c   : > { %v6099_v13 = vadd.f32 %v6098_v44, %v6097_v23 }
0x326e   : > { %v6100_v27 = vrot.slane %v6099_v13, 1 }
0x3270   : > { %v6101_v45 = vadd.f32 %v6100_v27, %v6099_v13 }
0x3272   : > { %v6102_v30 = vmul.f32 0.0625, %v6101_v45 }
0x3274   : > { %8304 = vmatmul.mubr.msk.f32.vlgmr.msra.gmra.mrb[126].mxu1 %vm618_vm1, %v6102_v30 }
0x3275   : > { %8319 = vmatprep.mubr.msk.bf16.mxu1 %vm9373_vm0, %v9372_v0 }
0x3347   : > { %v6172_v32 = vpop.f32.mrb[126].mxu1 }
0x3348   : > { %v8305_v33 = vpop.f32.mrb[127].mxu1  ;;  %8315 = vmatmul.mubr.msk.f32.vlgmr.msra.gmra.mrb[122].mxu0 %vm714_vm2, %v6172_v32 }
0x3349   : > { %6359 = vmatprep.mubr.bf16.mxu0 %v9375_v18  ;;  %6328 = vmatpush1.bf16.msra.mxu0 %v8888_v35 }
0x334a   : > { %6329 = vmatprep.subr.bf16.mxu0 %v8893_v36 }
0x334d   : > { %6330 = vmatpush1.bf16.msra.mxu0 %v8891_v24 }
0x334e   : > { %6331 = vmatprep.subr.bf16.mxu0 %v8896_v3 }
0x3351   : > { %6332 = vmatpush1.bf16.msra.mxu0 %v8894_v37 }
0x3352   : > { %6333 = vmatprep.subr.bf16.mxu0 %v8899_v54 }
0x3355   : > { %6334 = vmatpush1.bf16.msra.mxu0 %v8897_v39 }
0x3356   : > { %8329 = vmatprep.subr.bf16.mxu0 %v9372_v0 }
0x341b   : > { %v6245_v7 = vpop.f32.mrb[122].mxu0 }
0x341c   : > { %v6246_v18 = vadd.f32 1e-05, %v6245_v7  ;;  %v8316_v40 = vpop.f32.mrb[123].mxu0 }
0x341e   : > { %9074 = vrsqrt.f32 %v6246_v18 }
0x3428   : > { %v9075_v43 = vpop.eup %9074 }
0x3429   : > { %v6253_v46 = vrot.slane %v9075_v43, %v9828_v50 }
0x342b   : > { %v6254_v51 = vmul.f32 %v6253_v46, %v6089_v22  ;;  %v6255_v63 = vmul.f32 %v6253_v46, %v6090_v15 }
0x342d   : > { %v6262_v53 = vmul.f32 %v7305_v48, %v6254_v51  ;;  %v6263_v49 = vmul.f32 %v7305_v48, %v6255_v63 }
0x342f   : > { %v6270_v56 = vadd.f32 %v7306_v5, %v6262_v53  ;;  %v6271_v26 = vadd.f32 %v7306_v5, %v6263_v49 }
0x3431   : > { %v6272_v57 = vpack.c.bf16 %v6271_v26, %v6270_v56 }
0x3433   : > { %7315 = vmatmul.mubr.msk.bf16.vlgmr.msra.gmra.mrb[124].mxu0 %vm618_vm1, %v6272_v57 }
0x3434   : > { %8331 = vmatprep.mubr.msk.bf16.mxu0 %vm9373_vm0, %v9372_v0 }
0x3506   : > { %v6361_v31 = vpop.f32.mrb[124].mxu0 }
0x3507   : > { %v6363_v62 = vpop.f32.mrb[125].mxu0  ;;  %v6362_v28 = vadd.f32 %v6361_v31, %v6277_v59 }
0x3508   : > { %v6365_v1 = vpop.f32.mrb[126].mxu0  ;;  %v6364_v6 = vadd.f32 %v6363_v62, %v6281_v60 }
0x3509   : > { %v6366_v2 = vadd.f32 %v6365_v1, %v6277_v59  ;;  %v6367_v4 = vpop.f32.mrb[127].mxu0 }
0x350a   : > { %v6368_v8 = vadd.f32 %v6367_v4, %v6281_v60 }
0x350b   : > { %v6370_v29 = vpack.c.bf16 %v6366_v2, %v6362_v28 }
0x350c   : > { %v10636_v61 = vpack.c.bf16 %v6368_v8, %v6364_v6 }
0x350d   : > { %6491 = vrot.lane.b32.xlu0 %v6370_v29, %s10856_s28  ;;  %6373 = vrot.lane.b32.xlu1 %v6370_v29, %s10853_s27  ;;  %s9383_s27 = smov [#allocation13]  }
0x3511   : > { %6613 = vrot.lane.b32.xlu0 %v6370_v29, %s10855_s24  ;;  %6489 = vrot.lane.b32.xlu1 %v6370_v29, %s10854_s6 }
0x3515   : > { %6734 = vrot.lane.b32.xlu0 %v6370_v29, %s10857_s30  ;;  %6611 = vrot.lane.b32.xlu1 %v6370_v29, %s10851_s22 }
0x3519   : > { %6732 = vrot.lane.b32.xlu1 %v6370_v29, %s10852_s21 }
0x357f   : > { %v6492_v50 = vpop.permute.xlu0 %6491  ;;  %v6374_v38 = vpop.permute.xlu1 %6373 }
0x3580   : > { %v6497_v10 = vsel %vm1078_vm3, %v6492_v50, 0  ;;  %v6379_v9 = vsel %vm1078_vm3, %v6374_v38, 0 }
0x3581   : > { %8318 = vmatpush3.bf16.xpose.msra.mxu1 %v6379_v9  ;;  %8330 = vmatpush3.bf16.xpose.msra.mxu0 %v6497_v10 }
0x3582   : > { %8323 = vmatprep.subr.bf16.mxu1 %v9372_v0  ;;  %8341 = vmatprep.subr.bf16.mxu0 %v9372_v0 }
0x3583   : > { %v6614_v42 = vpop.permute.xlu0 %6613  ;;  %v6490_v11 = vpop.permute.xlu1 %6489 }
0x3584   : > { %v6619_v47 = vsel %vm1078_vm3, %v6614_v42, 0 }
0x3587   : > { %v6735_v14 = vpop.permute.xlu0 %6734  ;;  %v6612_v12 = vpop.permute.xlu1 %6611 }
0x3588   : > { %8320 = vmatmul.mubr.msk.bf16.vlgmr.msra.gmra.mrb[128].mxu1 %vm1078_vm3, %v6370_v29  ;;  %8332 = vmatmul.mubr.msk.bf16.vlgmr.msra.gmra.mrb[128].mxu0 %vm1078_vm3, %v6490_v11  ;;  %v6740_v16 = vsel %vm1078_vm3, %v6735_v14, 0 }
0x3589   : > { %8324 = vmatpush3.bf16.msra.mxu1 %v10636_v61  ;;  %8342 = vmatpush3.bf16.xpose.msra.mxu0 %v6619_v47 }
0x358a   : > { %8343 = vmatprep.mubr.msk.bf16.mxu0 %vm9373_vm0, %v9372_v0  ;;  %8353 = vmatprep.subr.bf16.mxu0 %v9372_v0 }
0x358b   : > { %8325 = vmatprep.mubr.msk.bf16.mxu1 %vm9373_vm0, %v9372_v0  ;;  %8335 = vmatprep.subr.bf16.mxu1 %v9372_v0  ;;  %v6733_v20 = vpop.permute.xlu1 %6732 }
0x3590   : > { %8344 = vmatmul.mubr.msk.bf16.vlgmr.msra.gmra.mrb[132].mxu0 %vm1078_vm3, %v6612_v12 }
0x3591   : > { %8354 = vmatpush3.bf16.xpose.msra.mxu0 %v6740_v16  ;;  %8355 = vmatprep.mubr.msk.bf16.mxu0 %vm9373_vm0, %v9372_v0 }
0x3592   : > { %8365 = vmatprep.subr.bf16.mxu0 %v9372_v0 }
0x3598   : > { %8356 = vmatmul.mubr.msk.bf16.vlgmr.msra.gmra.mrb[136].mxu0 %vm1078_vm3, %v6733_v20 }
0x3599   : > { %8373 = vmatprep.mubr.msk.bf16.mxu0 %vm9373_vm0, %v9372_v0 }
0x365b   : > { %v6415_v22 = vpop.f32.mrb[128].mxu1  ;;  %v10667_v15 = vpop.f32.mrb[128].mxu0 }
0x365c   : > { %v8321_v52 = vpop.f32.mrb[129].mxu1  ;;  %v8333_v17 = vpop.f32.mrb[129].mxu0  ;;  %v6422_v19 = vsel %vm1078_vm3, %v6415_v22, -inf  ;;  %v6540_v13 = vsel %vm1078_vm3, %v10667_v15, -inf }
0x365d   : > { %v6536_v41 = vpop.f32.mrb[130].mxu0  ;;  %6423 = vmax.xlane.f32.xlu0 %v6422_v19  ;;  %v6418_v21 = vpop.f32.mrb[130].mxu1 }
0x365e   : > { %v8322_v55 = vpop.f32.mrb[131].mxu1  ;;  %v8334_v23 = vpop.f32.mrb[131].mxu0  ;;  %v6425_v44 = vsel %vm1078_vm3, %v6418_v21, -inf  ;;  %v6543_v30 = vsel %vm1078_vm3, %v6536_v41, -inf }
0x365f   : > { %6426 = vmax.xlane.f32.xlu1 %v6425_v44 }
0x3661   : > { %6541 = vmax.xlane.f32.xlu0 %v6540_v13 }
0x3663   : > { %v6655_v27 = vpop.f32.mrb[132].mxu0 }
0x3664   : > { %v8345_v45 = vpop.f32.mrb[133].mxu0  ;;  %v6662_v32 = vsel %vm1078_vm3, %v6655_v27, -inf }
0x3665   : > { %v6658_v33 = vpop.f32.mrb[134].mxu0  ;;  %6544 = vmax.xlane.f32.xlu0 %v6543_v30  ;;  %6663 = vmax.xlane.f32.xlu1 %v6662_v32 }
0x3666   : > { %v8346_v34 = vpop.f32.mrb[135].mxu0  ;;  %v6665_v35 = vsel %vm1078_vm3, %v6658_v33, -inf }
0x3669   : > { %6666 = vmax.xlane.f32.xlu0 %v6665_v35 }
0x366b   : > { %v6776_v36 = vpop.f32.mrb[136].mxu0 }
0x366c   : > { %v8357_v24 = vpop.f32.mrb[137].mxu0  ;;  %v6783_v3 = vsel %vm1078_vm3, %v6776_v36, -inf }
0x366d   : > { %v6779_v37 = vpop.f32.mrb[138].mxu0  ;;  %6784 = vmax.xlane.f32.xlu1 %v6783_v3 }
0x366e   : > { %v8358_v54 = vpop.f32.mrb[139].mxu0  ;;  %v6786_v39 = vsel %vm1078_vm3, %v6779_v37, -inf }
0x366f   : > { %6787 = vmax.xlane.f32.xlu0 %v6786_v39 }
0x36ea   : > { %v6424_v7 = vpop.xlane.xlu0 %6423 }
0x36eb   : > { %v6428_v18 = vsub.f32 %v6415_v22, %v6424_v7 }
0x36ec   : > { %v6427_v40 = vpop.xlane.xlu1 %6426 }
0x36ed   : > { %v6430_v43 = vmul.f32 1.442695, %v6428_v18  ;;  %v6429_v46 = vsub.f32 %v6418_v21, %v6427_v40 }
0x36ee   : > { %v6542_v48 = vpop.xlane.xlu0 %6541 }
0x36ef   : > { %9076 = vpow2.f32 %v6430_v43  ;;  %v6432_v51 = vmul.f32 1.442695, %v6429_v46  ;;  %v6546_v50 = vsub.f32 %v10667_v15, %v6542_v48 }
0x36f1   : > { %9078 = vpow2.f32 %v6432_v51  ;;  %v6548_v10 = vmul.f32 1.442695, %v6546_v50 }
0x36f2   : > { %v6545_v63 = vpop.xlane.xlu0 %6544  ;;  %v6664_v38 = vpop.xlane.xlu1 %6663 }
0x36f3   : > { %v6547_v5 = vsub.f32 %v6536_v41, %v6545_v63  ;;  %v6668_v9 = vsub.f32 %v6655_v27, %v6664_v38 }
0x36f5   : > { %v6550_v53 = vmul.f32 1.442695, %v6547_v5  ;;  %v6670_v11 = vmul.f32 1.442695, %v6668_v9 }
0x36f6   : > { %v6667_v49 = vpop.xlane.xlu0 %6666 }
0x36f7   : > { %9080 = vpow2.f32 %v6550_v53  ;;  %v6669_v56 = vsub.f32 %v6658_v33, %v6667_v49 }
0x36f9   : > { %v9077_v26 = vpop.eup %9076  ;;  %v6672_v57 = vmul.f32 1.442695, %v6669_v56 }
0x36fa   : > { %v6434_v58 = vsel %vm1078_vm3, %v9077_v26, 0.0  ;;  %v6785_v42 = vpop.xlane.xlu1 %6784 }
0x36fb   : > { %v9079_v59 = vpop.eup %9078  ;;  %9082 = vpow2.f32 %v6672_v57  ;;  %6435 = vadd.xlane.f32.xlu1 %v6434_v58  ;;  %v6789_v47 = vsub.f32 %v6776_v36, %v6785_v42  ;;  %v8900_v57 = vld [vmem:[%s10850_s13 + $0xa0] sm:$0xff]  }
0x36fc   : > { %v6788_v31 = vpop.xlane.xlu0 %6787  ;;  %v6437_v60 = vsel %vm1078_vm3, %v9079_v59, 0.0  ;;  %8366 = vmatpush3.bf16.msra.mxu0 %v8900_v57 }
0x36fd   : > { %v6790_v62 = vsub.f32 %v6779_v37, %v6788_v31  ;;  %6438 = vadd.xlane.f32.xlu0 %v6437_v60  ;;  %v6791_v14 = vmul.f32 1.442695, %v6789_v47  ;;  %8367 = vmatprep.subr.bf16.mxu0 %v9372_v0  ;;  %v8901_v31 = vld [vmem:[%s10850_s13 + $0xa8] sm:$0xff]  }
0x36ff   : > { %v6793_v1 = vmul.f32 1.442695, %v6790_v62 }
0x3700   : > { %8368 = vmatpush3.bf16.msra.mxu0 %v8901_v31 }
0x3701   : > { %v9081_v28 = vpop.eup %9080  ;;  %9084 = vpow2.f32 %v6793_v1  ;;  %8369 = vmatprep.subr.bf16.mxu0 %v9372_v0 }
0x3702   : > { %v6555_v2 = vsel %vm1078_vm3, %v9081_v28, 0.0  ;;  %9086 = vpow2.f32 %v6548_v10 }
0x3703   : > { %6556 = vadd.xlane.f32.xlu0 %v6555_v2  ;;  %9088 = vpow2.f32 %v6670_v11 }
0x3704   : > { %9090 = vpow2.f32 %v6791_v14 }
0x3705   : > { %v10681_v4 = vpop.eup %9082 }
0x3706   : > { %v6677_v6 = vsel %vm1078_vm3, %v10681_v4, 0.0 }
0x3707   : > { %6678 = vadd.xlane.f32.xlu0 %v6677_v6  ;;  %v8903_v6 = vld [vmem:[%s10850_s13 + $0xb8] sm:$0xff]  }
0x370b   : > { %v10685_v8 = vpop.eup %9084 }
0x370c   : > { %6564 = vrot.lane.b32.xlu1 %v10636_v61, %s10854_s6  ;;  %v6798_v29 = vsel %vm1078_vm3, %v10685_v8, 0.0  ;;  %v9087_v12 = vpop.eup %9086  ;;  %s9282_s6 = sshll.u32 %s9383_s27, 4  ;;  %s9283_s6 = int_to_ptr.vmem [resolvable:$false] %s9282_s6 }
0x370d   : > { %6799 = vadd.xlane.f32.xlu0 %v6798_v29  ;;  %v6552_v16 = vsel %vm1078_vm3, %v9087_v12, 0.0  ;;  %v9089_v20 = vpop.eup %9088  ;;  %s9284_s3 = scalar_lea.vmem %s9283_s6, 32 }
0x370e   : > { %v6674_v22 = vsel %vm1078_vm3, %v9089_v20, 0.0  ;;  %v9091_v15 = vpop.eup %9090 }
0x370f   : > { %v6795_v52 = vsel %vm1078_vm3, %v9091_v15, 0.0 }
0x3723   : > { %6685 = vrot.lane.b32.xlu0 %v10636_v61, %s10851_s22 }
0x3730   : > { %6553 = vadd.xlane.f32.xlu1 %v6552_v16 }
0x3734   : > { %6675 = vadd.xlane.f32.xlu1 %v6674_v22 }
0x3738   : > { %6796 = vadd.xlane.f32.xlu1 %v6795_v52 }
0x3749   : > { %6806 = vrot.lane.b32.xlu1 %v10636_v61, %s10852_s21 }
0x3788   : > { %v6436_v17 = vpop.xlane.xlu1 %6435 }
0x3789   : > { %9092 = vrcp.f32 %v6436_v17 }
0x378a   : > { %v6439_v19 = vpop.xlane.xlu0 %6438 }
0x378b   : > { %9094 = vrcp.f32 %v6439_v19 }
0x378c   : > { %v6565_v13 = vpop.permute.xlu1 %6564 }
0x3790   : > { %v6557_v27 = vpop.xlane.xlu0 %6556 }
0x3791   : > { %9096 = vrcp.f32 %v6557_v27 }
0x3793   : > { %v9093_v41 = vpop.eup %9092 }
0x3794   : > { %v6442_v55 = vmul.f32 %v9093_v41, %v9077_v26  ;;  %v6679_v45 = vpop.xlane.xlu0 %6678 }
0x3795   : > { %v9095_v21 = vpop.eup %9094 }
0x3796   : > { %v6443_v23 = vmul.f32 %v9095_v21, %v9079_v59 }
0x3798   : > { %v6444_v44 = vpack.c.bf16 %v6443_v23, %v6442_v55 }
0x379a   : > { %8326 = vmatmul.mubr.msk.bf16.vlgmr.msra.gmra.mrb[132].mxu1 %vm1078_vm3, %v6444_v44  ;;  %v6800_v33 = vpop.xlane.xlu0 %6799 }
0x379b   : > { %8336 = vmatpush3.bf16.msra.mxu1 %v6565_v13  ;;  %8337 = vmatprep.mubr.msk.bf16.mxu1 %vm9373_vm0, %v9372_v0  ;;  %v9097_v32 = vpop.eup %9096  ;;  %v7329_v13 = vld [vmem:[#allocation11 + $0x5] ss:$0 sm:$0xff] }
0x379c   : > { %8347 = vmatprep.subr.bf16.mxu1 %v9372_v0  ;;  %v6561_v36 = vmul.f32 %v9097_v32, %v9081_v28  ;;  %v8902_v28 = vld [vmem:[%s10850_s13 + $0xb0] sm:$0xff]  }
0x379d   : > { %8370 = vmatpush3.bf16.msra.mxu0 %v8902_v28 }
0x379e   : > { %v6686_v54 = vpop.permute.xlu0 %6685  ;;  %8371 = vmatprep.subr.bf16.mxu0 %v9372_v0 }
0x37a1   : > { %8372 = vmatpush3.bf16.msra.mxu0 %v8903_v6 }
0x37bd   : > { %v6554_v61 = vpop.xlane.xlu1 %6553 }
0x37be   : > { %9098 = vrcp.f32 %v6554_v61 }
0x37c1   : > { %v6676_v30 = vpop.xlane.xlu1 %6675 }
0x37c2   : > { %9100 = vrcp.f32 %v6676_v30 }
0x37c3   : > { %9102 = vrcp.f32 %v6679_v45 }
0x37c5   : > { %v6797_v34 = vpop.xlane.xlu1 %6796 }
0x37c6   : > { %9104 = vrcp.f32 %v6797_v34 }
0x37c7   : > { %9106 = vrcp.f32 %v6800_v33 }
0x37c8   : > { %v9099_v35 = vpop.eup %9098 }
0x37c9   : > { %v6560_v24 = vmul.f32 %v9099_v35, %v9087_v12  ;;  %v6807_v46 = vpop.permute.xlu1 %6806 }
0x37cb   : > { %v6562_v3 = vpack.c.bf16 %v6561_v36, %v6560_v24 }
0x37cc   : > { %v9101_v37 = vpop.eup %9100 }
0x37cd   : > { %8338 = vmatmul.mubr.msk.bf16.vlgmr.msra.gmra.mrb[136].mxu1 %vm1078_vm3, %v6562_v3  ;;  %v9103_v39 = vpop.eup %9102  ;;  %v6682_v7 = vmul.f32 %v9101_v37, %v9089_v20 }
0x37ce   : > { %8348 = vmatpush3.bf16.msra.mxu1 %v6686_v54  ;;  %8349 = vmatprep.mubr.msk.bf16.mxu1 %vm9373_vm0, %v9372_v0  ;;  %v6683_v18 = vmul.f32 %v9103_v39, %v10681_v4 }
0x37cf   : > { %8359 = vmatprep.subr.bf16.mxu1 %v9372_v0 }
0x37d0   : > { %v6684_v40 = vpack.c.bf16 %v6683_v18, %v6682_v7  ;;  %v9105_v43 = vpop.eup %9104 }
0x37d1   : > { %v9107_v48 = vpop.eup %9106  ;;  %v6803_v51 = vmul.f32 %v9105_v43, %v9091_v15 }
0x37d2   : > { %v6804_v63 = vmul.f32 %v9107_v48, %v10685_v8 }
0x37d4   : > { %v6805_v5 = vpack.c.bf16 %v6804_v63, %v6803_v51 }
0x37d5   : > { %8350 = vmatmul.mubr.msk.bf16.vlgmr.msra.gmra.mrb[140].mxu1 %vm1078_vm3, %v6684_v40 }
0x37d6   : > { %8360 = vmatpush3.bf16.msra.mxu1 %v6807_v46  ;;  %8361 = vmatprep.mubr.msk.bf16.mxu1 %vm9373_vm0, %v9372_v0 }
0x37dd   : > { %8362 = vmatmul.mubr.msk.bf16.vlgmr.msra.gmra.mrb[144].mxu1 %vm1078_vm3, %v6805_v5 }
0x386d   : > { %v6482_v53 = vpop.f32.mrb[132].mxu1 }
0x386e   : > { %v8327_v49 = vpop.f32.mrb[133].mxu1 }
0x386f   : > { %v6485_v56 = vpop.f32.mrb[134].mxu1 }
0x3870   : > { %v8328_v26 = vpop.f32.mrb[135].mxu1 }
0x38a0   : > { %v6604_v58 = vpop.f32.mrb[136].mxu1 }
0x38a1   : > { %v8339_v59 = vpop.f32.mrb[137].mxu1 }
0x38a2   : > { %v6607_v60 = vpop.f32.mrb[138].mxu1 }
0x38a3   : > { %v8784_v62 = vpack.i.bf16 %v6607_v60, %v6604_v58  ;;  %v8340_v1 = vpop.f32.mrb[139].mxu1 }
0x38a5   : > { %8785 = vrot.lane.b32.xlu1 %v8784_v62, %s10857_s30 }
0x38a8   : > { %v6725_v2 = vpop.f32.mrb[140].mxu1 }
0x38a9   : > { %v8351_v4 = vpop.f32.mrb[141].mxu1 }
0x38aa   : > { %v6728_v8 = vpop.f32.mrb[142].mxu1 }
0x38ab   : > { %v8789_v29 = vpack.i.bf16 %v6728_v8, %v6725_v2  ;;  %v8352_v50 = vpop.f32.mrb[143].mxu1 }
0x38ad   : > { %8790 = vrot.lane.b32.xlu0 %v8789_v29, %s10855_s24  ;;  %s7330_s24 = sshll.u32 %s9465_s23, 4  ;;  %s6962_s23 = scalar_lea.sflag [#allocation4], %s9680_s9 }
0x38ae   : > { %s10744_s22 = scalar_lea.hbm %s10858_s1, %s7330_s24 }
0x38b0   : > { %v6846_v38 = vpop.f32.mrb[144].mxu1 }
0x38b1   : > { %v8363_v10 = vpop.f32.mrb[145].mxu1 }
0x38b2   : > { %v6849_v9 = vpop.f32.mrb[146].mxu1 }
0x38b3   : > { %v8794_v42 = vpack.i.bf16 %v6849_v9, %v6846_v38  ;;  %v8364_v11 = vpop.f32.mrb[147].mxu1 }
0x38b5   : > { %8795 = vrot.lane.b32.xlu1 %v8794_v42, %s10856_s28  ;;  %s476_s28 = scalar_lea.vmem [#allocation13], %s9680_s9 }
0x38b6   : > { %s6974_s30 = sshll.u32 %s476_s28, 4  ;;  %s10746_s30 = int_to_ptr.vmem [resolvable:$true] %s6974_s30 }
0x38b7   : > { %s9278_s21 = scalar_lea.vmem %s10746_s30, 16  ;;  %p9285_p11 = scmp.lt.s32.totalorder %s10746_s30, %s9283_s6 }
0x38b8   : > { %p9279_p2 = scmp.ne.s32.totalorder %s10746_s30, %s9278_s21  ;;  %p9286_p12 = scmp.lt.s32.totalorder %s9284_s3, %s9278_s21 }
0x38ba   : > { %p9280_p10 = pnand %p9279_p2, %p10859_p7  ;;  %p9287_p13 = por %p9286_p12, %p9285_p11 }
0x38bc   : > { %p9281_p1 = pneg %p9280_p10 }
0x38be   : > { %p9288_p8 = pnand %p9287_p13, %p9281_p1 }
0x3917   : > { %v8786_v47 = vpop.permute.xlu1 %8785 }
0x3918   : > { %v8788_v14 = vunpack.i.h.bf16 %v8786_v47  ;;  %v8787_v12 = vunpack.i.l.bf16 %v8786_v47 }
0x391a   : > { %v6878_v15 = vsel %vm1078_vm3, %v6485_v56, %v8788_v14  ;;  %v6877_v52 = vsel %vm1078_vm3, %v6482_v53, %v8787_v12 }
0x391f   : > { %v8791_v0 = vpop.permute.xlu0 %8790 }
0x3920   : > { %v8793_v16 = vunpack.i.h.bf16 %v8791_v0  ;;  %v8792_v20 = vunpack.i.l.bf16 %v8791_v0 }
0x3922   : > { %v6880_v41 = vsel %vm714_vm2, %v6878_v15, %v8793_v16  ;;  %v6879_v21 = vsel %vm714_vm2, %v6877_v52, %v8792_v20 }
0x3927   : > { %v8796_v22 = vpop.permute.xlu1 %8795 }
0x3928   : > { %v8798_v17 = vunpack.i.h.bf16 %v8796_v22  ;;  %v8797_v19 = vunpack.i.l.bf16 %v8796_v22 }
0x392a   : > { %v6882_v55 = vsel %vm1585_vm4, %v6880_v41, %v8798_v17  ;;  %v6881_v23 = vsel %vm1585_vm4, %v6879_v21, %v8797_v19 }
0x392b   : > { %v6883_v44 = vpack.c.bf16 %v6882_v55, %v6881_v23 }
0x392d   : > { %8374 = vmatmul.mubr.msk.bf16.vlgmr.msra.gmra.mrb[140].mxu0 %vm618_vm1, %v6883_v44 }
0x3a00   : > { %v6945_v27 = vpop.f32.mrb[140].mxu0 }
0x3a01   : > { %v6951_v61 = vadd.f32 %v6945_v27, %v10597_v25  ;;  %v8375_v45 = vpop.f32.mrb[141].mxu0 }
0x3a02   : > { %v6948_v30 = vpop.f32.mrb[142].mxu0 }
0x3a03   : > { %v6958_v32 = vadd.f32 %v7329_v13, %v6951_v61  ;;  %v8376_v33 = vpop.f32.mrb[143].mxu0 }
0x3a05   : > { %6960 = vst.msk [vmem:[%s476_s28] sm:$0x1] %vm6959_vm5, %v6958_v32 }
0x3a06   : > { %9291 = shalt.err (!%p9288_p8)
}
0x3a07   : > { %s9292_s9 = scalar_lea.hbm %s10744_s22, 16  ;;  %s9296_s24 = scalar_lea.hbm %s10858_s1, 32 }
0x3a08   : > { %p9293_p6 = scmp.ne.s32.totalorder %s10744_s22, %s9292_s9  ;;  %p9297_p3 = scmp.lt.u32.totalorder %s10744_s22, %s10858_s1 }
0x3a09   : > { %p9298_p0 = scmp.lt.u32.totalorder %s9296_s24, %s9292_s9  ;;  %p9300_p2 = scmp.lt.u32.totalorder %s9292_s9, %s10744_s22 }
0x3a0a   : > { %p9294_p9 = pnand %p9293_p6, %p10859_p7 }
0x3a0b   : > { %p9299_p5 = por %p9298_p0, %p9297_p3 }
0x3a0c   : > { %p9295_p4 = pneg %p9294_p9 }
0x3a0d   : > { %p9301_p10 = por %p9300_p2, %p9299_p5 }
0x3a0f   : > { %p9302_p1 = pnand %p9301_p10, %p9295_p4 }
0x3a11   : > { %9305 = shalt.err (!%p9302_p1)
}
0x3a12   : > { %8615 = dma.vmem_to_hbm [thread:$0]  (%p10859_p7), %s10746_s30, 16, %s10744_s22, %s6962_s23  }
0x3a13 PF: > { %s6986_s11 = sand.u32 1, %s9344_s17   ;;  %p10860_p11 = scmp.ne.s32.totalorder %s10838_s25, 0 }
0x3a14   : > { %p10861_p12 = scmp.ge.s32.totalorder %s9356_s20, 2  ;;  %s6987_s21 = scalar_lea.sflag [#allocation4], %s6986_s11 }
0x3a16   : > { %p8638_p13 = pnand %p10861_p12, %p10860_p11 }
0x3a18   : > { %9339 = dma.done.wait (!%p8638_p13), %s6987_s21, 16  }
0x3a19   : > { %9341 = vsyncadd (!%p8638_p13), %s6987_s21, 4294967280  ;;  %p27_p8 = scmp.ge.s32.totalorder %s9607_s16, 4   ;;  %s10862_s17 = smov %s9348_s18 }
0x3a1a   : > { %s10863_s18 = smov %s9352_s19  ;;  %s10864_s19 = smov %s9619_s14 }
0x3a1b   : > { %s10865_s20 = smov %s9607_s16  ;;  %29 = sbr.rel (!%p27_p8) target bundleno = 15 (0xf), region = 159 }
0x3a22   :  { %6991 = vsyncpa [#allocation3], 1 }
0x3a23   :  { %6993 = vsyncpa [#allocation3 + $0x1], 1 }
0x3a24   :  { %6994 = vsyncpa [#allocation6], 1 }
0x3a25   :  { %6995 = vsyncpa [#allocation9], 1 }
0x3a26   :  { %6996 = vsyncpa [#allocation12], 1 }
0x3a27   :  { %6997 = vsyncpa [#allocation4], 1 }
0x3a28   :  { %6999 = vsyncpa [#allocation4 + $0x1], 1 }

</bundles_post_ra>
